<compile_context>
chip_gen: v7x
topology: tpu7x:2x2x1
jax: 0.10.0
libtpu: 0.0.40
codegen_flags: <defaults>
</compile_context>

<pallas_src>
import functools

import jax
import jax.numpy as jnp
from jax.experimental import pallas as pl
from jax.experimental.pallas import tpu as pltpu


def _custom_model_kernel(num_layers,
                         last_ref,                                   # scalar prefetch (SMEM)
                         hid_ref, mask_ref, w1_hbm,
                         b1_ref, w2_ref, b2_ref, w3_ref, b3_ref,
                         out_ref,
                         acc_ref, den_ref, w1_vmem, w1_sem):
    """Streamed masked-sum pooling over S tiles + (last step) SiLU MLP head.

    last_ref: (num_batch_tiles,) i32  last S-tile index containing any valid token
    hid_ref : (L, TB, TS, H) bf16     current hidden-state tile (upcast in-kernel)
    mask_ref: (TB, TS) f32            current attention-mask tile
    w1_hbm  : (L, H, d1) f32          first Linear, left in HBM (single VMEM copy)
    acc_ref : (L, TB, H) f32          running masked sums
    den_ref : (TB, 1) f32             running token counts
    """
    i = pl.program_id(0)
    s = pl.program_id(1)

    @pl.when(s == 0)
    def _init():
        acc_ref[...] = jnp.zeros_like(acc_ref)
        den_ref[...] = jnp.zeros_like(den_ref)
        # Single-buffered head weight: one HBM->VMEM copy per batch tile, started at
        # the first S step so it is fully hidden under the streamed reduction.
        pltpu.make_async_copy(w1_hbm, w1_vmem, w1_sem).start()

    @pl.when(s <= last_ref[i])
    def _pool():
        mask = mask_ref[...]                                  # (TB, TS) f32
        mask3 = mask[:, :, None]                              # hoisted broadcast
        den_ref[...] += jnp.sum(mask, axis=1, keepdims=True)  # (TB, 1)
        # VPU multiply + sublane reduction; bf16 stream upcast to f32 here (works on
        # v5e too, which lacks bf16 VALU -- the cast hides under the DMA).
        for l in range(num_layers):                           # static unroll (L == 2)
            acc_ref[l] = acc_ref[l] + jnp.sum(
                hid_ref[l].astype(jnp.float32) * mask3, axis=1)

    @pl.when(s == pl.num_programs(1) - 1)
    def _finalize():
        pltpu.make_async_copy(w1_hbm, w1_vmem, w1_sem).wait()
        # Exact divide (review); clamp diverges from PyTorch's NaN on all-padding rows.
        den = jnp.maximum(den_ref[...], 1.0)                  # (TB, 1)

        # First Linear accumulated per layer: sum_l (pooled_l @ w1[l]) == concat @ w1.
        x = jnp.dot(acc_ref[0] / den, w1_vmem[0], preferred_element_type=jnp.float32)
        for l in range(1, num_layers):
            x = x + jnp.dot(acc_ref[l] / den, w1_vmem[l],
                            preferred_element_type=jnp.float32)
        x = x + b1_ref[...]
        x = x * jax.nn.sigmoid(x)                             # SiLU
        # Dropout(0.2) is identity in eval mode.
        x = jnp.dot(x, w2_ref[...], preferred_element_type=jnp.float32) + b2_ref[...]
        x = x * jax.nn.sigmoid(x)                             # SiLU
        logits = jnp.dot(x, w3_ref[...], preferred_element_type=jnp.float32) + b3_ref[...]
        out_ref[...] = logits.astype(out_ref.dtype)


def _round_up(x, m):
    return ((x + m - 1) // m) * m


def _pick_tiles(L, B, S, H, *, tile_budget, two_cores, elem_bytes, tb=None, ts=None):
    """Batch/seq tile sizes satisfying (8,128) layout rules and the VMEM budget."""
    if tb is None:
        tb = B  # single-TC parts (v5e/v6e): one fat batch tile, fewest grid steps
        if two_cores:
            # v7x: keep the "parallel" batch axis split evenly over both TensorCores.
            for cand in (8, 16, 32, 64):
                if B % cand == 0 and (B // cand) >= 2 and (B // cand) % 2 == 0:
                    tb = cand
                    break
    if ts is None:
        divisors = [c for c in (2048, 1024, 512, 256, 128) if S % c == 0]
        ts = S
        for cand in divisors:
            if L * tb * cand * H * elem_bytes <= tile_budget:
                ts = cand
                break
        else:
            if divisors:
                ts = divisors[-1]
    # TODO(synk): ragged (non-divisible) B/S tails would need padding or a
    #             BoundedSlice tail path; production shapes should be padded.
    assert B % tb == 0 and S % ts == 0, (B, tb, S, ts)
    return tb, ts


def custom_model_forward(hidden_states, attention_mask, params, num_labels,
                         *, tb=None, ts=None):
    """hidden_states: [L, B, S, H] (bf16 preferred); attention_mask: [B, S]."""
    L, B, S, H = hidden_states.shape
    w1, b1, w2, b2, w3, b3 = params
    d1, d2 = w1.shape[1], w2.shape[1]
    assert w1.shape[0] == L * H

    # Stream the (only large) input in bf16; keep everything else in f32.
    if hidden_states.dtype != jnp.bfloat16:
        hidden_states = hidden_states.astype(jnp.bfloat16)
    attention_mask = attention_mask.astype(jnp.float32)
    w1r = w1.reshape(L, H, d1).astype(jnp.float32)   # per-layer slabs -> no in-kernel concat

    # Generation-aware sizing: 128 MiB VMEM (v5e/v6e) vs 64 MiB (v7x).
    try:
        info = pltpu.get_tpu_info()
        phys_vmem = int(getattr(info, "vmem_capacity_bytes", 64 * 2 ** 20))
    except Exception:  # conservative fallback
        phys_vmem = 64 * 2 ** 20
    if phys_vmem >= 128 * 2 ** 20:        # v5e / v6e: single TC, big VMEM
        vmem_cap, tile_budget, two_cores = 100 * 2 ** 20, 40 * 2 ** 20, False
    else:                                 # v7x: 2 TCs, 64 MiB/TC -> leave headroom
        vmem_cap, tile_budget, two_cores = 52 * 2 ** 20, 14 * 2 ** 20, True

    elem_bytes = jnp.dtype(hidden_states.dtype).itemsize
    TB, TS = _pick_tiles(L, B, S, H, tile_budget=tile_budget, two_cores=two_cores,
                         elem_bytes=elem_bytes, tb=tb, ts=ts)
    nb, ns = B // TB, S // TS
    grid = (nb, ns)                       # batch (parallel), seq reduction (arbitrary, last)

    # Per-batch-tile last S tile that contains any valid token (skip all-padding tiles).
    tile_any = attention_mask.reshape(B, ns, TS).max(axis=2) > 0          # (B, ns)
    col = jnp.arange(ns, dtype=jnp.int32)[None, :]
    last_per_row = jnp.max(jnp.where(tile_any, col, 0), axis=1)           # (B,)
    last_tile = jnp.max(last_per_row.reshape(nb, TB), axis=1).astype(jnp.int32)  # (nb,)

    # index_maps receive (grid_i, grid_s, *scalar_prefetch_refs); clamping to the last
    # needed tile makes Pallas re-use the same block and elide the HBM read.
    def hid_map(i, s, last):
        return (0, i, jnp.minimum(s, last[i]), 0)

    def mask_map(i, s, last):
        return (i, jnp.minimum(s, last[i]))

    const2 = lambda i, s, last: (0, 0)

    in_specs = [
        pl.BlockSpec((L, TB, TS, H), hid_map),     # streamed hidden states (bf16)
        pl.BlockSpec((TB, TS), mask_map),          # streamed mask
        pl.BlockSpec(memory_space=pl.ANY),         # w1 stays in HBM (single VMEM copy)
        pl.BlockSpec((1, d1), const2),             # tiny head params: resident
        pl.BlockSpec((d1, d2), const2),
        pl.BlockSpec((1, d2), const2),
        pl.BlockSpec((d2, num_labels), const2),
        pl.BlockSpec((1, num_labels), const2),
    ]
    out_spec = pl.BlockSpec((TB, num_labels), lambda i, s, last: (i, 0))

    scratch_shapes = [
        pltpu.VMEM((L, TB, H), jnp.float32),       # masked-sum accumulator
        pltpu.VMEM((TB, 1), jnp.float32),          # token-count accumulator
        pltpu.VMEM((L, H, d1), jnp.float32),       # single-buffered w1 copy
        pltpu.SemaphoreType.DMA(()),               # w1 copy completion
    ]

    # Explicit VMEM budget: double-buffered streams + small resident params + scratch.
    hid_tile = L * TB * TS * H * elem_bytes
    mask_tile = TB * TS * 4
    small_w = 4 * (_round_up(1, 8) * _round_up(d1, 128)
                   + _round_up(d1, 8) * _round_up(d2, 128)
                   + _round_up(1, 8) * _round_up(d2, 128)
                   + _round_up(d2, 8) * _round_up(num_labels, 128)
                   + _round_up(1, 8) * _round_up(num_labels, 128))
    w1_bytes = 4 * L * H * d1
    scratch_bytes = 4 * (L * _round_up(TB, 8) * H + _round_up(TB, 8) * 128)
    out_tile = _round_up(TB, 8) * 128 * 4
    est = (2 * (hid_tile + mask_tile) + 2 * small_w + w1_bytes
           + scratch_bytes + 2 * out_tile)
    vmem_limit = int(min(vmem_cap, max(32 * 2 ** 20, int(1.5 * est))))

    kernel = functools.partial(_custom_model_kernel, L)
    return pl.pallas_call(
        kernel,
        out_shape=jax.ShapeDtypeStruct((B, num_labels), jnp.float32),
        grid_spec=pltpu.PrefetchScalarGridSpec(
            num_scalar_prefetch=1,
            grid=grid,
            in_specs=in_specs,
            out_specs=out_spec,
            scratch_shapes=scratch_shapes),
        compiler_params=pltpu.CompilerParams(
            dimension_semantics=("parallel", "arbitrary"),
            vmem_limit_bytes=vmem_limit),
    )(last_tile, hidden_states, attention_mask, w1r, b1, w2, b2, w3, b3)


def _reference_forward(hidden_states, attention_mask, params):
    """Plain-JAX reference matching the PyTorch forward (mean_pooling=True, eval)."""
    w1, b1, w2, b2, w3, b3 = params
    hs = hidden_states.astype(jnp.float32)
    L = hs.shape[0]
    denom = jnp.maximum(attention_mask.sum(axis=1, keepdims=True), 1.0)
    pooled = []
    for l in range(L):
        masked = hs[l] * attention_mask[:, :, None]
        pooled.append(masked.sum(axis=1) / denom)
    pooled = jnp.concatenate(pooled, axis=-1)
    x = pooled @ w1 + b1
    x = x * jax.nn.sigmoid(x)
    x = x @ w2 + b2
    x = x * jax.nn.sigmoid(x)
    return x @ w3 + b3


if __name__ == "__main__":
    # Small-but-realistic shapes: 2 selected layers (concat_layers=(-1,-2)),
    # batch 16, seq 512, hidden 128.
    L = 2
    B, S, H = 16, 512, 128
    num_labels = 2
    output_len = L * H
    d1, d2 = output_len // 2, output_len // 4

    key = jax.random.PRNGKey(0)
    k_hid, k_len, k_w1, k_b1, k_w2, k_b2, k_w3, k_b3 = jax.random.split(key, 8)

    # Synthetic stand-in for base_model(...).hidden_states at the selected layers,
    # already in bf16 (a real backbone would emit bf16 activations).
    # TODO(synk): the pretrained AutoModel backbone itself is not reproduced here.
    hidden_states = jax.random.normal(
        k_hid, (L, B, S, H), dtype=jnp.float32).astype(jnp.bfloat16)

    # Variable-length attention mask; lengths capped at S//2 so the trailing S tiles
    # are fully padded and the scalar-prefetched tile-skip path is exercised.
    lengths = jax.random.randint(k_len, (B,), 32, S // 2 + 1)
    attention_mask = (jnp.arange(S)[None, :] < lengths[:, None]).astype(jnp.float32)

    scale = 0.05
    params = (
        scale * jax.random.normal(k_w1, (output_len, d1), jnp.float32),
        scale * jax.random.normal(k_b1, (1, d1), jnp.float32),
        scale * jax.random.normal(k_w2, (d1, d2), jnp.float32),
        scale * jax.random.normal(k_b2, (1, d2), jnp.float32),
        scale * jax.random.normal(k_w3, (d2, num_labels), jnp.float32),
        scale * jax.random.normal(k_b3, (1, num_labels), jnp.float32),
    )

    # ts=128 forces a multi-step S reduction (grid (B//TB, 4)) so the demo exercises
    # both the pipelined accumulation AND the padded-tile skip (S tiles 2,3 are all pad).
    logits = custom_model_forward(hidden_states, attention_mask, params, num_labels,
                                  ts=128)
    logits = jax.block_until_ready(logits)

    ref = _reference_forward(hidden_states, attention_mask, params)
    assert logits.shape == (B, num_labels)
    assert jnp.allclose(logits, ref, atol=1e-4, rtol=1e-3), (logits, ref)

    print("KERNEL_OK")
</pallas_src>

<mosaic_0001>
module attributes {stable_mosaic.version = 11 : i64} {
  func.func @_custom_model_kernel(%arg0: i32, %arg1: i32, %arg2: memref<2xi32, #tpu.memory_space<smem>>, %arg3: memref<2x8x128x128xbf16, #tpu.memory_space<vmem>>, %arg4: memref<8x128xf32, #tpu.memory_space<vmem>>, %arg5: memref<2x128x128xf32, #tpu.memory_space<any>>, %arg6: memref<1x128xf32, #tpu.memory_space<vmem>>, %arg7: memref<128x64xf32, #tpu.memory_space<vmem>>, %arg8: memref<1x64xf32, #tpu.memory_space<vmem>>, %arg9: memref<64x2xf32, #tpu.memory_space<vmem>>, %arg10: memref<1x2xf32, #tpu.memory_space<vmem>>, %arg11: memref<8x2xf32, #tpu.memory_space<vmem>>, %arg12: memref<2x8x128xf32, #tpu.memory_space<vmem>>, %arg13: memref<8x1xf32, #tpu.memory_space<vmem>>, %arg14: memref<2x128x128xf32, #tpu.memory_space<vmem>>, %arg15: memref<!tpu.dma_semaphore, #tpu.memory_space<semaphore_mem>>) attributes {dimension_semantics = [#tpu.dimension_semantics<parallel>, #tpu.dimension_semantics<arbitrary>], iteration_bounds = array<i64: 2, 4>, scalar_prefetch = 1 : i64, scratch_operands = 4 : i64, tpu.core_type = #tpu.core_type<tc>, window_params = [{transform_indices = @transform_0, window_bounds = array<i64: 2, 8, 128, 128>}, {transform_indices = @transform_1, window_bounds = array<i64: 8, 128>}, {}, {pipeline_mode = #tpu.pipeline_mode<synchronous>, transform_indices = @transform_3, window_bounds = array<i64: 1, 128>}, {pipeline_mode = #tpu.pipeline_mode<synchronous>, transform_indices = @transform_4, window_bounds = array<i64: 128, 64>}, {pipeline_mode = #tpu.pipeline_mode<synchronous>, transform_indices = @transform_5, window_bounds = array<i64: 1, 64>}, {pipeline_mode = #tpu.pipeline_mode<synchronous>, transform_indices = @transform_6, window_bounds = array<i64: 64, 2>}, {pipeline_mode = #tpu.pipeline_mode<synchronous>, transform_indices = @transform_7, window_bounds = array<i64: 1, 2>}, {transform_indices = @transform_8, window_bounds = array<i64: 8, 2>}]} {
    %c0_i32 = arith.constant 0 : i32
    %0 = arith.cmpi eq, %arg1, %c0_i32 : i32
    %1 = arith.extui %0 : i1 to i32
    %c0_i32_0 = arith.constant 0 : i32
    %2 = arith.cmpi ne, %1, %c0_i32_0 : i32
    scf.if %2 {
      %cst = arith.constant 0.000000e+00 : f32
      %11 = vector.broadcast %cst : f32 to vector<2x8x128xf32>
      %c0 = arith.constant 0 : index
      %c0_3 = arith.constant 0 : index
      %c0_4 = arith.constant 0 : index
      %12 = vector.load %arg12[%c0, %c0_3, %c0_4] : memref<2x8x128xf32, #tpu.memory_space<vmem>>, vector<2x8x128xf32>
      tpu.vector_store %arg12[%c0, %c0_3, %c0_4], %11 {strides = array<i32>} : memref<2x8x128xf32, #tpu.memory_space<vmem>>, vector<2x8x128xf32>,
      %cst_5 = arith.constant 0.000000e+00 : f32
      %13 = vector.broadcast %cst_5 : f32 to vector<8x1xf32>
      %c0_6 = arith.constant 0 : index
      %c0_7 = arith.constant 0 : index
      %14 = vector.load %arg13[%c0_6, %c0_7] : memref<8x1xf32, #tpu.memory_space<vmem>>, vector<8x1xf32>
      tpu.vector_store %arg13[%c0_6, %c0_7], %13 {strides = array<i32>} : memref<8x1xf32, #tpu.memory_space<vmem>>, vector<8x1xf32>,
      tpu.enqueue_dma source(%arg5 : memref<2x128x128xf32, #tpu.memory_space<any>>) target(%arg14 : memref<2x128x128xf32, #tpu.memory_space<vmem>>) target_semaphore(%arg15 : memref<!tpu.dma_semaphore, #tpu.memory_space<semaphore_mem>>)
    } else {
    }
    %3 = arith.index_cast %arg0 : i32 to index
    %4 = memref.load %arg2[%3] : memref<2xi32, #tpu.memory_space<smem>>
    %5 = arith.cmpi sle, %arg1, %4 : i32
    %6 = arith.extui %5 : i1 to i32
    %c0_i32_1 = arith.constant 0 : i32
    %7 = arith.cmpi ne, %6, %c0_i32_1 : i32
    scf.if %7 {
      %c0 = arith.constant 0 : index
      %c0_3 = arith.constant 0 : index
      %11 = vector.load %arg4[%c0, %c0_3] : memref<8x128xf32, #tpu.memory_space<vmem>>, vector<8x128xf32>
      %12 = vector.shape_cast %11 : vector<8x128xf32> to vector<8x128x1xf32>
      %c0_4 = arith.constant 0 : index
      %c0_5 = arith.constant 0 : index
      %13 = vector.load %arg13[%c0_4, %c0_5] : memref<8x1xf32, #tpu.memory_space<vmem>>, vector<8x1xf32>
      %cst = arith.constant dense<0.000000e+00> : vector<8xf32>
      %14 = vector.multi_reduction <add>, %11, %cst [1] : vector<8x128xf32> to vector<8xf32>
      %15 = vector.shape_cast %14 : vector<8xf32> to vector<8x1xf32>
      %16 = arith.addf %13, %15 : vector<8x1xf32>
      %c0_6 = arith.constant 0 : index
      %c0_7 = arith.constant 0 : index
      %17 = vector.load %arg13[%c0_6, %c0_7] : memref<8x1xf32, #tpu.memory_space<vmem>>, vector<8x1xf32>
      tpu.vector_store %arg13[%c0_6, %c0_7], %16 {strides = array<i32>} : memref<8x1xf32, #tpu.memory_space<vmem>>, vector<8x1xf32>,
      %c0_8 = arith.constant 0 : index
      %c0_9 = arith.constant 0 : index
      %c0_10 = arith.constant 0 : index
      %18 = vector.load %arg12[%c0_8, %c0_9, %c0_10] : memref<2x8x128xf32, #tpu.memory_space<vmem>>, vector<1x8x128xf32>
      %19 = vector.shape_cast %18 : vector<1x8x128xf32> to vector<8x128xf32>
      %c0_11 = arith.constant 0 : index
      %c0_12 = arith.constant 0 : index
      %c0_13 = arith.constant 0 : index
      %c0_14 = arith.constant 0 : index
      %20 = vector.load %arg3[%c0_11, %c0_12, %c0_13, %c0_14] : memref<2x8x128x128xbf16, #tpu.memory_space<vmem>>, vector<1x8x128x128xbf16>
      %21 = vector.shape_cast %20 : vector<1x8x128x128xbf16> to vector<8x128x128xbf16>
      %22 = arith.extf %21 : vector<8x128x128xbf16> to vector<8x128x128xf32>
      %23 = vector.broadcast %12 : vector<8x128x1xf32> to vector<8x128x128xf32>
      %24 = arith.mulf %22, %23 : vector<8x128x128xf32>
      %cst_15 = arith.constant dense<0.000000e+00> : vector<8x128xf32>
      %25 = vector.multi_reduction <add>, %24, %cst_15 [1] : vector<8x128x128xf32> to vector<8x128xf32>
      %26 = arith.addf %19, %25 : vector<8x128xf32>
      %c0_16 = arith.constant 0 : index
      %c0_17 = arith.constant 0 : index
      %c0_18 = arith.constant 0 : index
      %27 = vector.load %arg12[%c0_16, %c0_17, %c0_18] : memref<2x8x128xf32, #tpu.memory_space<vmem>>, vector<1x8x128xf32>
      %28 = vector.shape_cast %27 : vector<1x8x128xf32> to vector<8x128xf32>
      %29 = vector.shape_cast %26 : vector<8x128xf32> to vector<1x8x128xf32>
      tpu.vector_store %arg12[%c0_16, %c0_17, %c0_18], %29 {strides = array<i32>} : memref<2x8x128xf32, #tpu.memory_space<vmem>>, vector<1x8x128xf32>,
      %c1 = arith.constant 1 : index
      %c0_19 = arith.constant 0 : index
      %c0_20 = arith.constant 0 : index
      %30 = vector.load %arg12[%c1, %c0_19, %c0_20] : memref<2x8x128xf32, #tpu.memory_space<vmem>>, vector<1x8x128xf32>
      %31 = vector.shape_cast %30 : vector<1x8x128xf32> to vector<8x128xf32>
      %c1_21 = arith.constant 1 : index
      %c0_22 = arith.constant 0 : index
      %c0_23 = arith.constant 0 : index
      %c0_24 = arith.constant 0 : index
      %32 = vector.load %arg3[%c1_21, %c0_22, %c0_23, %c0_24] : memref<2x8x128x128xbf16, #tpu.memory_space<vmem>>, vector<1x8x128x128xbf16>
      %33 = vector.shape_cast %32 : vector<1x8x128x128xbf16> to vector<8x128x128xbf16>
      %34 = arith.extf %33 : vector<8x128x128xbf16> to vector<8x128x128xf32>
      %35 = vector.broadcast %12 : vector<8x128x1xf32> to vector<8x128x128xf32>
      %36 = arith.mulf %34, %35 : vector<8x128x128xf32>
      %cst_25 = arith.constant dense<0.000000e+00> : vector<8x128xf32>
      %37 = vector.multi_reduction <add>, %36, %cst_25 [1] : vector<8x128x128xf32> to vector<8x128xf32>
      %38 = arith.addf %31, %37 : vector<8x128xf32>
      %c1_26 = arith.constant 1 : index
      %c0_27 = arith.constant 0 : index
      %c0_28 = arith.constant 0 : index
      %39 = vector.load %arg12[%c1_26, %c0_27, %c0_28] : memref<2x8x128xf32, #tpu.memory_space<vmem>>, vector<1x8x128xf32>
      %40 = vector.shape_cast %39 : vector<1x8x128xf32> to vector<8x128xf32>
      %41 = vector.shape_cast %38 : vector<8x128xf32> to vector<1x8x128xf32>
      tpu.vector_store %arg12[%c1_26, %c0_27, %c0_28], %41 {strides = array<i32>} : memref<2x8x128xf32, #tpu.memory_space<vmem>>, vector<1x8x128xf32>,
    } else {
    }
    %c3_i32 = arith.constant 3 : i32
    %8 = arith.cmpi eq, %arg1, %c3_i32 : i32
    %9 = arith.extui %8 : i1 to i32
    %c0_i32_2 = arith.constant 0 : i32
    %10 = arith.cmpi ne, %9, %c0_i32_2 : i32
    scf.if %10 {
      tpu.wait_dma2 semaphore(%arg15 : memref<!tpu.dma_semaphore, #tpu.memory_space<semaphore_mem>>) src(%arg5 : memref<2x128x128xf32, #tpu.memory_space<any>>) dst(%arg14 : memref<2x128x128xf32, #tpu.memory_space<vmem>>)
      %c0 = arith.constant 0 : index
      %c0_3 = arith.constant 0 : index
      %11 = vector.load %arg13[%c0, %c0_3] : memref<8x1xf32, #tpu.memory_space<vmem>>, vector<8x1xf32>
      %cst = arith.constant 1.000000e+00 : f32
      %12 = vector.broadcast %cst : f32 to vector<8x1xf32>
      %13 = arith.maximumf %11, %12 : vector<8x1xf32>
      %c0_4 = arith.constant 0 : index
      %c0_5 = arith.constant 0 : index
      %c0_6 = arith.constant 0 : index
      %14 = vector.load %arg12[%c0_4, %c0_5, %c0_6] : memref<2x8x128xf32, #tpu.memory_space<vmem>>, vector<1x8x128xf32>
      %15 = vector.shape_cast %14 : vector<1x8x128xf32> to vector<8x128xf32>
      %16 = vector.broadcast %13 : vector<8x1xf32> to vector<8x128xf32>
      %17 = arith.divf %15, %16 : vector<8x128xf32>
      %c0_7 = arith.constant 0 : index
      %c0_8 = arith.constant 0 : index
      %c0_9 = arith.constant 0 : index
      %18 = vector.load %arg14[%c0_7, %c0_8, %c0_9] : memref<2x128x128xf32, #tpu.memory_space<vmem>>, vector<1x128x128xf32>
      %19 = vector.shape_cast %18 : vector<1x128x128xf32> to vector<128x128xf32>
      %cst_10 = arith.constant dense<0.000000e+00> : vector<8x128xf32>
      %20 = tpu.matmul %17, %19, %cst_10 {dimension_numbers = #tpu.dot_dimension_numbers<[1], [0], [0], [1], [0, 0, 1, 1], [], []>} : vector<8x128xf32>, vector<128x128xf32>, vector<8x128xf32> -> vector<8x128xf32>
      %c1 = arith.constant 1 : index
      %c0_11 = arith.constant 0 : index
      %c0_12 = arith.constant 0 : index
      %21 = vector.load %arg12[%c1, %c0_11, %c0_12] : memref<2x8x128xf32, #tpu.memory_space<vmem>>, vector<1x8x128xf32>
      %22 = vector.shape_cast %21 : vector<1x8x128xf32> to vector<8x128xf32>
      %23 = vector.broadcast %13 : vector<8x1xf32> to vector<8x128xf32>
      %24 = arith.divf %22, %23 : vector<8x128xf32>
      %c1_13 = arith.constant 1 : index
      %c0_14 = arith.constant 0 : index
      %c0_15 = arith.constant 0 : index
      %25 = vector.load %arg14[%c1_13, %c0_14, %c0_15] : memref<2x128x128xf32, #tpu.memory_space<vmem>>, vector<1x128x128xf32>
      %26 = vector.shape_cast %25 : vector<1x128x128xf32> to vector<128x128xf32>
      %cst_16 = arith.constant dense<0.000000e+00> : vector<8x128xf32>
      %27 = tpu.matmul %24, %26, %cst_16 {dimension_numbers = #tpu.dot_dimension_numbers<[1], [0], [0], [1], [0, 0, 1, 1], [], []>} : vector<8x128xf32>, vector<128x128xf32>, vector<8x128xf32> -> vector<8x128xf32>
      %28 = arith.addf %20, %27 : vector<8x128xf32>
      %c0_17 = arith.constant 0 : index
      %c0_18 = arith.constant 0 : index
      %29 = vector.load %arg6[%c0_17, %c0_18] : memref<1x128xf32, #tpu.memory_space<vmem>>, vector<1x128xf32>
      %30 = vector.broadcast %29 : vector<1x128xf32> to vector<8x128xf32>
      %31 = arith.addf %28, %30 : vector<8x128xf32>
      %32 = arith.negf %31 : vector<8x128xf32>
      %33 = math.exp %32 : vector<8x128xf32>
      %cst_19 = arith.constant 1.000000e+00 : f32
      %34 = vector.broadcast %cst_19 : f32 to vector<8x128xf32>
      %35 = arith.addf %34, %33 : vector<8x128xf32>
      %36 = arith.divf %34, %35 : vector<8x128xf32>
      %37 = arith.mulf %31, %36 : vector<8x128xf32>
      %c0_20 = arith.constant 0 : index
      %c0_21 = arith.constant 0 : index
      %38 = vector.load %arg7[%c0_20, %c0_21] : memref<128x64xf32, #tpu.memory_space<vmem>>, vector<128x64xf32>
      %cst_22 = arith.constant dense<0.000000e+00> : vector<8x64xf32>
      %39 = tpu.matmul %37, %38, %cst_22 {dimension_numbers = #tpu.dot_dimension_numbers<[1], [0], [0], [1], [0, 0, 1, 1], [], []>} : vector<8x128xf32>, vector<128x64xf32>, vector<8x64xf32> -> vector<8x64xf32>
      %c0_23 = arith.constant 0 : index
      %c0_24 = arith.constant 0 : index
      %40 = vector.load %arg8[%c0_23, %c0_24] : memref<1x64xf32, #tpu.memory_space<vmem>>, vector<1x64xf32>
      %41 = vector.broadcast %40 : vector<1x64xf32> to vector<8x64xf32>
      %42 = arith.addf %39, %41 : vector<8x64xf32>
      %43 = arith.negf %42 : vector<8x64xf32>
      %44 = math.exp %43 : vector<8x64xf32>
      %cst_25 = arith.constant 1.000000e+00 : f32
      %45 = vector.broadcast %cst_25 : f32 to vector<8x64xf32>
      %46 = arith.addf %45, %44 : vector<8x64xf32>
      %47 = arith.divf %45, %46 : vector<8x64xf32>
      %48 = arith.mulf %42, %47 : vector<8x64xf32>
      %c0_26 = arith.constant 0 : index
      %c0_27 = arith.constant 0 : index
      %49 = vector.load %arg9[%c0_26, %c0_27] : memref<64x2xf32, #tpu.memory_space<vmem>>, vector<64x2xf32>
      %cst_28 = arith.constant dense<0.000000e+00> : vector<8x2xf32>
      %50 = tpu.matmul %48, %49, %cst_28 {dimension_numbers = #tpu.dot_dimension_numbers<[1], [0], [0], [1], [0, 0, 1, 1], [], []>} : vector<8x64xf32>, vector<64x2xf32>, vector<8x2xf32> -> vector<8x2xf32>
      %c0_29 = arith.constant 0 : index
      %c0_30 = arith.constant 0 : index
      %51 = vector.load %arg10[%c0_29, %c0_30] : memref<1x2xf32, #tpu.memory_space<vmem>>, vector<1x2xf32>
      %52 = vector.broadcast %51 : vector<1x2xf32> to vector<8x2xf32>
      %53 = arith.addf %50, %52 : vector<8x2xf32>
      %c0_31 = arith.constant 0 : index
      %c0_32 = arith.constant 0 : index
      %54 = vector.load %arg11[%c0_31, %c0_32] : memref<8x2xf32, #tpu.memory_space<vmem>>, vector<8x2xf32>
      tpu.vector_store %arg11[%c0_31, %c0_32], %53 {strides = array<i32>} : memref<8x2xf32, #tpu.memory_space<vmem>>, vector<8x2xf32>,
    } else {
    }
    return
  }
  func.func @transform_0(%arg0: i32, %arg1: i32, %arg2: memref<2xi32, #tpu.memory_space<smem>>) -> (i32, i32, i32, i32) {
    %0 = arith.index_cast %arg0 : i32 to index
    %1 = memref.load %arg2[%0] : memref<2xi32, #tpu.memory_space<smem>>
    %2 = arith.minsi %arg1, %1 : i32
    %c0_i32 = arith.constant 0 : i32
    %c0_i32_0 = arith.constant 0 : i32
    %c0_i32_1 = arith.constant 0 : i32
    return %c0_i32, %arg0, %2, %c0_i32_0 : i32, i32, i32, i32
  }
  func.func @transform_1(%arg0: i32, %arg1: i32, %arg2: memref<2xi32, #tpu.memory_space<smem>>) -> (i32, i32) {
    %0 = arith.index_cast %arg0 : i32 to index
    %1 = memref.load %arg2[%0] : memref<2xi32, #tpu.memory_space<smem>>
    %2 = arith.minsi %arg1, %1 : i32
    %c0_i32 = arith.constant 0 : i32
    return %arg0, %2 : i32, i32
  }
  func.func @transform_3(%arg0: i32, %arg1: i32, %arg2: memref<2xi32, #tpu.memory_space<smem>>) -> (i32, i32) {
    %c0_i32 = arith.constant 0 : i32
    %c0_i32_0 = arith.constant 0 : i32
    %c0_i32_1 = arith.constant 0 : i32
    return %c0_i32, %c0_i32_0 : i32, i32
  }
  func.func @transform_4(%arg0: i32, %arg1: i32, %arg2: memref<2xi32, #tpu.memory_space<smem>>) -> (i32, i32) {
    %c0_i32 = arith.constant 0 : i32
    %c0_i32_0 = arith.constant 0 : i32
    %c0_i32_1 = arith.constant 0 : i32
    return %c0_i32, %c0_i32_0 : i32, i32
  }
  func.func @transform_5(%arg0: i32, %arg1: i32, %arg2: memref<2xi32, #tpu.memory_space<smem>>) -> (i32, i32) {
    %c0_i32 = arith.constant 0 : i32
    %c0_i32_0 = arith.constant 0 : i32
    %c0_i32_1 = arith.constant 0 : i32
    return %c0_i32, %c0_i32_0 : i32, i32
  }
  func.func @transform_6(%arg0: i32, %arg1: i32, %arg2: memref<2xi32, #tpu.memory_space<smem>>) -> (i32, i32) {
    %c0_i32 = arith.constant 0 : i32
    %c0_i32_0 = arith.constant 0 : i32
    %c0_i32_1 = arith.constant 0 : i32
    return %c0_i32, %c0_i32_0 : i32, i32
  }
  func.func @transform_7(%arg0: i32, %arg1: i32, %arg2: memref<2xi32, #tpu.memory_space<smem>>) -> (i32, i32) {
    %c0_i32 = arith.constant 0 : i32
    %c0_i32_0 = arith.constant 0 : i32
    %c0_i32_1 = arith.constant 0 : i32
    return %c0_i32, %c0_i32_0 : i32, i32
  }
  func.func @transform_8(%arg0: i32, %arg1: i32, %arg2: memref<2xi32, #tpu.memory_space<smem>>) -> (i32, i32) {
    %c0_i32 = arith.constant 0 : i32
    %c0_i32_0 = arith.constant 0 : i32
    return %arg0, %c0_i32 : i32, i32
  }
}

</mosaic_0001>

<bundles_post_ra>
// kernel: tpu_custom_call.1
= control target key start
LH: loop header
LB: loop body
LE: loop exit
PB: predicated region body
PF: predicated region fallthrough
CT: control target
= control target key end

     0   :  { %s5975_s0 = inlined_call_operand.hbm [shape: s32[2], index: 0, kind: input, shape index: {}]   ;;  %s5976_s1 = inlined_call_operand.hbm [shape: bf16[2,16,512,128], index: 1, kind: input, shape index: {}]   ;;  %s5977_s2 = inlined_call_operand.hbm [shape: f32[16,512], index: 2, kind: input, shape index: {}]   ;;  %s5978_s3 = inlined_call_operand.hbm [shape: f32[2,128,128], index: 3, kind: input, shape index: {}]   ;;  %s5979_s4 = inlined_call_operand.hbm [shape: f32[1,128], index: 4, kind: input, shape index: {}]   ;;  %s5980_s5 = inlined_call_operand.vmem [shape: f32[128,64], index: 5, kind: input, shape index: {}]   ;;  %s5981_s6 = inlined_call_operand.hbm [shape: f32[1,64], index: 6, kind: input, shape index: {}]   ;;  %s5982_s7 = inlined_call_operand.vmem [shape: f32[64,2], index: 7, kind: input, shape index: {}]   ;;  %s5983_s8 = inlined_call_operand.hbm [shape: f32[1,2], index: 8, kind: input, shape index: {}]   ;;  %s5984_s9 = inlined_call_operand.vmem [shape: f32[16,2], index: 9, kind: output, shape index: {}]  }
   0x1   :  { %6050 = sst [smem:[#allocation64_spill]] %s5978_s3  ;;  %s3950_s11 = scalar_lea.hbm %s5975_s0, 16 }
   0x2   :  { %6051 = sst [smem:[#allocation65_spill]] %s5979_s4  ;;  %p3951_p0 = scmp.ne.s32.totalorder %s5975_s0, %s3950_s11 }
   0x3   :  { %6052 = sst [smem:[#allocation66_spill]] %s5980_s5  ;;  %p3954_p1 = scmp.lt.u32.totalorder %s3950_s11, %s5975_s0 }
   0x4   :  { %6053 = sst [smem:[#allocation67_spill]] %s5982_s7 }
   0x5   :  { %6054 = sst [smem:[#allocation68_spill]] %s5984_s9  ;;  %p3956_p2 = pnand %p3954_p1, %p3951_p0 }
   0x7   :  { %3959 = shalt.err (!%p3956_p2)  }
   0x8   :  { %s4202_s16 = smov [#allocation7]  }
   0x9   :  { %15 = dma.hbm_to_smem %s5975_s0, 16, %s4202_s16, [#allocation6] }
   0xa   :  { %4138 = dma.done.wait [#allocation6], 16 }
   0xb   :  { %4139 = vsyncadd [#allocation6], 4294967280 }
   0xc   :  { %17 = sfence }
   0xd   :  { %18 = vsyncpa [#allocation9], 0 }
   0xe   :  { %20 = vsyncpa [#allocation9 + $0x1], 0 }
   0xf   :  { %21 = vsyncpa [#allocation11], 0 }
  0x10   :  { %23 = vsyncpa [#allocation11 + $0x1], 0 }
  0x11   :  { %24 = vsyncpa [#allocation14], 0  ;;  %s4284_s19 = smov 0   ;;  %s4286_s20 = smov 0  }
  0x12   :  { %s4288_s21 = smov 0   ;;  %s4290_s22 = smov 0  }
  0x13   :  { %s4292_s23 = smov 0   ;;  %s4294_s24 = smov 0  }
  0x14   :  { %s4296_s0 = smov 0   ;;  %s4298_s25 = smov 0  }
  0x15   :  { %s4300_s26 = smov 0   ;;  %s4302_s27 = smov 0  }
  0x16   :  { %s4304_s28 = smov 0  }
  0x17 LB: > { %6055 = sst [smem:[#allocation31_spill]] %s4164_s20  ;;  %s5985_s29 = sadd.s32 4294967295, %s4200_s28   ;;  %s4200_s28 = sphi %s4304_s28, %s30_s28   ;;  %s4196_s27 = sphi %s4302_s27, %s6296_s27   ;;  %s4192_s26 = sphi %s4300_s26, %s6295_s26   ;;  %s4188_s25 = sphi %s4298_s25, %s6294_s25   ;;  %s4184_s0 = sphi %s4296_s0, %s6293_s0   ;;  %s4180_s24 = sphi %s4294_s24, %s6292_s24   ;;  %s4176_s23 = sphi %s4292_s23, %s6291_s23   ;;  %s4172_s22 = sphi %s4290_s22, %s6287_s22   ;;  %s4168_s21 = sphi %s4288_s21, %s6290_s21   ;;  %s4164_s20 = sphi %s4286_s20, %s6289_s20   ;;  %s4160_s19 = sphi %s4284_s19, %s6286_s19  }
  0x18   : > { %6056 = sst [smem:[#allocation32_spill]] %s4176_s23  ;;  %s39_s30 = sadd.s32 1, %s4192_s26 }
  0x19   : > { %6057 = sst [smem:[#allocation33_spill]] %s4184_s0  ;;  %p40_p3 = scmp.ge.s32.totalorder %s39_s30, 4 }
  0x1a   : > { %6058 = sst [smem:[#allocation34_spill]] %s4188_s25  ;;  %s42_s10 = sadd.s32 1, %s4196_s27 }
  0x1b   : > { %s46_s11 = sld [smem:[#allocation7 + %s4196_s27]]  ;;  %s6298_s30 = smov (%p40_p3, %s39_s30), 0 }
  0x1c   : > { %s6300_s10 = smov (!%p40_p3, %s42_s10), %s4196_s27  ;;  %p64_p4 = scmp.ne.s32.totalorder %s4180_s24, %s4176_s23 }
  0x1d   : > { %p65_p5 = scmp.eq.s32.totalorder %s4200_s28, 0  ;;  %p44_p6 = scmp.ge.s32.totalorder %s6300_s10, 2 }
  0x1e   : > { %p70_p7 = scmp.ne.s32.totalorder %s4176_s23, %s4172_s22  ;;  %p4357_p9 = scmp.eq.s32.totalorder %s5985_s29, 0 }
  0x1f   : > { %p4351_p8 = por %p65_p5, %p64_p4  ;;  %s6302_s10 = smov (%p44_p6, %s6300_s10), 0 }
  0x20   : > { %s6060_s14 = scalar_select %p4357_p9, 1, 0 }
  0x21   : > { %s6059_s13 = scalar_select %p4351_p8, 1, 0 }
  0x22   : > { %6061 = sst [smem:[#allocation35_spill]] %s6060_s14  ;;  %p47_p10 = scmp.lt.s32.totalorder %s4192_s26, %s46_s11 }
  0x23   : > { %6062 = sst [smem:[#allocation36_spill]] %s6302_s10  ;;  %p4366_p11 = por %p4357_p9, %p70_p7 }
  0x24   : > { %s49_s16 = sld [smem:[#allocation7 + %s6302_s10]]  ;;  %s52_s17 = ssub.s32 %s4196_s27, %s6302_s10 }
  0x25   : > { %s6063_s15 = scalar_select %p4366_p11, 1, 0 }
  0x26   : > { %s48_s18 = scalar_select %p47_p10, %s4192_s26, %s46_s11 }
  0x27   : > { %6064 = sst [smem:[#allocation37_spill]] %s6063_s15  ;;  %p98_p12 = scmp.ne.s32.totalorder %s4168_s21, %s4164_s20 }
  0x28   : > { %s80_s22 = sld [smem:[#allocation7 + %s4196_s27]]  ;;  %p104_p13 = scmp.ne.s32.totalorder %s4164_s20, %s4160_s19 }
  0x29   : > { %s83_s29 = sld [smem:[#allocation7 + %s6302_s10]]  ;;  %p2715_p0 = scmp.ge.s32.totalorder %s4200_s28, 1 }
  0x2a   : > { %p4384_p1 = por %p98_p12, %p65_p5  ;;  %p246_p2 = scmp.lt.s32.totalorder %s4200_s28, 9 }
  0x2b   : > { %p50_p3 = scmp.lt.s32.totalorder %s6298_s30, %s49_s16  ;;  %p4392_p4 = por %p104_p13, %p4357_p9 }
  0x2c   : > { %s6065_s7 = scalar_select %p4384_p1, 1, 0 }
  0x2d   : > { %s6066_s11 = scalar_select %p4392_p4, 1, 0 }
  0x2e   : > { %p4396_p6 = pnand %p2715_p0, %p246_p2  ;;  %p81_p7 = scmp.lt.s32.totalorder %s4192_s26, %s80_s22 }
  0x2f   : > { %6067 = sst [smem:[#allocation38_spill]] %s6066_s11  ;;  %p84_p10 = scmp.lt.s32.totalorder %s6298_s30, %s83_s29 }
  0x30   : > { %s6068_s12 = scalar_select %p4396_p6, 1, 0 }
  0x31   : > { %s51_s19 = scalar_select %p50_p3, %s6298_s30, %s49_s16 }
  0x32   : > { %p3815_p5 = pneg %p4396_p6  ;;  %s6070_s9 = sadd.s32 1, %s4180_s24 }
  0x33   : > { %s53_s10 = ssub.s32 %s48_s18, %s51_s19  ;;  %s4203_s20 = smov [#allocation13]  }
  0x34   : > { %s54_s5 = sor.u32 %s53_s10, %s52_s17  ;;  %p4407_p11 = pnand %p3815_p5, %p4357_p9 }
  0x35   : > { %p55_p12 = scmp.eq.s32.totalorder %s54_s5, 0  ;;  %s273_s16 = sshll.u32 %s4203_s20, 4  ;;  %s274_s16 = int_to_ptr.vmem [resolvable:$true] %s273_s16 }
  0x36   : > { %s82_s0 = scalar_select %p81_p7, %s4192_s26, %s80_s22 }
  0x37   : > { %s4415_s25 = scalar_select %p55_p12, %s4180_s24, %s6070_s9  }
  0x38   : > { %s85_s11 = scalar_select %p84_p10, %s6298_s30, %s83_s29 }
  0x39   : > { %s3960_s5 = scalar_lea.hbm %s5981_s6, 16  ;;  %p4426_p2 = pneg %p4407_p11 }
  0x3a   : > { %s87_s15 = ssub.s32 %s82_s0, %s85_s11  ;;  %p3961_p0 = scmp.ne.s32.totalorder %s5981_s6, %s3960_s5 }
  0x3b   : > { %s88_s18 = sor.u32 %s87_s15, %s52_s17  ;;  %p3967_p10 = scmp.lt.u32.totalorder %s3960_s5, %s5981_s6 }
  0x3c   : > { %p3963_p3 = pnand %p4426_p2, %p3961_p0 }
  0x3e   : > { %p3964_p7 = pneg %p3963_p3 }
  0x40   : > { %p3969_p5 = pnand %p3967_p10, %p3964_p7 }
  0x42   : > { %3972 = shalt.err (!%p3969_p5)
}
  0x43   : > { %s3973_s0 = scalar_lea.vmem %s274_s16, 16  ;;  %s3980_s23 = scalar_lea.vmem %s274_s16, 32 }
  0x44   : > { %p3974_p12 = scmp.ne.s32.totalorder %s274_s16, %s3973_s0  ;;  %p3981_p4 = scmp.lt.s32.totalorder %s274_s16, %s274_s16 }
  0x45   : > { %p3982_p6 = scmp.lt.s32.totalorder %s3980_s23, %s3973_s0 }
  0x46   : > { %p3976_p13 = pnand %p3974_p12, %p4426_p2 }
  0x47   : > { %p3983_p1 = por %p3982_p6, %p3981_p4 }
  0x48   : > { %p3977_p9 = pneg %p3976_p13 }
  0x4a   : > { %p3984_p8 = pnand %p3983_p1, %p3977_p9 }
  0x4c   : > { %3987 = shalt.err (!%p3984_p8)
}
  0x4d   : > { %3821 = dma.hbm_to_vmem [thread:$0]  (!%p4407_p11), %s5981_s6, 16, %s274_s16, [#allocation14]  }
  0x4e   : > { %s6072_s15 = sadd.s32 1, %s4168_s21  ;;  %p6073_p0 = scmp.eq.s32.totalorder %s88_s18, 0 }
  0x4f   : > { %s4204_s11 = smov [#allocation12]   ;;  %s4205_s10 = smov [#allocation15]  }
  0x50   : > { %s4446_s17 = scalar_select %p6073_p0, %s4168_s21, %s6072_s15  }
  0x51   : > { %s259_s19 = sshll.u32 %s4204_s11, 4  ;;  %s287_s5 = sshll.u32 %s4205_s10, 4  ;;  %s260_s19 = int_to_ptr.vmem [resolvable:$true] %s259_s19  ;;  %s4448_s5 = int_to_ptr.vmem [resolvable:$true] %s287_s5 }
  0x52   : > { %s6074_s4 = sld [smem:[#allocation65_spill]] }
  0x58   : > { %s3988_s0 = scalar_lea.hbm %s6074_s4, 16 }
  0x59   : > { %p3989_p8 = scmp.ne.s32.totalorder %s6074_s4, %s3988_s0  ;;  %p3995_p4 = scmp.lt.u32.totalorder %s3988_s0, %s6074_s4 }
  0x5b   : > { %p3991_p9 = pnand %p3989_p8, %p4426_p2 }
  0x5d   : > { %p3992_p1 = pneg %p3991_p9 }
  0x5f   : > { %p3997_p6 = pnand %p3995_p4, %p3992_p1 }
  0x61   : > { %4000 = shalt.err (!%p3997_p6)
}
  0x62   : > { %s4001_s14 = scalar_lea.vmem %s260_s19, 16  ;;  %s4008_s15 = scalar_lea.vmem %s260_s19, 32 }
  0x63   : > { %p4002_p13 = scmp.ne.s32.totalorder %s260_s19, %s4001_s14  ;;  %p4009_p10 = scmp.lt.s32.totalorder %s260_s19, %s260_s19 }
  0x64   : > { %p4010_p5 = scmp.lt.s32.totalorder %s4008_s15, %s4001_s14 }
  0x65   : > { %p4004_p3 = pnand %p4002_p13, %p4426_p2 }
  0x66   : > { %p4011_p12 = por %p4010_p5, %p4009_p10 }
  0x67   : > { %p4005_p7 = pneg %p4004_p3 }
  0x69   : > { %p4012_p0 = pnand %p4011_p12, %p4005_p7 }
  0x6b   : > { %4015 = shalt.err (!%p4012_p0)
}
  0x6c   : > { %3818 = dma.hbm_to_vmem [thread:$0]  (!%p4407_p11), %s6074_s4, 16, %s260_s19, [#allocation11]  }
  0x6d   : > { %s4016_s0 = scalar_lea.hbm %s5983_s8, 16 }
  0x6e   : > { %p4017_p8 = scmp.ne.s32.totalorder %s5983_s8, %s4016_s0  ;;  %p4023_p4 = scmp.lt.u32.totalorder %s4016_s0, %s5983_s8 }
  0x70   : > { %p4019_p9 = pnand %p4017_p8, %p4426_p2 }
  0x72   : > { %p4020_p1 = pneg %p4019_p9 }
  0x74   : > { %p4025_p6 = pnand %p4023_p4, %p4020_p1 }
  0x76   : > { %4028 = shalt.err (!%p4025_p6)
}
  0x77   : > { %s4029_s19 = scalar_lea.vmem %s4448_s5, 16  ;;  %s4036_s14 = scalar_lea.vmem %s4448_s5, 32 }
  0x78   : > { %p4030_p13 = scmp.ne.s32.totalorder %s4448_s5, %s4029_s19  ;;  %p4037_p10 = scmp.lt.s32.totalorder %s4448_s5, %s4448_s5 }
  0x79   : > { %p4038_p5 = scmp.lt.s32.totalorder %s4036_s14, %s4029_s19 }
  0x7a   : > { %p4032_p3 = pnand %p4030_p13, %p4426_p2 }
  0x7b   : > { %p4039_p12 = por %p4038_p5, %p4037_p10 }
  0x7c   : > { %p4033_p7 = pneg %p4032_p3 }
  0x7e   : > { %p4040_p0 = pnand %p4039_p12, %p4033_p7 }
  0x80   : > { %4043 = shalt.err (!%p4040_p0)
}
  0x81   : > { %3824 = dma.hbm_to_vmem [thread:$0]  (!%p4407_p11), %s5983_s8, 16, %s4448_s5, [#allocation14]  }
  0x82   : > { %p2719_p8 = scmp.ge.s32.totalorder %s4200_s28, 8 }
  0x84   : > { %294 = sbr.rel (%p2719_p8) target bundleno = 201 (0xc9), region = 36 }
  0x8b   : > { %s6006_s22 = sand.u32 1, %s4180_s24   ;;  %s2877_s3 = sshll.u32 %s4196_s27, 9 }
  0x8c   : > { %s2720_s10 = sshll.u32 %s6006_s22, 10  ;;  %p6075_p2 = scmp.ne.s32.totalorder %s6059_s13, 0 }
  0x8d   : > { %s302_s23 = scalar_lea.vmem [#allocation8], %s2720_s10  ;;  %s4206_s18 = smov 65536  }
  0x8e   : > { %s3791_s5 = scalar_select %p6075_p2, [#allocation7], [#allocation22] }
  0x8f   : > { %s3792_s9 = scalar_select %p6075_p2, %s4196_s27, 0 }
  0x90   : > { %s3793_s20 = scalar_select %p6075_p2, [#allocation0], [#allocation23] }
  0x91   : > { %s303_s0 = sld [smem:[%s3791_s5 + %s3792_s9]]  ;;  %s4504_s29 = sshll.u32 %s302_s23, 4  ;;  %s328_s29 = int_to_ptr.vmem [resolvable:$true] %s4504_s29 }
  0x92   : > { %s319_s16 = sld [smem:[%s3793_s20]]   ;;  %s4207_s19 = smov 8192  }
  0x93   : > { %3794 = sst [smem:[#allocation17]] (%p6075_p2), %s4206_s18  ;;  %s4208_s14 = smov 8  }
  0x94   : > { %3795 = sst [smem:[#allocation17 + $0x1]] (%p6075_p2), %s4207_s19  ;;  %s4209_s15 = smov 4096  }
  0x95   : > { %3796 = sst [smem:[#allocation17 + $0x2]] (%p6075_p2), %s4208_s14  ;;  %s4210_s11 = smov 1024  }
  0x96   : > { %3797 = sst [smem:[#allocation17 + $0x3]] (%p6075_p2), %s4209_s15  ;;  %s4211_s20 = smov 16  }
  0x97   : > { %p304_p11 = scmp.lt.s32.totalorder %s4192_s26, %s303_s0  ;;  %3798 = sst [smem:[#allocation17 + $0x4]] (%p6075_p2), %s4210_s11 }
  0x98   : > { %s2725_s10 = sshll.u32 %s319_s16, 26  ;;  %3799 = sst [smem:[#allocation17 + $0x5]] (%p6075_p2), %s4211_s20 }
  0x99   : > { %s305_s5 = scalar_select %p304_p11, %s4192_s26, %s303_s0 }
  0x9a   : > { %s2726_s9 = sadd.s32 134217728, %s2725_s10  ;;  %s4212_s19 = smov 64  }
  0x9b   : > { %s2722_s23 = sshll.u32 %s305_s5, 4  ;;  %3800 = sst [smem:[#allocation17 + $0x6]] (%p6075_p2), %s4212_s19 }
  0x9c   : > { %s312_s18 = sadd.s32 %s2877_s3, %s2722_s23  ;;  %3801 = sst [smem:[#allocation17 + $0x7]] (%p6075_p2), %s4212_s19 }
  0x9d   : > { %s2724_s14 = sshll.u32 %s312_s18, 6  ;;  %s4213_s16 = smov 4  }
  0x9e   : > { %s314_s11 = scalar_lea.hbm %s5976_s1, %s2724_s14  ;;  %3802 = sst [smem:[#allocation17 + $0x8]] (%p6075_p2), %s4213_s16 }
  0x9f   : > { %s6076_s0 = sand.u32 1, %s4180_s24   ;;  %s4214_s4 = smov [#allocation16]  }
  0xa0   : > { %s299_s10 = scalar_lea.sflag [#allocation9], %s6076_s0  ;;  %s360_s3 = sand.u32 1, %s4168_s21  }
  0xa1   : > { %3803 = dma.general (%p6075_p2), %s314_s11, 16384, %s328_s29, %s299_s10, %s4214_s4, [#allocation17], %s2726_s9, 0  }
  0xa2   : > { %p6077_p9 = scmp.ne.s32.totalorder %s6065_s7, 0  ;;  %s2727_s23 = sshll.u32 %s360_s3, 3 }
  0xa3   : > { %s358_s18 = sand.u32 1, %s4200_s28   ;;  %s2728_s13 = sshll.u32 %s4196_s27, 2 }
  0xa4   : > { %s3804_s22 = scalar_select %p6077_p9, [#allocation7], [#allocation24] }
  0xa5   : > { %s3805_s5 = scalar_select %p6077_p9, %s4196_s27, 0 }
  0xa6   : > { %s362_s4 = scalar_lea.vmem [#allocation10], %s2727_s23  ;;  %s359_s0 = scalar_lea.sflag [#allocation11], %s358_s18 }
  0xa7   : > { %s363_s20 = sld [smem:[%s3804_s22 + %s3805_s5]]  ;;  %s374_s29 = sshll.u32 %s362_s4, 4  ;;  %s4546_s29 = int_to_ptr.vmem [resolvable:$true] %s374_s29 }
  0xa8   : > { %s4048_s5 = scalar_lea.hbm %s5977_s2, 1024 }
  0xad   : > { %p364_p1 = scmp.lt.s32.totalorder %s4192_s26, %s363_s20 }
  0xaf   : > { %s365_s9 = scalar_select %p364_p1, %s4192_s26, %s363_s20 }
  0xb1   : > { %s370_s19 = sadd.s32 %s2728_s13, %s365_s9 }
  0xb2   : > { %s2729_s14 = sshll.u32 %s370_s19, 7 }
  0xb3   : > { %s372_s16 = scalar_lea.hbm %s5977_s2, %s2729_s14 }
  0xb4   : > { %s4044_s10 = scalar_lea.hbm %s372_s16, 128  ;;  %p4049_p3 = scmp.lt.u32.totalorder %s372_s16, %s5977_s2 }
  0xb5   : > { %p4045_p4 = scmp.ne.s32.totalorder %s372_s16, %s4044_s10  ;;  %p4050_p7 = scmp.lt.u32.totalorder %s4048_s5, %s4044_s10 }
  0xb6   : > { %p4052_p5 = scmp.lt.u32.totalorder %s4044_s10, %s372_s16 }
  0xb7   : > { %p4046_p6 = pnand %p4045_p4, %p6077_p9  ;;  %p4051_p10 = por %p4050_p7, %p4049_p3 }
  0xb9   : > { %p4047_p13 = pneg %p4046_p6  ;;  %p4053_p12 = por %p4052_p5, %p4051_p10 }
  0xbb   : > { %p4054_p0 = pnand %p4053_p12, %p4047_p13 }
  0xbd   : > { %4057 = shalt.err (!%p4054_p0)
}
  0xbe   : > { %s4058_s18 = scalar_lea.vmem %s4546_s29, 128  ;;  %s4215_s13 = smov [#allocation10]  }
  0xbf   : > { %p4059_p8 = scmp.ne.s32.totalorder %s4546_s29, %s4058_s18  ;;  %s4062_s4 = sshll.u32 %s4215_s13, 4  ;;  %s4063_s4 = int_to_ptr.vmem [resolvable:$false] %s4062_s4 }
  0xc0   : > { %s4064_s9 = scalar_lea.vmem %s4063_s4, 256  ;;  %p4065_p1 = scmp.lt.s32.totalorder %s4546_s29, %s4063_s4 }
  0xc1   : > { %p4060_p2 = pnand %p4059_p8, %p6077_p9  ;;  %p4066_p4 = scmp.lt.s32.totalorder %s4064_s9, %s4058_s18 }
  0xc3   : > { %p4061_p11 = pneg %p4060_p2  ;;  %p4067_p6 = por %p4066_p4, %p4065_p1 }
  0xc5   : > { %p4068_p3 = pnand %p4067_p6, %p4061_p11 }
  0xc7   : > { %4071 = shalt.err (!%p4068_p3)
}
  0xc8   : > { %3806 = dma.hbm_to_vmem [thread:$0]  (%p6077_p9), %s372_s16, 128, %s4546_s29, %s359_s0  }
  0xc9 PF: > { %p6078_p13 = scmp.ne.s32.totalorder %s6068_s12, 0 }
  0xca   : > { %s6079_s19 = sld [smem:[#allocation32_spill]] (!%p6078_p13)  ;;  %s6080_s14 = sld [smem:[#allocation37_spill]] (!%p6078_p13) }
  0xcb   : > { %383 = sbr.rel (%p6078_p13) target bundleno = 1584 (0x630), region = 48 }
  0xd0   : > { %s385_s15 = sand.u32 (!%p6078_p13), 1, %s6079_s19   ;;  %p6081_p7 = scmp.ne.s32.totalorder (!%p6078_p13), %s6080_s14, 0 }
  0xd1   : > { %s2731_s11 = sshll.u32 (!%p6078_p13), %s385_s15, 10  ;;  %s386_s10 = scalar_lea.sflag (!%p6078_p13), [#allocation9], %s385_s15 }
  0xd2   : > { %s4570_s3 = scalar_lea.vmem [#allocation8], %s2731_s11 }
  0xd3   : > { %4141 = dma.done.wait (%p6081_p7), %s386_s10, 16384  }
  0xd4   : > { %4143 = vsyncadd (%p6081_p7), %s386_s10, 4294950912  ;;  %s6082_s7 = sadd.s32 4294967295, %s4200_s28   ;;  %s6083_s22 = sld [smem:[#allocation31_spill]] }
  0xd5   : > { %s6084_s29 = sld [smem:[#allocation38_spill]]  ;;  %s394_s16 = sand.u32 1, %s6082_s7  }
  0xd6   : > { %s395_s5 = scalar_lea.sflag [#allocation11], %s394_s16 }
  0xda   : > { %s396_s0 = sand.u32 1, %s6083_s22  }
  0xdb   : > { %s4579_s12 = sshll.u32 %s396_s0, 3  ;;  %p6085_p9 = scmp.ne.s32.totalorder %s6084_s29, 0 }
  0xdc   : > { %s398_s23 = scalar_lea.vmem [#allocation10], %s4579_s12 }
  0xdd   : > { %4145 = dma.done.wait (%p6085_p9), %s395_s5, 128  }
  0xde   : > { %4147 = vsyncadd (%p6085_p9), %s395_s5, 4294967168  ;;  %s6086_s20 = sld [smem:[#allocation35_spill]] }
  0xe4   : > { %p6087_p10 = scmp.ne.s32.totalorder %s6086_s20, 0 }
  0xe6   : > { %4149 = dma.done.wait (%p6087_p10), [#allocation11], 16  }
  0xe7   : > { %4151 = vsyncadd (%p6087_p10), [#allocation11], 4294967280 }
  0xe8   : > { %4153 = dma.done.wait (%p6087_p10), [#allocation14], 32  }
  0xe9   : > { %4155 = vsyncadd (%p6087_p10), [#allocation14], 4294967264  ;;  %s6088_s18 = sld [smem:[#allocation34_spill]]  ;;  %s6089_s19 = sld [smem:[#allocation68_spill]] }
  0xea   : > { %s6090_s15 = sld [smem:[#allocation33_spill]] }
  0xef   : > { %p453_p5 = scmp.lt.s32.totalorder %s6088_s18, 1 }
  0xf0   : > { %p2737_p12 = scmp.ne.s32.totalorder %s6090_s15, 0 }
  0xf1   : > { %s6304_s18 = smov (!%p453_p5, %s6088_s18), 1  ;;  %vm463_vm0 = vcmask (!%p2737_p12), 7168   ;;  %v4216_v0 = vmov (!%p2737_p12), 0.0   ;;  %s4217_s11 = smov (!%p2737_p12), [#allocation4]  }
  0xf2   : > { %s2736_s13 = sshll.u32 %s6304_s18, 3  ;;  %460 = sbr.rel (%p2737_p12) target bundleno = 265 (0x109), region = 72  ;;  %461 = vst [vmem:[#allocation2] sm:$0xff] (!%p2737_p12), %v4216_v0  ;;  %462 = vst [vmem:[#allocation2 + $0x8] sm:$0xff] (!%p2737_p12), %v4216_v0 }
  0xf3   : > { %s4599_s14 = scalar_lea.vmem %s6089_s19, %s2736_s13  ;;  %464 = vst.msk [vmem:[#allocation3] sm:$0xff] (!%p2737_p12), %vm463_vm0, %v4216_v0  ;;  %s472_s10 = sshll.u32 (!%p2737_p12), %s4217_s11, 4  ;;  %s473_s10 = int_to_ptr.vmem [resolvable:$true] %s472_s10 }
  0xf4   : > { %s6091_s29 = sld [smem:[#allocation64_spill]] (!%p2737_p12) }
  0xfa   : > { %s4072_s16 = scalar_lea.hbm %s6091_s29, 4096 }
  0xfb   : > { %p4073_p0 = scmp.ne.s32.totalorder %s6091_s29, %s4072_s16  ;;  %p4076_p8 = scmp.lt.u32.totalorder %s4072_s16, %s6091_s29 }
  0xfd   : > { %p4078_p2 = pnand %p4076_p8, %p4073_p0 }
  0xff   : > { %4081 = shalt.err (!%p4078_p2)  }
 0x100   : > { %s4082_s13 = scalar_lea.vmem %s473_s10, 4096  ;;  %p4087_p1 = scmp.lt.s32.totalorder %s473_s10, %s473_s10 }
 0x101   : > { %p4083_p11 = scmp.ne.s32.totalorder %s473_s10, %s4082_s13  ;;  %p4088_p4 = scmp.lt.s32.totalorder %s4082_s13, %s4082_s13 }
 0x103   : > { %p4089_p6 = por %p4088_p4, %p4087_p1 }
 0x105   : > { %p4090_p3 = pnand %p4089_p6, %p4083_p11 }
 0x107   : > { %4093 = shalt.err (!%p4090_p3)  }
 0x108   : > { %475 = dma.hbm_to_vmem [thread:$0]  %s6091_s29, 4096, %s473_s10, [#allocation5] }
 0x109 PF: > { %s6092_s19 = sld [smem:[#allocation34_spill]]  ;;  %s6093_s11 = sld [smem:[#allocation33_spill]] }
 0x10f   : > { %s476_s15 = sld [smem:[#allocation7 + %s6092_s19]] }
 0x115   : > { %p2738_p13 = scmp.gt.s32.totalorder %s6093_s11, %s476_s15 }
 0x117   : > { %480 = sbr.rel (%p2738_p13) target bundleno = 723 (0x2d3), region = 80 }
 0x11e   : > { %v482_v1 = vlaneseq  ;;  %v4620_v3 = vld [vmem:[%s398_s23] sm:$0xff]  ;;  %v4661_v32 = vld [vmem:[%s4570_s3 + $0x10] sm:$0xff]   ;;  %v4671_v36 = vld [vmem:[%s4570_s3 + $0x18] sm:$0xff]   ;;  %vm1585_vm1 = vcmask 1041409   ;;  %vm1587_vm2 = vcmask 1042434   ;;  %vm1589_vm3 = vcmask 1043459  }
 0x11f   : > { %v2879_v22 = vld [vmem:[%s4570_s3] sm:$0xff]   ;;  %v4651_v24 = vld [vmem:[%s4570_s3 + $0x8] sm:$0xff]   ;;  %v4664_v33 = vld [vmem:[%s4570_s3 + $0x210] sm:$0xff]   ;;  %v2889_v46 = vunpack.c.h.bf16 %v4661_v32  ;;  %v2888_v48 = vunpack.c.l.bf16 %v4661_v32  ;;  %v2892_v56 = vunpack.c.l.bf16 %v4671_v36  ;;  %vm1591_vm4 = vcmask 1044484  }
 0x120   : > { %v4616_v2 = vshrl.u32 %v482_v1, 7  ;;  %v3453_v23 = vld [vmem:[%s4570_s3 + $0x200] sm:$0xff]   ;;  %v4654_v25 = vld [vmem:[%s4570_s3 + $0x208] sm:$0xff]   ;;  %v2881_v26 = vunpack.c.h.bf16 %v2879_v22  ;;  %v2880_v30 = vunpack.c.l.bf16 %v2879_v22  ;;  %v2884_v34 = vunpack.c.l.bf16 %v4651_v24  ;;  %v4676_v41 = vld [vmem:[%s4570_s3 + $0x218] sm:$0xff]  }
 0x121   : > { %v3137_v27 = vunpack.c.h.bf16 %v3453_v23  ;;  %v3136_v31 = vunpack.c.l.bf16 %v3453_v23  ;;  %v3140_v35 = vunpack.c.l.bf16 %v4654_v25  ;;  %v2885_v37 = vunpack.c.h.bf16 %v4651_v24  ;;  %v4679_v42 = vld [vmem:[%s4570_s3 + $0x20] sm:$0xff]   ;;  %v4695_v54 = vld [vmem:[%s4570_s3 + $0x28] sm:$0xff]   ;;  %v4707_v60 = vld [vmem:[%s4570_s3 + $0x30] sm:$0xff]  }
 0x122   : > { %v484_v4 = vsub.s32 0, %v4616_v2  ;;  %v551_v6 = vsub.s32 1, %v4616_v2  ;;  %v618_v8 = vsub.s32 2, %v4616_v2  ;;  %v685_v10 = vsub.s32 3, %v4616_v2  ;;  %v4682_v43 = vld [vmem:[%s4570_s3 + $0x220] sm:$0xff]   ;;  %v4698_v55 = vld [vmem:[%s4570_s3 + $0x228] sm:$0xff]  }
 0x123   : > { %v752_v16 = vsub.s32 4, %v4616_v2  ;;  %v3141_v38 = vunpack.c.h.bf16 %v4654_v25  ;;  %v3145_v47 = vunpack.c.h.bf16 %v4664_v33  ;;  %v3144_v49 = vunpack.c.l.bf16 %v4664_v33  ;;  %v4710_v61 = vld [vmem:[%s4570_s3 + $0x230] sm:$0xff]   ;;  %v3397_v22 = vld [vmem:[%s4570_s3 + $0x40] sm:$0xff]   ;;  %v4760_v25 = vld [vmem:[%s4570_s3 + $0x58] sm:$0xff]  }
 0x124   : > { %v485_v5 = vrot.slane %v4620_v3, %v484_v4  ;;  %v552_v7 = vrot.slane %v4620_v3, %v551_v6  ;;  %v619_v9 = vrot.slane %v4620_v3, %v618_v8  ;;  %v686_v11 = vrot.slane %v4620_v3, %v685_v10  ;;  %v4719_v6 = vld [vmem:[%s4570_s3 + $0x38] sm:$0xff]   ;;  %v3461_v23 = vld [vmem:[%s4570_s3 + $0x240] sm:$0xff]   ;;  %v4749_v24 = vld [vmem:[%s4570_s3 + $0x50] sm:$0xff]  }
 0x125   : > { %v4640_v19 = vrot.slane %v4620_v3, %v752_v16  ;;  %v3148_v57 = vunpack.c.l.bf16 %v4676_v41  ;;  %v3169_v16 = vunpack.c.h.bf16 %v3461_v23  ;;  %v4794_v58 = vld [vmem:[%s4570_s3 + $0x260] sm:$0xff]   ;;  %v886_v53 = vsub.s32 6, %v4616_v2 }
 0x126   : > { %495 = vbcast.lane.b32.xlu1 %v485_v5, 272  ;;  %487 = vbcast.lane.b32.xlu0 %v485_v5, 256  ;;  %v3185_v33 = vunpack.c.h.bf16 %v4794_v58  ;;  %vm1593_vm5 = vcmask 1045509   ;;  %vm1595_vm6 = vcmask 1046534   ;;  %vm1597_vm7 = vcmask 1047559  }
 0x127   : > { %vm1022_vm8 = vcmask 7168  }
 0x12a   : > { %499 = vbcast.lane.b32.xlu1 %v485_v5, 280  ;;  %491 = vbcast.lane.b32.xlu0 %v485_v5, 264 }
 0x12e   : > { %507 = vbcast.lane.b32.xlu1 %v485_v5, 296  ;;  %503 = vbcast.lane.b32.xlu0 %v485_v5, 288 }
 0x132   : > { %515 = vbcast.lane.b32.xlu1 %v485_v5, 312  ;;  %511 = vbcast.lane.b32.xlu0 %v485_v5, 304 }
 0x136   : > { %523 = vbcast.lane.b32.xlu1 %v485_v5, 328  ;;  %519 = vbcast.lane.b32.xlu0 %v485_v5, 320 }
 0x13a   : > { %531 = vbcast.lane.b32.xlu1 %v485_v5, 344  ;;  %527 = vbcast.lane.b32.xlu0 %v485_v5, 336 }
 0x13e   : > { %539 = vbcast.lane.b32.xlu1 %v485_v5, 360  ;;  %535 = vbcast.lane.b32.xlu0 %v485_v5, 352 }
 0x142   : > { %547 = vbcast.lane.b32.xlu1 %v485_v5, 376  ;;  %543 = vbcast.lane.b32.xlu0 %v485_v5, 368 }
 0x146   : > { %558 = vbcast.lane.b32.xlu1 %v552_v7, 264  ;;  %554 = vbcast.lane.b32.xlu0 %v552_v7, 256 }
 0x14a   : > { %566 = vbcast.lane.b32.xlu1 %v552_v7, 280  ;;  %562 = vbcast.lane.b32.xlu0 %v552_v7, 272 }
 0x14e   : > { %574 = vbcast.lane.b32.xlu1 %v552_v7, 296  ;;  %570 = vbcast.lane.b32.xlu0 %v552_v7, 288 }
 0x152   : > { %582 = vbcast.lane.b32.xlu1 %v552_v7, 312  ;;  %578 = vbcast.lane.b32.xlu0 %v552_v7, 304 }
 0x156   : > { %590 = vbcast.lane.b32.xlu1 %v552_v7, 328  ;;  %586 = vbcast.lane.b32.xlu0 %v552_v7, 320 }
 0x15a   : > { %598 = vbcast.lane.b32.xlu1 %v552_v7, 344  ;;  %594 = vbcast.lane.b32.xlu0 %v552_v7, 336 }
 0x15e   : > { %606 = vbcast.lane.b32.xlu1 %v552_v7, 360  ;;  %602 = vbcast.lane.b32.xlu0 %v552_v7, 352 }
 0x162   : > { %614 = vbcast.lane.b32.xlu1 %v552_v7, 376  ;;  %610 = vbcast.lane.b32.xlu0 %v552_v7, 368  ;;  %v4722_v7 = vld [vmem:[%s4570_s3 + $0x238] sm:$0xff]  }
 0x166   : > { %625 = vbcast.lane.b32.xlu1 %v619_v9, 264  ;;  %621 = vbcast.lane.b32.xlu0 %v619_v9, 256 }
 0x16a   : > { %633 = vbcast.lane.b32.xlu1 %v619_v9, 280  ;;  %629 = vbcast.lane.b32.xlu0 %v619_v9, 272 }
 0x16e   : > { %641 = vbcast.lane.b32.xlu1 %v619_v9, 296  ;;  %637 = vbcast.lane.b32.xlu0 %v619_v9, 288 }
 0x172   : > { %649 = vbcast.lane.b32.xlu1 %v619_v9, 312  ;;  %645 = vbcast.lane.b32.xlu0 %v619_v9, 304 }
 0x176   : > { %657 = vbcast.lane.b32.xlu1 %v619_v9, 328  ;;  %653 = vbcast.lane.b32.xlu0 %v619_v9, 320 }
 0x17a   : > { %665 = vbcast.lane.b32.xlu1 %v619_v9, 344  ;;  %661 = vbcast.lane.b32.xlu0 %v619_v9, 336 }
 0x17e   : > { %673 = vbcast.lane.b32.xlu1 %v619_v9, 360  ;;  %669 = vbcast.lane.b32.xlu0 %v619_v9, 352 }
 0x182   : > { %681 = vbcast.lane.b32.xlu1 %v619_v9, 376  ;;  %677 = vbcast.lane.b32.xlu0 %v619_v9, 368  ;;  %v2921_v9 = vunpack.c.h.bf16 %v4749_v24 }
 0x186   : > { %692 = vbcast.lane.b32.xlu1 %v686_v11, 264  ;;  %688 = vbcast.lane.b32.xlu0 %v686_v11, 256 }
 0x18a   : > { %700 = vbcast.lane.b32.xlu1 %v686_v11, 280  ;;  %696 = vbcast.lane.b32.xlu0 %v686_v11, 272 }
 0x18e   : > { %708 = vbcast.lane.b32.xlu1 %v686_v11, 296  ;;  %704 = vbcast.lane.b32.xlu0 %v686_v11, 288 }
 0x192   : > { %716 = vbcast.lane.b32.xlu1 %v686_v11, 312  ;;  %712 = vbcast.lane.b32.xlu0 %v686_v11, 304 }
 0x196   : > { %724 = vbcast.lane.b32.xlu1 %v686_v11, 328  ;;  %720 = vbcast.lane.b32.xlu0 %v686_v11, 320 }
 0x198   : > { %v4630_v12 = vpop.permute.xlu1 %495  ;;  %v488_v13 = vpop.permute.xlu0 %487 }
 0x199   : > { %v1281_v50 = vmul.f32 %v2880_v30, %v488_v13  ;;  %v1861_v51 = vmul.f32 %v3136_v31, %v488_v13  ;;  %v1283_v62 = vmul.f32 %v2884_v34, %v4630_v12  ;;  %v1863_v63 = vmul.f32 %v3140_v35, %v4630_v12  ;;  %v3398_v30 = vld [vmem:[%s4570_s3 + $0x48] sm:$0xff]  }
 0x19a   : > { %732 = vbcast.lane.b32.xlu1 %v686_v11, 344  ;;  %728 = vbcast.lane.b32.xlu0 %v686_v11, 336  ;;  %v3462_v31 = vld [vmem:[%s4570_s3 + $0x248] sm:$0xff]  }
 0x19c   : > { %v4632_v14 = vpop.permute.xlu1 %499  ;;  %v492_v15 = vpop.permute.xlu0 %491 }
 0x19d   : > { %v1282_v39 = vmul.f32 %v2881_v26, %v492_v15  ;;  %v1862_v40 = vmul.f32 %v3137_v27, %v492_v15  ;;  %v1284_v34 = vmul.f32 %v2885_v37, %v4632_v14  ;;  %v1864_v35 = vmul.f32 %v3141_v38, %v4632_v14  ;;  %v4754_v15 = vld [vmem:[%s4570_s3 + $0x250] sm:$0xff]  }
 0x19e   : > { %740 = vbcast.lane.b32.xlu1 %v686_v11, 360  ;;  %736 = vbcast.lane.b32.xlu0 %v686_v11, 352  ;;  %v2913_v27 = vunpack.c.h.bf16 %v3397_v22  ;;  %v2912_v14 = vunpack.c.l.bf16 %v3397_v22  ;;  %v3168_v37 = vunpack.c.l.bf16 %v3461_v23  ;;  %v2916_v38 = vunpack.c.l.bf16 %v3398_v30  ;;  %v4766_v22 = vld [vmem:[%s4570_s3 + $0x258] sm:$0xff]  }
 0x19f   : > { %v1409_v0 = vadd.f32 %v1282_v39, %v1281_v50  ;;  %v1989_v1 = vadd.f32 %v1862_v40, %v1861_v51  ;;  %v819_v26 = vsub.s32 5, %v4616_v2  ;;  %v3176_v8 = vunpack.c.l.bf16 %v4754_v15 }
 0x1a0   : > { %v4635_v17 = vpop.permute.xlu1 %507  ;;  %v4637_v18 = vpop.permute.xlu0 %503  ;;  %v3177_v59 = vunpack.c.h.bf16 %v4754_v15  ;;  %v3180_v15 = vunpack.c.l.bf16 %v4766_v22 }
 0x1a1   : > { %v1410_v39 = vadd.f32 %v1409_v0, %v1283_v62  ;;  %v1990_v40 = vadd.f32 %v1989_v1, %v1863_v63  ;;  %v3172_v62 = vunpack.c.l.bf16 %v3462_v31  ;;  %v2917_v63 = vunpack.c.h.bf16 %v3398_v30 }
 0x1a2   : > { %748 = vbcast.lane.b32.xlu1 %v686_v11, 376  ;;  %744 = vbcast.lane.b32.xlu0 %v686_v11, 368  ;;  %v3173_v0 = vunpack.c.h.bf16 %v3462_v31  ;;  %v2920_v1 = vunpack.c.l.bf16 %v4749_v24  ;;  %v1285_v23 = vmul.f32 %v2888_v48, %v4637_v18 }
 0x1a3   : > { %v1411_v13 = vadd.f32 %v1410_v39, %v1284_v34  ;;  %v1991_v12 = vadd.f32 %v1990_v40, %v1864_v35  ;;  %v1865_v34 = vmul.f32 %v3144_v49, %v4637_v18  ;;  %v2924_v39 = vunpack.c.l.bf16 %v4760_v25 }
 0x1a4   : > { %v4642_v20 = vpop.permute.xlu1 %515  ;;  %v4644_v21 = vpop.permute.xlu0 %511  ;;  %v1286_v18 = vmul.f32 %v2889_v46, %v4635_v17  ;;  %v1866_v49 = vmul.f32 %v3145_v47, %v4635_v17 }
 0x1a6   : > { %759 = vbcast.lane.b32.xlu1 %v4640_v19, 264  ;;  %755 = vbcast.lane.b32.xlu0 %v4640_v19, 256 }
 0x1a8   : > { %v4656_v28 = vpop.permute.xlu1 %523  ;;  %v4658_v29 = vpop.permute.xlu0 %519 }
 0x1aa   : > { %767 = vbcast.lane.b32.xlu1 %v4640_v19, 280  ;;  %763 = vbcast.lane.b32.xlu0 %v4640_v19, 272 }
 0x1ac   : > { %v4684_v44 = vpop.permute.xlu1 %531  ;;  %v4686_v45 = vpop.permute.xlu0 %527 }
 0x1ae   : > { %775 = vbcast.lane.b32.xlu1 %v4640_v19, 296  ;;  %771 = vbcast.lane.b32.xlu0 %v4640_v19, 288 }
 0x1b0   : > { %v4714_v4 = vpop.permute.xlu1 %539  ;;  %v4716_v5 = vpop.permute.xlu0 %535 }
 0x1b2   : > { %783 = vbcast.lane.b32.xlu1 %v4640_v19, 312  ;;  %779 = vbcast.lane.b32.xlu0 %v4640_v19, 304 }
 0x1b4   : > { %v4744_v50 = vpop.permute.xlu1 %547  ;;  %v4746_v51 = vpop.permute.xlu0 %543 }
 0x1b6   : > { %791 = vbcast.lane.b32.xlu1 %v4640_v19, 328  ;;  %787 = vbcast.lane.b32.xlu0 %v4640_v19, 320 }
 0x1b8   : > { %v559_v11 = vpop.permute.xlu1 %558  ;;  %v555_v10 = vpop.permute.xlu0 %554 }
 0x1b9   : > { %v1298_v30 = vmul.f32 %v2913_v27, %v559_v11  ;;  %v1878_v31 = vmul.f32 %v3169_v16, %v559_v11  ;;  %v1297_v35 = vmul.f32 %v2912_v14, %v555_v10  ;;  %v1877_v24 = vmul.f32 %v3168_v37, %v555_v10  ;;  %v4791_v37 = vld [vmem:[%s4570_s3 + $0x60] sm:$0xff]  }
 0x1ba   : > { %799 = vbcast.lane.b32.xlu1 %v4640_v19, 344  ;;  %795 = vbcast.lane.b32.xlu0 %v4640_v19, 336  ;;  %v4782_v16 = vrot.slane %v4620_v3, %v819_v26  ;;  %v1412_v10 = vadd.f32 %v1411_v13, %v1285_v23  ;;  %v1992_v27 = vadd.f32 %v1991_v12, %v1865_v34  ;;  %v2929_v17 = vunpack.c.h.bf16 %v4791_v37 }
 0x1bb   : > { %v1430_v11 = vadd.f32 %v1298_v30, %v1297_v35  ;;  %v2010_v48 = vadd.f32 %v1878_v31, %v1877_v24  ;;  %v2928_v47 = vunpack.c.l.bf16 %v4791_v37  ;;  %v3184_v12 = vunpack.c.l.bf16 %v4794_v58 }
 0x1bc   : > { %v567_v40 = vpop.permute.xlu1 %566  ;;  %v563_v14 = vpop.permute.xlu0 %562  ;;  %v953_v13 = vsub.s32 7, %v4616_v2  ;;  %v1287_v31 = vmul.f32 %v2892_v56, %v4644_v21  ;;  %v1867_v34 = vmul.f32 %v3148_v57, %v4644_v21 }
 0x1bd   : > { %v1300_v26 = vmul.f32 %v2917_v63, %v567_v40  ;;  %v1880_v52 = vmul.f32 %v3173_v0, %v567_v40  ;;  %v1299_v32 = vmul.f32 %v2916_v38, %v563_v14  ;;  %v1879_v46 = vmul.f32 %v3172_v62, %v563_v14 }
 0x1be   : > { %807 = vbcast.lane.b32.xlu1 %v4640_v19, 360  ;;  %803 = vbcast.lane.b32.xlu0 %v4640_v19, 352  ;;  %v1413_v63 = vadd.f32 %v1412_v10, %v1286_v18  ;;  %v1993_v0 = vadd.f32 %v1992_v27, %v1866_v49  ;;  %v6094_v49 = vunpack.c.h.bf16 %v4671_v36  ;;  %v6095_v10 = vunpack.c.h.bf16 %v4676_v41 }
 0x1bf   : > { %v1431_v38 = vadd.f32 %v1430_v11, %v1299_v32  ;;  %v2011_v62 = vadd.f32 %v2010_v48, %v1879_v46  ;;  %v4812_v11 = vld [vmem:[%s4570_s3 + $0x68] sm:$0xff]   ;;  %v4832_v41 = vrot.slane %v4620_v3, %v953_v13 }
 0x1c0   : > { %v575_v23 = vpop.permute.xlu1 %574  ;;  %v571_v30 = vpop.permute.xlu0 %570  ;;  %v4815_v48 = vld [vmem:[%s4570_s3 + $0x268] sm:$0xff]   ;;  %v1288_v56 = vmul.f32 %v6094_v49, %v4642_v20  ;;  %v1868_v21 = vmul.f32 %v6095_v10, %v4642_v20  ;;  %v2933_v57 = vunpack.c.h.bf16 %v4812_v11  ;;  %v2932_v20 = vunpack.c.l.bf16 %v4812_v11 }
 0x1c1   : > { %v1302_v35 = vmul.f32 %v2921_v9, %v575_v23  ;;  %v1882_v24 = vmul.f32 %v3177_v59, %v575_v23  ;;  %v1432_v40 = vadd.f32 %v1431_v38, %v1300_v26  ;;  %v2012_v2 = vadd.f32 %v2011_v62, %v1880_v52  ;;  %v4839_v38 = vld [vmem:[%s4570_s3 + $0x270] sm:$0xff]  }
 0x1c2   : > { %v1301_v14 = vmul.f32 %v2920_v1, %v571_v30  ;;  %v1881_v18 = vmul.f32 %v3176_v8, %v571_v30  ;;  %815 = vbcast.lane.b32.xlu1 %v4640_v19, 376  ;;  %811 = vbcast.lane.b32.xlu0 %v4640_v19, 368  ;;  %v4825_v52 = vrot.slane %v4620_v3, %v886_v53  ;;  %v3189_v26 = vunpack.c.h.bf16 %v4815_v48 }
 0x1c3   : > { %v1414_v59 = vadd.f32 %v1413_v63, %v1287_v31  ;;  %v1994_v8 = vadd.f32 %v1993_v0, %v1867_v34  ;;  %v3188_v19 = vunpack.c.l.bf16 %v4815_v48  ;;  %v4836_v0 = vld [vmem:[%s4570_s3 + $0x70] sm:$0xff]   ;;  %v6096_v62 = vunpack.c.h.bf16 %v4760_v25 }
 0x1c4   : > { %v1433_v9 = vadd.f32 %v1432_v40, %v1301_v14  ;;  %v2013_v1 = vadd.f32 %v2012_v2, %v1881_v18  ;;  %v583_v27 = vpop.permute.xlu1 %582  ;;  %v579_v36 = vpop.permute.xlu0 %578  ;;  %v6097_v30 = vunpack.c.h.bf16 %v4766_v22  ;;  %v2936_v22 = vunpack.c.l.bf16 %v4836_v0 }
 0x1c5   : > { %v1303_v46 = vmul.f32 %v2924_v39, %v579_v36  ;;  %v1883_v63 = vmul.f32 %v3180_v15, %v579_v36  ;;  %v1304_v23 = vmul.f32 %v6096_v62, %v583_v27  ;;  %v4849_v39 = vld [vmem:[%s4570_s3 + $0x78] sm:$0xff]   ;;  %v1415_v34 = vadd.f32 %v1414_v59, %v1288_v56 }
 0x1c6   : > { %v1434_v53 = vadd.f32 %v1433_v9, %v1302_v35  ;;  %v2014_v32 = vadd.f32 %v2013_v1, %v1882_v24  ;;  %826 = vbcast.lane.b32.xlu1 %v4782_v16, 264  ;;  %v1884_v31 = vmul.f32 %v6097_v30, %v583_v27  ;;  %822 = vbcast.lane.b32.xlu0 %v4782_v16, 256  ;;  %v4852_v15 = vld [vmem:[%s4570_s3 + $0x278] sm:$0xff]   ;;  %v3192_v14 = vunpack.c.l.bf16 %v4839_v38  ;;  %v4868_v1 = vld [vmem:[%s4570_s3 + $0x80] sm:$0xff]  }
 0x1c7   : > { %v1995_v35 = vadd.f32 %v1994_v8, %v1868_v21  ;;  %v6098_v10 = vunpack.c.l.bf16 %v4679_v42  ;;  %v6099_v21 = vunpack.c.l.bf16 %v4682_v43  ;;  %v4871_v27 = vld [vmem:[%s4570_s3 + $0x280] sm:$0xff]   ;;  %v6100_v62 = vunpack.c.h.bf16 %v4679_v42  ;;  %v4895_v42 = vld [vmem:[%s4570_s3 + $0x90] sm:$0xff]  }
 0x1c8   : > { %v1435_v24 = vadd.f32 %v1434_v53, %v1303_v46  ;;  %v2015_v25 = vadd.f32 %v2014_v32, %v1883_v63  ;;  %v591_v40 = vpop.permute.xlu1 %590  ;;  %v587_v2 = vpop.permute.xlu0 %586  ;;  %v4879_v46 = vld [vmem:[%s4570_s3 + $0x88] sm:$0xff]   ;;  %v3200_v49 = vunpack.c.l.bf16 %v4871_v27  ;;  %v2953_v37 = vunpack.c.h.bf16 %v4895_v42 }
 0x1c9   : > { %v1289_v56 = vmul.f32 %v6098_v10, %v4658_v29  ;;  %v1869_v59 = vmul.f32 %v6099_v21, %v4658_v29  ;;  %v1305_v32 = vmul.f32 %v2928_v47, %v587_v2  ;;  %v1885_v29 = vmul.f32 %v3184_v12, %v587_v2  ;;  %v4882_v63 = vld [vmem:[%s4570_s3 + $0x288] sm:$0xff]  }
 0x1ca   : > { %889 = vbcast.lane.b32.xlu1 %v4825_v52, 256  ;;  %v1436_v36 = vadd.f32 %v1435_v24, %v1304_v23  ;;  %v2016_v53 = vadd.f32 %v2015_v25, %v1884_v31  ;;  %830 = vbcast.lane.b32.xlu0 %v4782_v16, 272  ;;  %v1290_v30 = vmul.f32 %v6100_v62, %v4656_v28  ;;  %v6101_v23 = vunpack.c.h.bf16 %v4682_v43  ;;  %v4898_v62 = vld [vmem:[%s4570_s3 + $0x290] sm:$0xff]  }
 0x1cb   : > { %v1416_v47 = vadd.f32 %v1415_v34, %v1289_v56  ;;  %v1996_v24 = vadd.f32 %v1995_v35, %v1869_v59  ;;  %v2945_v2 = vunpack.c.h.bf16 %v4868_v1  ;;  %v3201_v10 = vunpack.c.h.bf16 %v4871_v27  ;;  %v4906_v56 = vld [vmem:[%s4570_s3 + $0x98] sm:$0xff]  }
 0x1cc   : > { %v1870_v31 = vmul.f32 %v6101_v23, %v4656_v28  ;;  %v599_v25 = vpop.permute.xlu1 %598  ;;  %v595_v12 = vpop.permute.xlu0 %594  ;;  %v2944_v21 = vunpack.c.l.bf16 %v4868_v1  ;;  %v4909_v59 = vld [vmem:[%s4570_s3 + $0x298] sm:$0xff]   ;;  %v1306_v23 = vmul.f32 %v2929_v17, %v591_v40  ;;  %v1886_v18 = vmul.f32 %v3185_v33, %v591_v40  ;;  %v4975_v28 = vld [vmem:[%s4570_s3 + $0xb0] sm:$0xff]  }
 0x1cd   : > { %v1437_v9 = vadd.f32 %v1436_v36, %v1305_v32  ;;  %v2017_v8 = vadd.f32 %v2016_v53, %v1885_v29  ;;  %v1417_v13 = vadd.f32 %v1416_v47, %v1290_v30  ;;  %v3209_v58 = vunpack.c.h.bf16 %v4898_v62  ;;  %v4937_v47 = vld [vmem:[%s4570_s3 + $0x2a0] sm:$0xff]  }
 0x1ce   : > { %956 = vbcast.lane.b32.xlu1 %v4832_v41, 256  ;;  %893 = vbcast.lane.b32.xlu0 %v4825_v52, 264  ;;  %v1997_v3 = vadd.f32 %v1996_v24, %v1870_v31  ;;  %v6102_v40 = vunpack.c.l.bf16 %v4695_v54  ;;  %v6103_v53 = vunpack.c.l.bf16 %v4698_v55  ;;  %v4934_v31 = vld [vmem:[%s4570_s3 + $0xa0] sm:$0xff]   ;;  %v1307_v17 = vmul.f32 %v2932_v20, %v595_v12 }
 0x1cf   : > { %v1438_v24 = vadd.f32 %v1437_v9, %v1306_v23  ;;  %v2018_v33 = vadd.f32 %v2017_v8, %v1886_v18  ;;  %v6104_v30 = vunpack.c.h.bf16 %v4695_v54  ;;  %v6105_v9 = vunpack.c.h.bf16 %v4698_v55 }
 0x1d0   : > { %v4916_v34 = vpop.permute.xlu1 %606  ;;  %v603_v35 = vpop.permute.xlu0 %602  ;;  %v1291_v36 = vmul.f32 %v6102_v40, %v4686_v45  ;;  %v1871_v32 = vmul.f32 %v6103_v53, %v4686_v45  ;;  %v1887_v40 = vmul.f32 %v3188_v19, %v595_v12  ;;  %v4945_v45 = vld [vmem:[%s4570_s3 + $0xa8] sm:$0xff]   ;;  %v2960_v43 = vunpack.c.l.bf16 %v4934_v31  ;;  %v4978_v12 = vld [vmem:[%s4570_s3 + $0x2b0] sm:$0xff]  }
 0x1d1   : > { %v4948_v53 = vld [vmem:[%s4570_s3 + $0x2a8] sm:$0xff]   ;;  %v1292_v29 = vmul.f32 %v6104_v30, %v4684_v44  ;;  %v1872_v18 = vmul.f32 %v6105_v9, %v4684_v44  ;;  %v1439_v30 = vadd.f32 %v1438_v24, %v1307_v17  ;;  %v3225_v11 = vunpack.c.h.bf16 %v4978_v12 }
 0x1d2   : > { %897 = vbcast.lane.b32.xlu1 %v4825_v52, 272  ;;  %960 = vbcast.lane.b32.xlu0 %v4832_v41, 264  ;;  %v1418_v8 = vadd.f32 %v1417_v13, %v1291_v36  ;;  %v1998_v23 = vadd.f32 %v1997_v3, %v1871_v32  ;;  %v1308_v36 = vmul.f32 %v2933_v57, %v599_v25  ;;  %v2969_v13 = vunpack.c.h.bf16 %v4975_v28 }
 0x1d3   : > { %v1888_v32 = vmul.f32 %v3189_v26, %v599_v25  ;;  %v2019_v9 = vadd.f32 %v2018_v33, %v1887_v40  ;;  %v6106_v17 = vunpack.c.l.bf16 %v4707_v60  ;;  %v6108_v40 = vunpack.c.h.bf16 %v4707_v60 }
 0x1d4   : > { %v4956_v20 = vpop.permute.xlu1 %614  ;;  %v4958_v19 = vpop.permute.xlu0 %610  ;;  %v1419_v44 = vadd.f32 %v1418_v8, %v1292_v29  ;;  %v1999_v55 = vadd.f32 %v1998_v23, %v1872_v18  ;;  %v6107_v29 = vunpack.c.l.bf16 %v4710_v61  ;;  %v1440_v1 = vadd.f32 %v1439_v30, %v1308_v36 }
 0x1d5   : > { %v1293_v33 = vmul.f32 %v6106_v17, %v4716_v5  ;;  %v1294_v18 = vmul.f32 %v6108_v40, %v4714_v4  ;;  %v6111_v36 = vunpack.c.h.bf16 %v4882_v63  ;;  %v6112_v30 = vunpack.c.l.bf16 %v4879_v46 }
 0x1d6   : > { %964 = vbcast.lane.b32.xlu1 %v4832_v41, 272  ;;  %834 = vbcast.lane.b32.xlu0 %v4782_v16, 280  ;;  %v1873_v24 = vmul.f32 %v6107_v29, %v4716_v5  ;;  %v6109_v5 = vunpack.c.h.bf16 %v4710_v61  ;;  %v6114_v61 = vunpack.c.h.bf16 %v4836_v0  ;;  %v5030_v0 = vld [vmem:[%s4570_s3 + $0x2b8] sm:$0xff]   ;;  %v6117_v29 = vunpack.c.l.bf16 %v4722_v7 }
 0x1d8   : > { %v626_v54 = vpop.permute.xlu1 %625  ;;  %v622_v3 = vpop.permute.xlu0 %621  ;;  %v1874_v8 = vmul.f32 %v6109_v5, %v4714_v4  ;;  %v2000_v23 = vadd.f32 %v1999_v55, %v1873_v24  ;;  %v1310_v4 = vmul.f32 %v6114_v61, %v4916_v34  ;;  %v1875_v24 = vmul.f32 %v6117_v29, %v4746_v51 }
 0x1d9   : > { %v1314_v48 = vmul.f32 %v2945_v2, %v626_v54  ;;  %v1894_v57 = vmul.f32 %v3201_v10, %v626_v54  ;;  %v1313_v26 = vmul.f32 %v2944_v21, %v622_v3  ;;  %v1893_v25 = vmul.f32 %v3200_v49, %v622_v3 }
 0x1da   : > { %v1309_v2 = vmul.f32 %v2936_v22, %v603_v35  ;;  %v1889_v10 = vmul.f32 %v3192_v14, %v603_v35  ;;  %838 = vbcast.lane.b32.xlu1 %v4782_v16, 288  ;;  %v2020_v21 = vadd.f32 %v2019_v9, %v1888_v32  ;;  %901 = vbcast.lane.b32.xlu0 %v4825_v52, 280  ;;  %v6110_v35 = vunpack.c.h.bf16 %v4879_v46 }
 0x1db   : > { %v1451_v27 = vadd.f32 %v1314_v48, %v1313_v26  ;;  %v2031_v49 = vadd.f32 %v1894_v57, %v1893_v25  ;;  %v1420_v22 = vadd.f32 %v1419_v44, %v1293_v33  ;;  %v6113_v9 = vunpack.c.l.bf16 %v4882_v63  ;;  %v5027_v63 = vld [vmem:[%s4570_s3 + $0xb8] sm:$0xff]  }
 0x1dc   : > { %v634_v54 = vpop.permute.xlu1 %633  ;;  %v630_v14 = vpop.permute.xlu0 %629  ;;  %v6115_v44 = vunpack.c.h.bf16 %v4839_v38  ;;  %v2968_v57 = vunpack.c.l.bf16 %v4975_v28  ;;  %v3224_v26 = vunpack.c.l.bf16 %v4978_v12  ;;  %v1441_v25 = vadd.f32 %v1440_v1, %v1309_v2 }
 0x1dd   : > { %v1316_v3 = vmul.f32 %v6110_v35, %v634_v54  ;;  %v1896_v32 = vmul.f32 %v6111_v36, %v634_v54  ;;  %v1315_v60 = vmul.f32 %v6112_v30, %v630_v14  ;;  %v1895_v48 = vmul.f32 %v6113_v9, %v630_v14 }
 0x1de   : > { %v1890_v55 = vmul.f32 %v6115_v44, %v4916_v34  ;;  %905 = vbcast.lane.b32.xlu1 %v4825_v52, 288  ;;  %v2021_v46 = vadd.f32 %v2020_v21, %v1889_v10  ;;  %968 = vbcast.lane.b32.xlu0 %v4832_v41, 280  ;;  %v6116_v38 = vunpack.c.l.bf16 %v4719_v6  ;;  %v2973_v2 = vunpack.c.h.bf16 %v5027_v63 }
 0x1df   : > { %v1452_v17 = vadd.f32 %v1451_v27, %v1315_v60  ;;  %v2032_v33 = vadd.f32 %v2031_v49, %v1895_v48  ;;  %v3229_v10 = vunpack.c.h.bf16 %v5030_v0  ;;  %v1421_v1 = vadd.f32 %v1420_v22, %v1294_v18 }
 0x1e0   : > { %v1295_v34 = vmul.f32 %v6116_v38, %v4746_v51  ;;  %v642_v40 = vpop.permute.xlu1 %641  ;;  %v638_v5 = vpop.permute.xlu0 %637  ;;  %v2001_v21 = vadd.f32 %v2000_v23, %v1874_v8  ;;  %v6118_v35 = vunpack.c.l.bf16 %v4895_v42  ;;  %v6119_v51 = vunpack.c.l.bf16 %v4898_v62 }
 0x1e1   : > { %v1453_v27 = vadd.f32 %v1452_v17, %v1316_v3  ;;  %v2033_v49 = vadd.f32 %v2032_v33, %v1896_v32  ;;  %v1318_v54 = vmul.f32 %v2953_v37, %v642_v40  ;;  %v1898_v14 = vmul.f32 %v3209_v58, %v642_v40 }
 0x1e2   : > { %v1317_v36 = vmul.f32 %v6118_v35, %v638_v5  ;;  %v1897_v30 = vmul.f32 %v6119_v51, %v638_v5  ;;  %972 = vbcast.lane.b32.xlu1 %v4832_v41, 288  ;;  %v1442_v60 = vadd.f32 %v1441_v25, %v1310_v4  ;;  %v2022_v9 = vadd.f32 %v2021_v46, %v1890_v55 }
 0x1e3   : > { %v6120_v18 = vunpack.c.l.bf16 %v4849_v39  ;;  %v6121_v37 = vunpack.c.l.bf16 %v4852_v15  ;;  %842 = vbcast.lane.b32.xlu0 %v4782_v16, 296  ;;  %v6122_v42 = vunpack.c.h.bf16 %v4719_v6  ;;  %v6123_v62 = vunpack.c.h.bf16 %v4722_v7 }
 0x1e4   : > { %v1454_v3 = vadd.f32 %v1453_v27, %v1317_v36  ;;  %v2034_v32 = vadd.f32 %v2033_v49, %v1897_v30  ;;  %v650_v48 = vpop.permute.xlu1 %649  ;;  %v646_v61 = vpop.permute.xlu0 %645  ;;  %v1422_v4 = vadd.f32 %v1421_v1, %v1295_v34  ;;  %v2002_v44 = vadd.f32 %v2001_v21, %v1875_v24 }
 0x1e5   : > { %v1311_v8 = vmul.f32 %v6120_v18, %v4958_v19  ;;  %v1891_v22 = vmul.f32 %v6121_v37, %v4958_v19  ;;  %v1296_v58 = vmul.f32 %v6122_v42, %v4744_v50  ;;  %v1876_v23 = vmul.f32 %v6123_v62, %v4744_v50 }
 0x1e6   : > { %v6124_v55 = vunpack.c.l.bf16 %v4906_v56  ;;  %v6125_v19 = vunpack.c.l.bf16 %v4909_v59  ;;  %v6126_v17 = vunpack.c.h.bf16 %v4906_v56  ;;  %v6127_v33 = vunpack.c.h.bf16 %v4909_v59  ;;  %846 = vbcast.lane.b32.xlu1 %v4782_v16, 304 }
 0x1e7   : > { %v1455_v50 = vadd.f32 %v1454_v3, %v1318_v54  ;;  %v2035_v38 = vadd.f32 %v2034_v32, %v1898_v14  ;;  %v6128_v34 = vunpack.c.h.bf16 %v4849_v39  ;;  %v6129_v24 = vunpack.c.h.bf16 %v4852_v15  ;;  %909 = vbcast.lane.b32.xlu0 %v4825_v52, 296  ;;  %v5081_v14 = vld [vmem:[%s4570_s3 + $0xc0] sm:$0xff]  }
 0x1e8   : > { %v1319_v25 = vmul.f32 %v6124_v55, %v646_v61  ;;  %v1899_v46 = vmul.f32 %v6125_v19, %v646_v61  ;;  %v1320_v6 = vmul.f32 %v6126_v17, %v650_v48  ;;  %v1900_v7 = vmul.f32 %v6127_v33, %v650_v48  ;;  %v658_v21 = vpop.permute.xlu1 %657  ;;  %v654_v27 = vpop.permute.xlu0 %653  ;;  %v5084_v39 = vld [vmem:[%s4570_s3 + $0x2c0] sm:$0xff]   ;;  %v5101_v48 = vld [vmem:[%s4570_s3 + $0xc8] sm:$0xff]  }
 0x1e9   : > { %v1312_v29 = vmul.f32 %v6128_v34, %v4956_v20  ;;  %v1892_v40 = vmul.f32 %v6129_v24, %v4956_v20  ;;  %v1443_v5 = vadd.f32 %v1442_v60, %v1311_v8  ;;  %v2023_v56 = vadd.f32 %v2022_v9, %v1891_v22  ;;  %v5104_v61 = vld [vmem:[%s4570_s3 + $0x2c8] sm:$0xff]  }
 0x1ea   : > { %v1456_v59 = vadd.f32 %v1455_v50, %v1319_v25  ;;  %v2036_v1 = vadd.f32 %v2035_v38, %v1899_v46  ;;  %v2972_v49 = vunpack.c.l.bf16 %v5027_v63  ;;  %v3228_v54 = vunpack.c.l.bf16 %v5030_v0  ;;  %913 = vbcast.lane.b32.xlu1 %v4825_v52, 304 }
 0x1eb   : > { %v1423_v35 = vadd.f32 %v1422_v4, %v1296_v58  ;;  %v2003_v36 = vadd.f32 %v2002_v44, %v1876_v23  ;;  %v1321_v15 = vmul.f32 %v2960_v43, %v654_v27  ;;  %v6130_v20 = vunpack.c.l.bf16 %v4937_v47  ;;  %976 = vbcast.lane.b32.xlu0 %v4832_v41, 296 }
 0x1ec   : > { %v6131_v30 = vunpack.c.h.bf16 %v4934_v31  ;;  %v6132_v9 = vunpack.c.h.bf16 %v4937_v47  ;;  %v1457_v8 = vadd.f32 %v1456_v59, %v1320_v6  ;;  %v2037_v37 = vadd.f32 %v2036_v1, %v1900_v7  ;;  %v666_v23 = vpop.permute.xlu1 %665  ;;  %v662_v3 = vpop.permute.xlu0 %661 }
 0x1ed   : > { %v1901_v51 = vmul.f32 %v6130_v20, %v654_v27  ;;  %v1444_v22 = vadd.f32 %v1443_v5, %v1312_v29  ;;  %v2024_v42 = vadd.f32 %v2023_v56, %v1892_v40  ;;  %v2977_v43 = vunpack.c.h.bf16 %v5081_v14  ;;  %v5124_v27 = vld [vmem:[%s4570_s3 + $0x2d0] sm:$0xff]  }
 0x1ee   : > { %v1322_v60 = vmul.f32 %v6131_v30, %v658_v21  ;;  %v1902_v18 = vmul.f32 %v6132_v9, %v658_v21  ;;  %v3233_v58 = vunpack.c.h.bf16 %v5084_v39  ;;  %v1458_v62 = vadd.f32 %v1457_v8, %v1321_v15  ;;  %980 = vbcast.lane.b32.xlu1 %v4832_v41, 304  ;;  %v5121_v21 = vld [vmem:[%s4570_s3 + $0xd0] sm:$0xff]  }
 0x1ef   : > { %v2038_v31 = vadd.f32 %v2037_v37, %v1901_v51  ;;  %v2976_v47 = vunpack.c.l.bf16 %v5081_v14  ;;  %v3232_v32 = vunpack.c.l.bf16 %v5084_v39  ;;  %v1424_v4 = vrot.slane %v1423_v35, 4  ;;  %850 = vbcast.lane.b32.xlu0 %v4782_v16, 312 }
 0x1f0   : > { %v2004_v44 = vrot.slane %v2003_v36, 4  ;;  %v6133_v55 = vunpack.c.l.bf16 %v4945_v45  ;;  %v6134_v19 = vunpack.c.l.bf16 %v4948_v53  ;;  %v6135_v17 = vunpack.c.h.bf16 %v4945_v45  ;;  %v674_v56 = vpop.permute.xlu1 %673  ;;  %v670_v59 = vpop.permute.xlu0 %669 }
 0x1f1   : > { %v6136_v33 = vunpack.c.h.bf16 %v4948_v53  ;;  %v1459_v50 = vadd.f32 %v1458_v62, %v1322_v60  ;;  %v2039_v38 = vadd.f32 %v2038_v31, %v1902_v18  ;;  %v1445_v34 = vrot.slane %v1444_v22, 4  ;;  %v5141_v31 = vld [vmem:[%s4570_s3 + $0xd8] sm:$0xff]  }
 0x1f2   : > { %v1323_v25 = vmul.f32 %v6133_v55, %v662_v3  ;;  %v1903_v46 = vmul.f32 %v6134_v19, %v662_v3  ;;  %v1324_v6 = vmul.f32 %v6135_v17, %v666_v23  ;;  %v2025_v29 = vrot.slane %v2024_v42, 4  ;;  %854 = vbcast.lane.b32.xlu1 %v4782_v16, 320 }
 0x1f3   : > { %v1904_v7 = vmul.f32 %v6136_v33, %v666_v23  ;;  %v2980_v24 = vunpack.c.l.bf16 %v5101_v48  ;;  %v3236_v40 = vunpack.c.l.bf16 %v5104_v61  ;;  %v2981_v53 = vunpack.c.h.bf16 %v5101_v48  ;;  %917 = vbcast.lane.b32.xlu0 %v4825_v52, 312  ;;  %v5144_v23 = vld [vmem:[%s4570_s3 + $0x2d8] sm:$0xff]  }
 0x1f4   : > { %v1460_v5 = vadd.f32 %v1459_v50, %v1323_v25  ;;  %v2040_v45 = vadd.f32 %v2039_v38, %v1903_v46  ;;  %v3237_v1 = vunpack.c.h.bf16 %v5104_v61  ;;  %v1425_v15 = vadd.f32 %v1424_v4, %v1423_v35  ;;  %v678_v62 = vpop.permute.xlu0 %677 }
 0x1f5   : > { %v2005_v20 = vadd.f32 %v2004_v44, %v2003_v36  ;;  %v1325_v51 = vmul.f32 %v2968_v57, %v670_v59  ;;  %v1905_v30 = vmul.f32 %v3224_v26, %v670_v59  ;;  %v1326_v60 = vmul.f32 %v2969_v13, %v674_v56  ;;  %v682_v13 = vpop.permute.xlu1 %681 }
 0x1f6   : > { %v1906_v9 = vmul.f32 %v3225_v11, %v674_v56  ;;  %v1461_v18 = vadd.f32 %v1460_v5, %v1324_v6  ;;  %v2041_v8 = vadd.f32 %v2040_v45, %v1904_v7  ;;  %v1446_v35 = vadd.f32 %v1445_v34, %v1444_v22  ;;  %921 = vbcast.lane.b32.xlu1 %v4825_v52, 320 }
 0x1f7   : > { %v2026_v36 = vadd.f32 %v2025_v29, %v2024_v42  ;;  %v2984_v57 = vunpack.c.l.bf16 %v5121_v21  ;;  %v3240_v26 = vunpack.c.l.bf16 %v5124_v27  ;;  %v2985_v12 = vunpack.c.h.bf16 %v5121_v21  ;;  %984 = vbcast.lane.b32.xlu0 %v4832_v41, 312 }
 0x1f8   : > { %v1462_v37 = vadd.f32 %v1461_v18, %v1325_v51  ;;  %v2042_v28 = vadd.f32 %v2041_v8, %v1905_v30  ;;  %v3241_v11 = vunpack.c.h.bf16 %v5124_v27  ;;  %v1426_v22 = vrot.slane %v1425_v15, 2  ;;  %v689_v63 = vpop.permute.xlu0 %688 }
 0x1f9   : > { %v2006_v42 = vrot.slane %v2005_v20, 2  ;;  %v1327_v3 = vmul.f32 %v2972_v49, %v678_v62  ;;  %v1907_v4 = vmul.f32 %v3228_v54, %v678_v62  ;;  %v1328_v44 = vmul.f32 %v2973_v2, %v682_v13  ;;  %v693_v7 = vpop.permute.xlu1 %692 }
 0x1fa   : > { %v1908_v55 = vmul.f32 %v3229_v10, %v682_v13  ;;  %v1463_v25 = vadd.f32 %v1462_v37, %v1326_v60  ;;  %v2043_v19 = vadd.f32 %v2042_v28, %v1906_v9  ;;  %v1447_v46 = vrot.slane %v1446_v35, 2  ;;  %988 = vbcast.lane.b32.xlu1 %v4832_v41, 320 }
 0x1fb   : > { %v2027_v17 = vrot.slane %v2026_v36, 2  ;;  %v2988_v6 = vunpack.c.l.bf16 %v5141_v31  ;;  %v3244_v49 = vunpack.c.l.bf16 %v5144_v23  ;;  %v2989_v2 = vunpack.c.h.bf16 %v5141_v31  ;;  %858 = vbcast.lane.b32.xlu0 %v4782_v16, 328 }
 0x1fc   : > { %v1464_v33 = vadd.f32 %v1463_v25, %v1327_v3  ;;  %v2044_v54 = vadd.f32 %v2043_v19, %v1907_v4  ;;  %v3245_v0 = vunpack.c.h.bf16 %v5144_v23  ;;  %v1330_v10 = vmul.f32 %v2977_v43, %v693_v7  ;;  %v5171_v43 = vld [vmem:[%s4570_s3 + $0xe0] sm:$0xff]  }
 0x1fd   : > { %v1910_v50 = vmul.f32 %v3233_v58, %v693_v7  ;;  %v1329_v38 = vmul.f32 %v2976_v47, %v689_v63  ;;  %v1909_v34 = vmul.f32 %v3232_v32, %v689_v63  ;;  %v1427_v29 = vadd.f32 %v1426_v22, %v1425_v15  ;;  %v5174_v58 = vld [vmem:[%s4570_s3 + $0x2e0] sm:$0xff]   ;;  %v701_v47 = vpop.permute.xlu1 %700  ;;  %v697_v32 = vpop.permute.xlu0 %696 }
 0x1fe   : > { %v2007_v5 = vadd.f32 %v2006_v42, %v2005_v20  ;;  %v1465_v45 = vadd.f32 %v1464_v33, %v1328_v44  ;;  %v2045_v56 = vadd.f32 %v2044_v54, %v1908_v55  ;;  %v1448_v59 = vadd.f32 %v1447_v46, %v1446_v35  ;;  %862 = vbcast.lane.b32.xlu1 %v4782_v16, 336 }
 0x1ff   : > { %v2028_v51 = vadd.f32 %v2027_v17, %v2026_v36  ;;  %v1472_v30 = vadd.f32 %v1330_v10, %v1329_v38  ;;  %v2052_v60 = vadd.f32 %v1910_v50, %v1909_v34  ;;  %v2993_v15 = vunpack.c.h.bf16 %v5171_v43  ;;  %925 = vbcast.lane.b32.xlu0 %v4825_v52, 328 }
 0x200   : > { %v1466_v14 = vrot.slane %v1465_v45, 4  ;;  %v2046_v39 = vrot.slane %v2045_v56, 4  ;;  %v3249_v20 = vunpack.c.h.bf16 %v5174_v58  ;;  %v1332_v9 = vmul.f32 %v2981_v53, %v701_v47 }
 0x201   : > { %v1912_v18 = vmul.f32 %v3237_v1, %v701_v47  ;;  %v1331_v8 = vmul.f32 %v2980_v24, %v697_v32  ;;  %v1911_v35 = vmul.f32 %v3236_v40, %v697_v32  ;;  %v1428_v36 = vrot.slane %v1427_v29, 1  ;;  %v709_v4 = vpop.permute.xlu1 %708  ;;  %v705_v48 = vpop.permute.xlu0 %704 }
 0x202   : > { %v2008_v37 = vrot.slane %v2007_v5, 1  ;;  %v1467_v28 = vadd.f32 %v1466_v14, %v1465_v45  ;;  %v2047_v13 = vadd.f32 %v2046_v39, %v2045_v56  ;;  %v1449_v62 = vrot.slane %v1448_v59, 1  ;;  %929 = vbcast.lane.b32.xlu1 %v4825_v52, 336 }
 0x203   : > { %v2029_v22 = vrot.slane %v2028_v51, 1  ;;  %v1473_v42 = vadd.f32 %v1472_v30, %v1331_v8  ;;  %v2053_v3 = vadd.f32 %v2052_v60, %v1911_v35  ;;  %v2992_v24 = vunpack.c.l.bf16 %v5171_v43  ;;  %992 = vbcast.lane.b32.xlu0 %v4832_v41, 328  ;;  %v3482_v30 = vld [vmem:[%s4570_s3 + $0x2e8] sm:$0xff]  }
 0x204   : > { %v1468_v53 = vrot.slane %v1467_v28, 2  ;;  %v2048_v1 = vrot.slane %v2047_v13, 2  ;;  %v3248_v61 = vunpack.c.l.bf16 %v5174_v58  ;;  %v1334_v40 = vmul.f32 %v2985_v12, %v709_v4 }
 0x205   : > { %v1914_v44 = vmul.f32 %v3241_v11, %v709_v4  ;;  %v1474_v55 = vadd.f32 %v1473_v42, %v1332_v9  ;;  %v2054_v25 = vadd.f32 %v2053_v3, %v1912_v18  ;;  %v1333_v17 = vmul.f32 %v2984_v57, %v705_v48  ;;  %v717_v34 = vpop.permute.xlu1 %716  ;;  %v713_v21 = vpop.permute.xlu0 %712 }
 0x206   : > { %v1469_v19 = vadd.f32 %v1468_v53, %v1467_v28  ;;  %v2049_v46 = vadd.f32 %v2048_v1, %v2047_v13  ;;  %v1913_v33 = vmul.f32 %v3240_v26, %v705_v48  ;;  %v1429_v54 = vadd.f32 %v1428_v36, %v1427_v29  ;;  %996 = vbcast.lane.b32.xlu1 %v4832_v41, 336  ;;  %v3419_v13 = vld [vmem:[%s4570_s3 + $0xf0] sm:$0xff]  }
 0x207   : > { %v2009_v7 = vadd.f32 %v2008_v37, %v2007_v5  ;;  %v1450_v63 = vadd.f32 %v1449_v62, %v1448_v59  ;;  %v2030_v10 = vadd.f32 %v2029_v22, %v2028_v51  ;;  %v1475_v50 = vadd.f32 %v1474_v55, %v1333_v17  ;;  %v3418_v51 = vld [vmem:[%s4570_s3 + $0xe8] sm:$0xff]   ;;  %866 = vbcast.lane.b32.xlu0 %v4782_v16, 344  ;;  %v3483_v62 = vld [vmem:[%s4570_s3 + $0x2f0] sm:$0xff]   ;;  %v3484_v55 = vld [vmem:[%s4570_s3 + $0x2f8] sm:$0xff]  }
 0x208   : > { %v1470_v12 = vrot.slane %v1469_v19, 1  ;;  %v2050_v11 = vrot.slane %v2049_v46, 1  ;;  %v2055_v38 = vadd.f32 %v2054_v25, %v1913_v33  ;;  %v1336_v27 = vmul.f32 %v2989_v2, %v717_v34 }
 0x209   : > { %v1916_v57 = vmul.f32 %v3245_v0, %v717_v34  ;;  %v1335_v26 = vmul.f32 %v2988_v6, %v713_v21  ;;  %v1915_v29 = vmul.f32 %v3244_v49, %v713_v21  ;;  %v1476_v56 = vadd.f32 %v1475_v50, %v1334_v40  ;;  %v725_v39 = vpop.permute.xlu1 %724  ;;  %v721_v47 = vpop.permute.xlu0 %720  ;;  %v3485_v50 = vld [vmem:[%s4570_s3 + $0x300] sm:$0xff]  }
 0x20a   : > { %v1471_v5 = vadd.f32 %v1470_v12, %v1469_v19  ;;  %v2051_v45 = vadd.f32 %v2050_v11, %v2049_v46  ;;  %v2056_v59 = vadd.f32 %v2055_v38, %v1914_v44  ;;  %v1586_v60 = vsel %vm1585_vm1, %v1450_v63, %v1429_v54  ;;  %870 = vbcast.lane.b32.xlu1 %v4782_v16, 352  ;;  %v3420_v44 = vld [vmem:[%s4570_s3 + $0xf8] sm:$0xff]   ;;  %v3421_v11 = vld [vmem:[%s4570_s3 + $0x100] sm:$0xff]  }
 0x20b   : > { %v2165_v2 = vsel %vm1585_vm1, %v2030_v10, %v2009_v7  ;;  %v2997_v0 = vunpack.c.h.bf16 %v3418_v51  ;;  %v3253_v31 = vunpack.c.h.bf16 %v3482_v30  ;;  %v1477_v49 = vadd.f32 %v1476_v56, %v1335_v26  ;;  %933 = vbcast.lane.b32.xlu0 %v4825_v52, 344 }
 0x20c   : > { %v5215_v23 = vsel %vm1587_vm2, %v1471_v5, %v1586_v60  ;;  %v5218_v6 = vsel %vm1587_vm2, %v2051_v45, %v2165_v2  ;;  %v2057_v14 = vadd.f32 %v2056_v59, %v1915_v29  ;;  %v1337_v32 = vmul.f32 %v2992_v24, %v721_v47  ;;  %v3422_v59 = vld [vmem:[%s4570_s3 + $0x108] sm:$0xff]  }
 0x20d   : > { %v1917_v9 = vmul.f32 %v3248_v61, %v721_v47  ;;  %v2996_v18 = vunpack.c.l.bf16 %v3418_v51  ;;  %v3252_v8 = vunpack.c.l.bf16 %v3482_v30  ;;  %v1338_v35 = vmul.f32 %v2993_v15, %v725_v39  ;;  %v733_v3 = vpop.permute.xlu1 %732  ;;  %v729_v53 = vpop.permute.xlu0 %728  ;;  %v3486_v51 = vld [vmem:[%s4570_s3 + $0x308] sm:$0xff]  }
 0x20e   : > { %v1918_v36 = vmul.f32 %v3249_v20, %v725_v39  ;;  %v1478_v37 = vadd.f32 %v1477_v49, %v1336_v27  ;;  %v2058_v28 = vadd.f32 %v2057_v14, %v1916_v57  ;;  %v3001_v1 = vunpack.c.h.bf16 %v3419_v13  ;;  %937 = vbcast.lane.b32.xlu1 %v4825_v52, 352 }
 0x20f   : > { %v3257_v43 = vunpack.c.h.bf16 %v3483_v62  ;;  %v1339_v15 = vmul.f32 %v2996_v18, %v729_v53  ;;  %v1919_v4 = vmul.f32 %v3252_v8, %v729_v53  ;;  %v3000_v58 = vunpack.c.l.bf16 %v3419_v13  ;;  %1000 = vbcast.lane.b32.xlu0 %v4832_v41, 344 }
 0x210   : > { %v1479_v22 = vadd.f32 %v1478_v37, %v1337_v32  ;;  %v2059_v42 = vadd.f32 %v2058_v28, %v1917_v9  ;;  %v3256_v20 = vunpack.c.l.bf16 %v3483_v62  ;;  %v1340_v48 = vmul.f32 %v2997_v0, %v733_v3 }
 0x211   : > { %v1920_v24 = vmul.f32 %v3253_v31, %v733_v3  ;;  %v741_v46 = vpop.permute.xlu1 %740  ;;  %v737_v17 = vpop.permute.xlu0 %736  ;;  %v3005_v33 = vunpack.c.h.bf16 %v3420_v44  ;;  %v3261_v54 = vunpack.c.h.bf16 %v3484_v55  ;;  %v3004_v10 = vunpack.c.l.bf16 %v3420_v44  ;;  %v3488_v44 = vld [vmem:[%s4570_s3 + $0x318] sm:$0xff]  }
 0x212   : > { %v1480_v61 = vadd.f32 %v1479_v22, %v1338_v35  ;;  %v2060_v40 = vadd.f32 %v2059_v42, %v1918_v36  ;;  %v1341_v7 = vmul.f32 %v3000_v58, %v737_v17  ;;  %v1921_v63 = vmul.f32 %v3256_v20, %v737_v17  ;;  %1004 = vbcast.lane.b32.xlu1 %v4832_v41, 352 }
 0x213   : > { %v3260_v12 = vunpack.c.l.bf16 %v3484_v55  ;;  %v1342_v38 = vmul.f32 %v3001_v1, %v741_v46  ;;  %v1922_v34 = vmul.f32 %v3257_v43, %v741_v46  ;;  %874 = vbcast.lane.b32.xlu0 %v4782_v16, 360  ;;  %v3009_v45 = vunpack.c.h.bf16 %v3421_v11  ;;  %v3423_v43 = vld [vmem:[%s4570_s3 + $0x110] sm:$0xff]  }
 0x214   : > { %v1481_v25 = vadd.f32 %v1480_v61, %v1339_v15  ;;  %v2061_v19 = vadd.f32 %v2060_v40, %v1919_v4  ;;  %v3265_v56 = vunpack.c.h.bf16 %v3485_v50  ;;  %v3008_v2 = vunpack.c.l.bf16 %v3421_v11  ;;  %v3487_v15 = vld [vmem:[%s4570_s3 + $0x310] sm:$0xff]   ;;  %v3424_v40 = vld [vmem:[%s4570_s3 + $0x118] sm:$0xff]  }
 0x215   : > { %v749_v29 = vpop.permute.xlu1 %748  ;;  %v745_v5 = vpop.permute.xlu0 %744  ;;  %v3264_v0 = vunpack.c.l.bf16 %v3485_v50  ;;  %v3012_v47 = vunpack.c.l.bf16 %v3422_v59  ;;  %v3268_v32 = vunpack.c.l.bf16 %v3486_v51  ;;  %v3013_v36 = vunpack.c.h.bf16 %v3422_v59 }
 0x216   : > { %v1482_v21 = vadd.f32 %v1481_v25, %v1340_v48  ;;  %v2062_v27 = vadd.f32 %v2061_v19, %v1920_v24  ;;  %v1343_v30 = vmul.f32 %v3004_v10, %v745_v5  ;;  %v1923_v60 = vmul.f32 %v3260_v12, %v745_v5  ;;  %878 = vbcast.lane.b32.xlu1 %v4782_v16, 368 }
 0x217   : > { %v1344_v31 = vmul.f32 %v3005_v33, %v749_v29  ;;  %v1924_v49 = vmul.f32 %v3261_v54, %v749_v29  ;;  %941 = vbcast.lane.b32.xlu0 %v4825_v52, 360  ;;  %v3269_v37 = vunpack.c.h.bf16 %v3486_v51  ;;  %v3017_v24 = vunpack.c.h.bf16 %v3423_v43  ;;  %v3489_v29 = vld [vmem:[%s4570_s3 + $0x320] sm:$0xff]  }
 0x218   : > { %v1483_v57 = vadd.f32 %v1482_v21, %v1341_v7  ;;  %v2063_v26 = vadd.f32 %v2062_v27, %v1921_v63  ;;  %v3273_v61 = vunpack.c.h.bf16 %v3487_v15  ;;  %v3016_v54 = vunpack.c.l.bf16 %v3423_v43 }
 0x219   : > { %v760_v8 = vpop.permute.xlu1 %759  ;;  %v756_v35 = vpop.permute.xlu0 %755  ;;  %v3272_v7 = vunpack.c.l.bf16 %v3487_v15  ;;  %v3020_v12 = vunpack.c.l.bf16 %v3424_v40  ;;  %v3276_v11 = vunpack.c.l.bf16 %v3488_v44  ;;  %v3021_v27 = vunpack.c.h.bf16 %v3424_v40 }
 0x21a   : > { %v1484_v14 = vadd.f32 %v1483_v57, %v1342_v38  ;;  %v2064_v39 = vadd.f32 %v2063_v26, %v1922_v34  ;;  %v1346_v28 = vmul.f32 %v3009_v45, %v760_v8  ;;  %v1926_v13 = vmul.f32 %v3265_v56, %v760_v8  ;;  %945 = vbcast.lane.b32.xlu1 %v4825_v52, 368  ;;  %v3425_v26 = vld [vmem:[%s4570_s3 + $0x120] sm:$0xff]  }
 0x21b   : > { %v1345_v62 = vmul.f32 %v3008_v2, %v756_v35  ;;  %v1925_v22 = vmul.f32 %v3264_v0, %v756_v35  ;;  %1008 = vbcast.lane.b32.xlu0 %v4832_v41, 360  ;;  %v3277_v57 = vunpack.c.h.bf16 %v3488_v44  ;;  %v3281_v0 = vunpack.c.h.bf16 %v3489_v29 }
 0x21c   : > { %v1485_v9 = vadd.f32 %v1484_v14, %v1343_v30  ;;  %v2065_v18 = vadd.f32 %v2064_v39, %v1923_v60 }
 0x21d   : > { %v1493_v53 = vadd.f32 %v1346_v28, %v1345_v62  ;;  %v2073_v1 = vadd.f32 %v1926_v13, %v1925_v22  ;;  %v768_v20 = vpop.permute.xlu1 %767  ;;  %v764_v48 = vpop.permute.xlu0 %763  ;;  %v3426_v62 = vld [vmem:[%s4570_s3 + $0x128] sm:$0xff]  }
 0x21e   : > { %v1486_v42 = vadd.f32 %v1485_v9, %v1344_v31  ;;  %v2066_v3 = vadd.f32 %v2065_v18, %v1924_v49  ;;  %v1348_v55 = vmul.f32 %v3013_v36, %v768_v20  ;;  %v1928_v25 = vmul.f32 %v3269_v37, %v768_v20  ;;  %1012 = vbcast.lane.b32.xlu1 %v4832_v41, 368  ;;  %v3490_v22 = vld [vmem:[%s4570_s3 + $0x328] sm:$0xff]  }
 0x21f   : > { %v1347_v19 = vmul.f32 %v3012_v47, %v764_v48  ;;  %v1927_v46 = vmul.f32 %v3268_v32, %v764_v48  ;;  %882 = vbcast.lane.b32.xlu0 %v4782_v16, 376  ;;  %v3025_v16 = vunpack.c.h.bf16 %v3425_v26  ;;  %v3024_v31 = vunpack.c.l.bf16 %v3425_v26 }
 0x220   : > { %v1487_v4 = vrot.slane %v1486_v42, 4  ;;  %v2067_v58 = vrot.slane %v2066_v3, 4  ;;  %v3280_v49 = vunpack.c.l.bf16 %v3489_v29 }
 0x221   : > { %v1494_v63 = vadd.f32 %v1493_v53, %v1347_v19  ;;  %v2074_v10 = vadd.f32 %v2073_v1, %v1927_v46  ;;  %v776_v34 = vpop.permute.xlu1 %775  ;;  %v772_v21 = vpop.permute.xlu0 %771  ;;  %v3427_v19 = vld [vmem:[%s4570_s3 + $0x130] sm:$0xff]  }
 0x222   : > { %v1488_v17 = vadd.f32 %v1487_v4, %v1486_v42  ;;  %v2068_v33 = vadd.f32 %v2067_v58, %v2066_v3  ;;  %v1350_v5 = vmul.f32 %v3017_v24, %v776_v34  ;;  %v1930_v45 = vmul.f32 %v3273_v61, %v776_v34  ;;  %1016 = vbcast.lane.b32.xlu1 %v4832_v41, 376 }
 0x223   : > { %v1495_v56 = vadd.f32 %v1494_v63, %v1348_v55  ;;  %v2075_v59 = vadd.f32 %v2074_v10, %v1928_v25  ;;  %v1349_v60 = vmul.f32 %v3016_v54, %v772_v21  ;;  %v1929_v2 = vmul.f32 %v3272_v7, %v772_v21  ;;  %949 = vbcast.lane.b32.xlu0 %v4825_v52, 376 }
 0x224   : > { %v1489_v50 = vrot.slane %v1488_v17, 2  ;;  %v2069_v38 = vrot.slane %v2068_v33, 2  ;;  %v3029_v42 = vunpack.c.h.bf16 %v3426_v62  ;;  %v3285_v3 = vunpack.c.h.bf16 %v3490_v22 }
 0x225   : > { %v1496_v47 = vadd.f32 %v1495_v56, %v1349_v60  ;;  %v2076_v32 = vadd.f32 %v2075_v59, %v1929_v2  ;;  %v784_v9 = vpop.permute.xlu1 %783  ;;  %v780_v18 = vpop.permute.xlu0 %779  ;;  %v3028_v24 = vunpack.c.l.bf16 %v3426_v62  ;;  %v3284_v61 = vunpack.c.l.bf16 %v3490_v22 }
 0x226   : > { %v1490_v51 = vadd.f32 %v1489_v50, %v1488_v17  ;;  %v2070_v30 = vadd.f32 %v2069_v38, %v2068_v33  ;;  %v1352_v8 = vmul.f32 %v3021_v27, %v784_v9  ;;  %v1932_v35 = vmul.f32 %v3277_v57, %v784_v9  ;;  %v3428_v27 = vld [vmem:[%s4570_s3 + $0x138] sm:$0xff]  }
 0x227   : > { %v1351_v36 = vmul.f32 %v3020_v12, %v780_v18  ;;  %v1931_v37 = vmul.f32 %v3276_v11, %v780_v18  ;;  %v1497_v13 = vadd.f32 %v1496_v47, %v1350_v5  ;;  %v2077_v52 = vadd.f32 %v2076_v32, %v1930_v45  ;;  %v3492_v57 = vld [vmem:[%s4570_s3 + $0x338] sm:$0xff]  }
 0x228   : > { %v1491_v14 = vrot.slane %v1490_v51, 1  ;;  %v2071_v39 = vrot.slane %v2070_v30, 1  ;;  %v3033_v54 = vunpack.c.h.bf16 %v3427_v19  ;;  %v3032_v12 = vunpack.c.l.bf16 %v3427_v19 }
 0x229   : > { %v1498_v43 = vadd.f32 %v1497_v13, %v1351_v36  ;;  %v2078_v15 = vadd.f32 %v2077_v52, %v1931_v37  ;;  %v792_v4 = vpop.permute.xlu1 %791  ;;  %v788_v58 = vpop.permute.xlu0 %787  ;;  %v3037_v56 = vunpack.c.h.bf16 %v3428_v27  ;;  %v3293_v59 = vunpack.c.h.bf16 %v3492_v57 }
 0x22a   : > { %v1492_v28 = vadd.f32 %v1491_v14, %v1490_v51  ;;  %v2072_v41 = vadd.f32 %v2071_v39, %v2070_v30  ;;  %v1353_v20 = vmul.f32 %v3024_v31, %v788_v58  ;;  %v1933_v48 = vmul.f32 %v3280_v49, %v788_v58 }
 0x22b   : > { %v1354_v40 = vmul.f32 %v3025_v16, %v792_v4  ;;  %v1934_v44 = vmul.f32 %v3281_v0, %v792_v4  ;;  %v1499_v55 = vadd.f32 %v1498_v43, %v1352_v8  ;;  %v2079_v25 = vadd.f32 %v2078_v15, %v1932_v35 }
 0x22c   : > { %v5256_v53 = vsel %vm1589_vm3, %v1492_v28, %v5215_v23  ;;  %v5260_v1 = vsel %vm1589_vm3, %v2072_v41, %v5218_v6  ;;  %v3491_v23 = vld [vmem:[%s4570_s3 + $0x330] sm:$0xff]   ;;  %v3036_v60 = vunpack.c.l.bf16 %v3428_v27  ;;  %v3292_v2 = vunpack.c.l.bf16 %v3492_v57  ;;  %v5474_v57 = vld [vmem:[%s4570_s3 + $0x3e8] sm:$0xff]  }
 0x22d   : > { %v1500_v46 = vadd.f32 %v1499_v55, %v1353_v20  ;;  %v2080_v17 = vadd.f32 %v2079_v25, %v1933_v48  ;;  %v800_v6 = vpop.permute.xlu1 %799  ;;  %v796_v33 = vpop.permute.xlu0 %795  ;;  %v3289_v7 = vunpack.c.h.bf16 %v3491_v23  ;;  %v3288_v11 = vunpack.c.l.bf16 %v3491_v23  ;;  %v3938_v55 = vld [vmem:[%s398_s23] sm:$0xff]  ;;  %6152 = vst [vmem:[#allocation54_spill] sm:$0xff] %v5474_v57  ;;  %v5491_v27 = vld [vmem:[%s4570_s3 + $0x1b0] sm:$0xff]  }
 0x22e   : > { %v1355_v63 = vmul.f32 %v3028_v24, %v796_v33  ;;  %v1935_v10 = vmul.f32 %v3284_v61, %v796_v33  ;;  %v1356_v50 = vmul.f32 %v3029_v42, %v800_v6  ;;  %v1936_v38 = vmul.f32 %v3285_v3, %v800_v6 }
 0x22f   : > { %v1501_v34 = vadd.f32 %v1500_v46, %v1354_v40  ;;  %v2081_v21 = vadd.f32 %v2080_v17, %v1934_v44 }
 0x231   : > { %v1502_v26 = vadd.f32 %v1501_v34, %v1355_v63  ;;  %v2082_v29 = vadd.f32 %v2081_v21, %v1935_v10  ;;  %v808_v5 = vpop.permute.xlu1 %807  ;;  %v804_v45 = vpop.permute.xlu0 %803  ;;  %v5314_v34 = vld [vmem:[%s4570_s3 + $0x380] sm:$0xff]  }
 0x232   : > { %v1357_v51 = vmul.f32 %v3032_v12, %v804_v45  ;;  %v1937_v30 = vmul.f32 %v3288_v11, %v804_v45  ;;  %v1358_v16 = vmul.f32 %v3033_v54, %v808_v5  ;;  %v1938_v0 = vmul.f32 %v3289_v7, %v808_v5  ;;  %v5297_v12 = vld [vmem:[%s4570_s3 + $0x140] sm:$0xff]   ;;  %v5328_v5 = vld [vmem:[%s4570_s3 + $0x388] sm:$0xff]  }
 0x233   : > { %v1503_v31 = vadd.f32 %v1502_v26, %v1356_v50  ;;  %v2083_v49 = vadd.f32 %v2082_v29, %v1936_v38  ;;  %v5300_v11 = vld [vmem:[%s4570_s3 + $0x340] sm:$0xff]   ;;  %v5308_v38 = vld [vmem:[%s4570_s3 + $0x348] sm:$0xff]  }
 0x234   : > { %v5317_v21 = vld [vmem:[%s4570_s3 + $0x1c0] sm:$0xff]   ;;  %v5325_v29 = vld [vmem:[%s4570_s3 + $0x188] sm:$0xff]   ;;  %v6163_v57 = vunpack.c.h.bf16 %v5300_v11 }
 0x235   : > { %v1504_v14 = vadd.f32 %v1503_v31, %v1357_v51  ;;  %v2084_v39 = vadd.f32 %v2083_v49, %v1937_v30  ;;  %v816_v47 = vpop.permute.xlu1 %815  ;;  %v812_v18 = vpop.permute.xlu0 %811  ;;  %v5322_v26 = vld [vmem:[%s4570_s3 + $0x3c0] sm:$0xff]  }
 0x236   : > { %v1360_v32 = vmul.f32 %v3037_v56, %v816_v47  ;;  %v1940_v9 = vmul.f32 %v3293_v59, %v816_v47  ;;  %v1359_v36 = vmul.f32 %v3036_v60, %v812_v18  ;;  %v1939_v37 = vmul.f32 %v3292_v2, %v812_v18  ;;  %v5337_v60 = vld [vmem:[%s4570_s3 + $0x1c8] sm:$0xff]   ;;  %v5352_v47 = vld [vmem:[%s4570_s3 + $0x350] sm:$0xff]   ;;  %v5440_v49 = vld [vmem:[%s4570_s3 + $0x3e0] sm:$0xff]  }
 0x237   : > { %v1505_v8 = vadd.f32 %v1504_v14, %v1358_v16  ;;  %v2085_v35 = vadd.f32 %v2084_v39, %v1938_v0  ;;  %v5340_v2 = vld [vmem:[%s4570_s3 + $0x3c8] sm:$0xff]   ;;  %v5349_v39 = vld [vmem:[%s4570_s3 + $0x150] sm:$0xff]   ;;  %v5437_v14 = vld [vmem:[%s4570_s3 + $0x1e0] sm:$0xff]   ;;  %6146 = vst [vmem:[#allocation48_spill] sm:$0xff] %v5440_v49 }
 0x238   : > { %6145 = vst [vmem:[#allocation47_spill] sm:$0xff] %v5437_v14  ;;  %v5450_v18 = vld [vmem:[%s4570_s3 + $0x368] sm:$0xff]   ;;  %v5481_v56 = vld [vmem:[%s4570_s3 + $0x170] sm:$0xff]   ;;  %v5515_v49 = vld [vmem:[%s4570_s3 + $0x178] sm:$0xff]   ;;  %v6164_v14 = vunpack.c.l.bf16 %v5297_v12 }
 0x239   : > { %v1506_v28 = vadd.f32 %v1505_v8, %v1359_v36  ;;  %v2086_v41 = vadd.f32 %v2085_v35, %v1939_v37  ;;  %v5266_v13 = vpop.permute.xlu1 %826  ;;  %v5268_v52 = vpop.permute.xlu0 %822  ;;  %v5359_v35 = vld [vmem:[%s4570_s3 + $0x190] sm:$0xff]   ;;  %v5430_v37 = vld [vmem:[%s4570_s3 + $0x3a0] sm:$0xff]   ;;  %6148 = vst [vmem:[#allocation50_spill] sm:$0xff] %v5450_v18  ;;  %v5459_v8 = vld [vmem:[%s4570_s3 + $0x1a8] sm:$0xff]   ;;  %v6162_v18 = vunpack.c.h.bf16 %v5297_v12  ;;  %v6167_v12 = vunpack.c.l.bf16 %v5308_v38 }
 0x23a   : > { %v5362_v36 = vld [vmem:[%s4570_s3 + $0x390] sm:$0xff]   ;;  %6144 = vst [vmem:[#allocation46_spill] sm:$0xff] %v5430_v37  ;;  %6149 = vst [vmem:[#allocation51_spill] sm:$0xff] %v5459_v8  ;;  %v5544_v59 = vld [vmem:[%s4570_s3 + $0x3f8] sm:$0xff]   ;;  %v6169_v8 = vunpack.c.l.bf16 %v5314_v34 }
 0x23b   : > { %v1507_v62 = vadd.f32 %v1506_v28, %v1360_v32  ;;  %v2087_v22 = vadd.f32 %v2086_v41, %v1940_v9  ;;  %v5447_v32 = vld [vmem:[%s4570_s3 + $0x168] sm:$0xff]   ;;  %6153 = vst [vmem:[#allocation55_spill] sm:$0xff] %v5481_v56  ;;  %v5503_v37 = vld [vmem:[%s4570_s3 + $0x1f0] sm:$0xff]   ;;  %v5518_v28 = vld [vmem:[%s4570_s3 + $0x378] sm:$0xff]  }
 0x23c   : > { %6147 = vst [vmem:[#allocation49_spill] sm:$0xff] %v5447_v32  ;;  %v5462_v9 = vld [vmem:[%s4570_s3 + $0x3a8] sm:$0xff]   ;;  %6158 = vst [vmem:[#allocation60_spill] sm:$0xff] %v5518_v28  ;;  %v5529_v32 = vld [vmem:[%s4570_s3 + $0x1b8] sm:$0xff]  }
 0x23d   : > { %v1508_v42 = vrot.slane %v1507_v62, 4  ;;  %v2088_v3 = vrot.slane %v2087_v22, 4  ;;  %v5270_v43 = vpop.permute.xlu1 %889  ;;  %v5272_v15 = vpop.permute.xlu0 %830  ;;  %6150 = vst [vmem:[#allocation52_spill] sm:$0xff] %v5462_v9  ;;  %v5471_v41 = vld [vmem:[%s4570_s3 + $0x1e8] sm:$0xff]   ;;  %6161 = vst [vmem:[#allocation63_spill] sm:$0xff] %v5544_v59  ;;  %v1942_v9 = vmul.f32 %v6163_v57, %v5266_v13  ;;  %v6174_v59 = vunpack.c.h.bf16 %v5317_v21 }
 0x23e   : > { %6151 = vst [vmem:[#allocation53_spill] sm:$0xff] %v5471_v41  ;;  %v5541_v41 = vld [vmem:[%s4570_s3 + $0x1f8] sm:$0xff]  }
 0x23f   : > { %v1509_v4 = vadd.f32 %v1508_v42, %v1507_v62  ;;  %v2089_v58 = vadd.f32 %v2088_v3, %v2087_v22  ;;  %v5369_v22 = vld [vmem:[%s4570_s3 + $0x1d0] sm:$0xff]   ;;  %v5415_v62 = vld [vmem:[%s4570_s3 + $0x160] sm:$0xff]   ;;  %6160 = vst [vmem:[#allocation62_spill] sm:$0xff] %v5541_v41 }
 0x240   : > { %v5372_v42 = vld [vmem:[%s4570_s3 + $0x3d0] sm:$0xff]   ;;  %6141 = vst [vmem:[#allocation43_spill] sm:$0xff] %v5415_v62  ;;  %v1362_v62 = vmul.f32 %v6162_v18, %v5266_v13  ;;  %v1957_v18 = vmul.f32 %v6169_v8, %v5270_v43 }
 0x241   : > { %v1510_v20 = vrot.slane %v1509_v4, 2  ;;  %v2090_v48 = vrot.slane %v2089_v58, 2  ;;  %v5274_v24 = vpop.permute.xlu1 %956  ;;  %v5276_v61 = vpop.permute.xlu0 %893 }
 0x242   : > { %1019 = vadd.xlane.f32.xlu0 %v3938_v55  ;;  %v5386_v55 = vld [vmem:[%s4570_s3 + $0x358] sm:$0xff]  }
 0x243   : > { %v1511_v40 = vadd.f32 %v1510_v20, %v1509_v4  ;;  %v2091_v44 = vadd.f32 %v2090_v48, %v2089_v58  ;;  %v5393_v20 = vld [vmem:[%s4570_s3 + $0x198] sm:$0xff]   ;;  %v5427_v48 = vld [vmem:[%s4570_s3 + $0x1a0] sm:$0xff]  }
 0x244   : > { %v5396_v58 = vld [vmem:[%s4570_s3 + $0x398] sm:$0xff]   ;;  %6143 = vst [vmem:[#allocation45_spill] sm:$0xff] %v5427_v48  ;;  %v6165_v48 = vunpack.c.l.bf16 %v5300_v11 }
 0x245   : > { %v1512_v25 = vrot.slane %v1511_v40, 1  ;;  %v2092_v19 = vrot.slane %v2091_v44, 1  ;;  %v5280_v23 = vpop.permute.xlu1 %897  ;;  %v5282_v46 = vpop.permute.xlu0 %960 }
 0x247   : > { %v1513_v17 = vadd.f32 %v1512_v25, %v1511_v40  ;;  %v2093_v6 = vadd.f32 %v2092_v19, %v2091_v44  ;;  %v5383_v44 = vld [vmem:[%s4570_s3 + $0x158] sm:$0xff]   ;;  %v5418_v25 = vld [vmem:[%s4570_s3 + $0x360] sm:$0xff]  }
 0x248   : > { %v5403_v19 = vld [vmem:[%s4570_s3 + $0x1d8] sm:$0xff]   ;;  %6142 = vst [vmem:[#allocation44_spill] sm:$0xff] %v5418_v25 }
 0x249   : > { %v5285_v33 = vsel %vm1591_vm4, %v1513_v17, %v5256_v53  ;;  %v5288_v54 = vsel %vm1591_vm4, %v2093_v6, %v5260_v1  ;;  %v5290_v7 = vpop.permute.xlu1 %964  ;;  %v5292_v63 = vpop.permute.xlu0 %834  ;;  %v5305_v53 = vld [vmem:[%s4570_s3 + $0x148] sm:$0xff]   ;;  %v5311_v1 = vld [vmem:[%s4570_s3 + $0x180] sm:$0xff]   ;;  %6139 = vst [vmem:[#allocation41_spill] sm:$0xff] %v5403_v19  ;;  %v5406_v17 = vld [vmem:[%s4570_s3 + $0x3d8] sm:$0xff]   ;;  %v1941_v19 = vmul.f32 %v6165_v48, %v5268_v52 }
 0x24a   : > { %6137 = vst [vmem:[#allocation39_spill] sm:$0xff] %v5285_v33  ;;  %6138 = vst [vmem:[#allocation40_spill] sm:$0xff] %v5288_v54  ;;  %v5484_v33 = vld [vmem:[%s4570_s3 + $0x370] sm:$0xff]   ;;  %v6166_v13 = vunpack.c.l.bf16 %v5305_v53 }
 0x24b   : > { %6140 = vst [vmem:[#allocation42_spill] sm:$0xff] %v5406_v17  ;;  %6154 = vst [vmem:[#allocation56_spill] sm:$0xff] %v5484_v33  ;;  %v5494_v54 = vld [vmem:[%s4570_s3 + $0x3b0] sm:$0xff]  }
 0x24c   : > { %v5506_v17 = vld [vmem:[%s4570_s3 + $0x3f0] sm:$0xff]   ;;  %v1363_v57 = vmul.f32 %v6166_v13, %v5272_v15 }
 0x24d   : > { %v5294_v10 = vpop.permute.xlu1 %838  ;;  %v5302_v50 = vpop.permute.xlu0 %901  ;;  %6156 = vst [vmem:[#allocation58_spill] sm:$0xff] %v5506_v17 }
 0x251   : > { %v5330_v45 = vpop.permute.xlu1 %905  ;;  %v5342_v16 = vpop.permute.xlu0 %968 }
 0x255   : > { %v5374_v3 = vpop.permute.xlu1 %972  ;;  %v5380_v40 = vpop.permute.xlu0 %842 }
 0x259   : > { %v5412_v4 = vpop.permute.xlu1 %846  ;;  %v5422_v6 = vpop.permute.xlu0 %909 }
 0x25d   : > { %v5452_v0 = vpop.permute.xlu1 %913  ;;  %v5464_v51 = vpop.permute.xlu0 %976 }
 0x261   : > { %v5496_v25 = vpop.permute.xlu1 %980  ;;  %v5508_v31 = vpop.permute.xlu0 %850 }
 0x262   : > { %6155 = vst [vmem:[#allocation57_spill] sm:$0xff] %v5496_v25  ;;  %6157 = vst [vmem:[#allocation59_spill] sm:$0xff] %v5508_v31  ;;  %v5532_v25 = vld [vmem:[%s4570_s3 + $0x3b8] sm:$0xff]   ;;  %v1361_v31 = vmul.f32 %v6164_v14, %v5268_v52  ;;  %v1943_v14 = vmul.f32 %v6167_v12, %v5272_v15  ;;  %v6168_v52 = vunpack.c.l.bf16 %v5311_v1  ;;  %v6172_v15 = vunpack.c.l.bf16 %v5317_v21 }
 0x263   : > { %v6173_v12 = vunpack.c.l.bf16 %v5322_v26 }
 0x264   : > { %v1514_v56 = vadd.f32 %v1362_v62, %v1361_v31  ;;  %v1377_v48 = vmul.f32 %v6168_v52, %v5270_v43  ;;  %v6170_v31 = vunpack.c.h.bf16 %v5311_v1  ;;  %v6171_v62 = vunpack.c.h.bf16 %v5314_v34 }
 0x265   : > { %v5534_v30 = vpop.permute.xlu1 %854  ;;  %v5558_v33 = vpop.permute.xlu0 %917  ;;  %v1393_v13 = vmul.f32 %v6172_v15, %v5274_v24  ;;  %v1973_v52 = vmul.f32 %v6173_v12, %v5274_v24  ;;  %v1394_v43 = vmul.f32 %v6174_v59, %v5282_v46  ;;  %v6175_v1 = vunpack.c.h.bf16 %v5322_v26 }
 0x266   : > { %6159 = vst [vmem:[#allocation61_spill] sm:$0xff] %v5534_v30  ;;  %v2094_v30 = vadd.f32 %v1942_v9, %v1941_v19  ;;  %v1378_v9 = vmul.f32 %v6170_v31, %v5276_v61  ;;  %v1958_v19 = vmul.f32 %v6171_v62, %v5276_v61  ;;  %v6176_v34 = vunpack.c.l.bf16 %v5325_v29 }
 0x267   : > { %v1974_v8 = vmul.f32 %v6175_v1, %v5282_v46  ;;  %v6177_v31 = vunpack.c.l.bf16 %v5328_v5  ;;  %v1515_v21 = vadd.f32 %v1514_v56, %v1363_v57  ;;  %v6178_v26 = vunpack.c.l.bf16 %v5337_v60 }
 0x268   : > { %v1379_v61 = vmul.f32 %v6176_v34, %v5280_v23  ;;  %v2095_v59 = vadd.f32 %v2094_v30, %v1943_v14  ;;  %v6179_v1 = vunpack.c.l.bf16 %v5340_v2  ;;  %v1535_v28 = vadd.f32 %v1378_v9, %v1377_v48 }
 0x269   : > { %v5568_v11 = vpop.permute.xlu1 %921  ;;  %v5580_v17 = vpop.permute.xlu0 %984  ;;  %v1959_v62 = vmul.f32 %v6177_v31, %v5280_v23  ;;  %v1395_v46 = vmul.f32 %v6178_v26, %v5290_v7  ;;  %v2115_v23 = vadd.f32 %v1958_v19, %v1957_v18  ;;  %v6180_v31 = vunpack.c.h.bf16 %v5305_v53 }
 0x26a   : > { %v1975_v34 = vmul.f32 %v6179_v1, %v5290_v7  ;;  %v6181_v56 = vunpack.c.h.bf16 %v5308_v38  ;;  %v1556_v57 = vadd.f32 %v1394_v43, %v1393_v13  ;;  %v2136_v14 = vadd.f32 %v1974_v8, %v1973_v52 }
 0x26b   : > { %v1364_v24 = vmul.f32 %v6180_v31, %v5292_v63  ;;  %v6182_v26 = vunpack.c.h.bf16 %v5325_v29  ;;  %v6183_v7 = vunpack.c.h.bf16 %v5328_v5  ;;  %v1536_v48 = vadd.f32 %v1535_v28, %v1379_v61 }
 0x26c   : > { %v1944_v30 = vmul.f32 %v6181_v56, %v5292_v63  ;;  %v2116_v18 = vadd.f32 %v2115_v23, %v1959_v62  ;;  %v6184_v53 = vunpack.c.l.bf16 %v5349_v39  ;;  %v6185_v38 = vunpack.c.l.bf16 %v5352_v47 }
 0x26d   : > { %v5612_v15 = vpop.permute.xlu1 %988  ;;  %v5622_v41 = vpop.permute.xlu0 %858  ;;  %v1380_v12 = vmul.f32 %v6182_v26, %v5302_v50  ;;  %v1960_v1 = vmul.f32 %v6183_v7, %v5302_v50  ;;  %v1557_v13 = vadd.f32 %v1556_v57, %v1395_v46  ;;  %v2137_v52 = vadd.f32 %v2136_v14, %v1975_v34 }
 0x26e   : > { %v1365_v9 = vmul.f32 %v6184_v53, %v5294_v10  ;;  %v1945_v63 = vmul.f32 %v6185_v38, %v5294_v10  ;;  %v6186_v29 = vunpack.c.l.bf16 %v5359_v35  ;;  %v6187_v50 = vunpack.c.l.bf16 %v5362_v36 }
 0x26f   : > { %v1516_v8 = vadd.f32 %v1515_v21, %v1364_v24  ;;  %v2096_v61 = vadd.f32 %v2095_v59, %v1944_v30  ;;  %v6188_v62 = vunpack.c.h.bf16 %v5337_v60  ;;  %v6189_v46 = vunpack.c.h.bf16 %v5340_v2 }
 0x270   : > { %v1381_v43 = vmul.f32 %v6186_v29, %v5330_v45  ;;  %v1961_v5 = vmul.f32 %v6187_v50, %v5330_v45  ;;  %v1537_v23 = vadd.f32 %v1536_v48, %v1380_v12  ;;  %v2117_v31 = vadd.f32 %v2116_v18, %v1960_v1 }
 0x271   : > { %v5642_v19 = vpop.permute.xlu1 %862  ;;  %v5650_v28 = vpop.permute.xlu0 %925  ;;  %v1396_v10 = vmul.f32 %v6188_v62, %v5342_v16  ;;  %v1976_v34 = vmul.f32 %v6189_v46, %v5342_v16  ;;  %v6190_v56 = vunpack.c.h.bf16 %v5349_v39  ;;  %v6191_v45 = vunpack.c.h.bf16 %v5352_v47  ;;  %v6202_v46 = vld [vmem:[#allocation57_spill] sm:$0xff] }
 0x272   : > { %v1517_v24 = vadd.f32 %v1516_v8, %v1365_v9  ;;  %v2097_v21 = vadd.f32 %v2096_v61, %v1945_v63  ;;  %v6192_v60 = vunpack.c.l.bf16 %v5369_v22  ;;  %v6193_v2 = vunpack.c.l.bf16 %v5372_v42 }
 0x273   : > { %v1366_v57 = vmul.f32 %v6190_v56, %v5380_v40  ;;  %v1946_v14 = vmul.f32 %v6191_v45, %v5380_v40  ;;  %v1538_v30 = vadd.f32 %v1537_v23, %v1381_v43  ;;  %v2118_v26 = vadd.f32 %v2117_v31, %v1961_v5 }
 0x274   : > { %v1397_v59 = vmul.f32 %v6192_v60, %v5374_v3  ;;  %v1977_v16 = vmul.f32 %v6193_v2, %v5374_v3  ;;  %v6194_v39 = vunpack.c.l.bf16 %v5383_v44  ;;  %v6195_v47 = vunpack.c.l.bf16 %v5386_v55 }
 0x275   : > { %v5670_v12 = vpop.permute.xlu1 %929  ;;  %v993_v1 = vpop.permute.xlu0 %992  ;;  %v1558_v48 = vadd.f32 %v1557_v13, %v1396_v10  ;;  %v2138_v18 = vadd.f32 %v2137_v52, %v1976_v34  ;;  %v6196_v53 = vunpack.c.h.bf16 %v5359_v35  ;;  %v6197_v3 = vunpack.c.h.bf16 %v5362_v36 }
 0x276   : > { %v1367_v7 = vmul.f32 %v6194_v39, %v5412_v4  ;;  %v1947_v40 = vmul.f32 %v6195_v47, %v5412_v4  ;;  %v1518_v63 = vadd.f32 %v1517_v24, %v1366_v57  ;;  %v2098_v29 = vadd.f32 %v2097_v21, %v1946_v14  ;;  %v6207_v14 = vld [vmem:[#allocation59_spill] sm:$0xff] }
 0x277   : > { %v1382_v9 = vmul.f32 %v6196_v53, %v5422_v6  ;;  %v1962_v38 = vmul.f32 %v6197_v3, %v5422_v6  ;;  %v6198_v43 = vunpack.c.h.bf16 %v5369_v22  ;;  %v6199_v4 = vunpack.c.h.bf16 %v5372_v42  ;;  %v6203_v22 = vld [vmem:[#allocation41_spill] sm:$0xff]  ;;  %v6205_v42 = vld [vmem:[#allocation42_spill] sm:$0xff]  ;;  %v6215_v53 = vld [vmem:[#allocation44_spill] sm:$0xff] }
 0x278   : > { %v1559_v13 = vadd.f32 %v1558_v48, %v1397_v59  ;;  %v2139_v52 = vadd.f32 %v2138_v18, %v1977_v16  ;;  %v6200_v35 = vunpack.c.l.bf16 %v5393_v20  ;;  %v6201_v36 = vunpack.c.l.bf16 %v5396_v58  ;;  %v6213_v48 = vld [vmem:[#allocation43_spill] sm:$0xff] }
 0x279   : > { %v1398_v50 = vmul.f32 %v6198_v43, %v5464_v51  ;;  %v1978_v5 = vmul.f32 %v6199_v4, %v5464_v51  ;;  %v997_v61 = vpop.permute.xlu1 %996  ;;  %v1519_v62 = vadd.f32 %v1518_v63, %v1367_v7  ;;  %v2099_v10 = vadd.f32 %v2098_v29, %v1947_v40  ;;  %v867_v56 = vpop.permute.xlu0 %866  ;;  %v6212_v40 = vld [vmem:[#allocation61_spill] sm:$0xff] }
 0x27a   : > { %v1383_v8 = vmul.f32 %v6200_v35, %v5452_v0  ;;  %v1963_v6 = vmul.f32 %v6201_v36, %v5452_v0  ;;  %v6204_v34 = vunpack.c.l.bf16 %v6203_v22  ;;  %v6206_v51 = vunpack.c.l.bf16 %v6205_v42 }
 0x27b   : > { %v1539_v57 = vadd.f32 %v1538_v30, %v1382_v9  ;;  %v2119_v45 = vadd.f32 %v2118_v26, %v1962_v38  ;;  %v6208_v24 = vunpack.c.h.bf16 %v5383_v44  ;;  %v6209_v0 = vunpack.c.h.bf16 %v5386_v55 }
 0x27c   : > { %v1399_v23 = vmul.f32 %v6204_v34, %v6202_v46  ;;  %v1979_v31 = vmul.f32 %v6206_v51, %v6202_v46  ;;  %v1560_v59 = vadd.f32 %v1559_v13, %v1398_v50  ;;  %v2140_v2 = vadd.f32 %v2139_v52, %v1978_v5 }
 0x27d   : > { %v1368_v21 = vmul.f32 %v6208_v24, %v6207_v14  ;;  %v1948_v60 = vmul.f32 %v6209_v0, %v6207_v14  ;;  %v6210_v16 = vunpack.c.h.bf16 %v5393_v20  ;;  %v6211_v7 = vunpack.c.h.bf16 %v5396_v58  ;;  %v871_v3 = vpop.permute.xlu1 %870  ;;  %v6217_v20 = vld [vmem:[#allocation45_spill] sm:$0xff]  ;;  %v6219_v58 = vld [vmem:[#allocation46_spill] sm:$0xff]  ;;  %v934_v4 = vpop.permute.xlu0 %933 }
 0x27e   : > { %v1540_v30 = vadd.f32 %v1539_v57, %v1383_v8  ;;  %v2120_v26 = vadd.f32 %v2119_v45, %v1963_v6  ;;  %v6214_v44 = vunpack.c.l.bf16 %v6213_v48  ;;  %v6216_v55 = vunpack.c.l.bf16 %v6215_v53  ;;  %v6227_v45 = vld [vmem:[#allocation48_spill] sm:$0xff]  ;;  %v6229_v0 = vld [vmem:[#allocation49_spill] sm:$0xff] }
 0x27f   : > { %v1384_v39 = vmul.f32 %v6210_v16, %v5558_v33  ;;  %v1964_v47 = vmul.f32 %v6211_v7, %v5558_v33  ;;  %v1561_v38 = vadd.f32 %v1560_v59, %v1399_v23  ;;  %v2141_v63 = vadd.f32 %v2140_v2, %v1979_v31  ;;  %v6225_v31 = vld [vmem:[#allocation47_spill] sm:$0xff]  ;;  %v6231_v2 = vld [vmem:[#allocation50_spill] sm:$0xff] }
 0x280   : > { %v1369_v18 = vmul.f32 %v6214_v44, %v6212_v40  ;;  %v1949_v9 = vmul.f32 %v6216_v55, %v6212_v40  ;;  %v6218_v29 = vunpack.c.l.bf16 %v6217_v20  ;;  %v6220_v33 = vunpack.c.l.bf16 %v6219_v58 }
 0x281   : > { %v1520_v5 = vadd.f32 %v1519_v62, %v1368_v21  ;;  %v2100_v13 = vadd.f32 %v2099_v10, %v1948_v60  ;;  %v6221_v52 = vunpack.c.h.bf16 %v6203_v22  ;;  %v6222_v8 = vunpack.c.h.bf16 %v6205_v42  ;;  %v938_v14 = vpop.permute.xlu1 %937 }
 0x282   : > { %v1385_v43 = vmul.f32 %v6218_v29, %v5568_v11  ;;  %v1965_v50 = vmul.f32 %v6220_v33, %v5568_v11  ;;  %v1541_v6 = vadd.f32 %v1540_v30, %v1384_v39  ;;  %v2121_v46 = vadd.f32 %v2120_v26, %v1964_v47  ;;  %v1001_v39 = vpop.permute.xlu0 %1000 }
 0x283   : > { %v1400_v35 = vmul.f32 %v6221_v52, %v5580_v17  ;;  %v1980_v36 = vmul.f32 %v6222_v8, %v5580_v17  ;;  %v6223_v34 = vunpack.c.h.bf16 %v6213_v48  ;;  %v6224_v11 = vunpack.c.h.bf16 %v6215_v53  ;;  %v6243_v8 = vld [vmem:[#allocation54_spill] sm:$0xff] }
 0x284   : > { %v1521_v62 = vadd.f32 %v1520_v5, %v1369_v18  ;;  %v2101_v10 = vadd.f32 %v2100_v13, %v1949_v9  ;;  %v6226_v22 = vunpack.c.l.bf16 %v6225_v31  ;;  %v6228_v42 = vunpack.c.l.bf16 %v6227_v45  ;;  %v6241_v13 = vld [vmem:[#allocation53_spill] sm:$0xff] }
 0x285   : > { %v1370_v23 = vmul.f32 %v6223_v34, %v5622_v41  ;;  %v1950_v51 = vmul.f32 %v6224_v11, %v5622_v41  ;;  %v1542_v24 = vadd.f32 %v1541_v6, %v1385_v43  ;;  %v2122_v21 = vadd.f32 %v2121_v46, %v1965_v50 }
 0x286   : > { %v1401_v57 = vmul.f32 %v6226_v22, %v5612_v15  ;;  %v1981_v17 = vmul.f32 %v6228_v42, %v5612_v15  ;;  %v6230_v60 = vunpack.c.l.bf16 %v6229_v0  ;;  %v6232_v41 = vunpack.c.l.bf16 %v6231_v2 }
 0x287   : > { %v1562_v7 = vadd.f32 %v1561_v38, %v1400_v35  ;;  %v2142_v47 = vadd.f32 %v2141_v63, %v1980_v36  ;;  %v6233_v30 = vunpack.c.h.bf16 %v6217_v20  ;;  %v6234_v15 = vunpack.c.h.bf16 %v6219_v58  ;;  %v6237_v38 = vld [vmem:[#allocation51_spill] sm:$0xff]  ;;  %v6239_v20 = vld [vmem:[#allocation52_spill] sm:$0xff]  ;;  %v1005_v58 = vpop.permute.xlu1 %1004 }
 0x288   : > { %v1371_v59 = vmul.f32 %v6230_v60, %v5642_v19  ;;  %v1951_v16 = vmul.f32 %v6232_v41, %v5642_v19  ;;  %v1522_v48 = vadd.f32 %v1521_v62, %v1370_v23  ;;  %v2102_v44 = vadd.f32 %v2101_v10, %v1950_v51 }
 0x289   : > { %v1386_v26 = vmul.f32 %v6233_v30, %v5650_v28  ;;  %v1966_v40 = vmul.f32 %v6234_v15, %v5650_v28  ;;  %v6235_v18 = vunpack.c.h.bf16 %v6225_v31  ;;  %v6236_v55 = vunpack.c.h.bf16 %v6227_v45 }
 0x28a   : > { %v1563_v19 = vadd.f32 %v1562_v7, %v1401_v57  ;;  %v2143_v29 = vadd.f32 %v2142_v47, %v1981_v17  ;;  %v6238_v63 = vunpack.c.l.bf16 %v6237_v38  ;;  %v6240_v33 = vunpack.c.l.bf16 %v6239_v20 }
 0x28b   : > { %v1402_v53 = vmul.f32 %v6235_v18, %v993_v1  ;;  %v1982_v9 = vmul.f32 %v6236_v55, %v993_v1  ;;  %v1523_v28 = vadd.f32 %v1522_v48, %v1371_v59  ;;  %v2103_v5 = vadd.f32 %v2102_v44, %v1951_v16  ;;  %v875_v1 = vpop.permute.xlu0 %874  ;;  %v879_v41 = vpop.permute.xlu1 %878 }
 0x28c   : > { %v1387_v43 = vmul.f32 %v6238_v63, %v5670_v12  ;;  %v1967_v50 = vmul.f32 %v6240_v33, %v5670_v12  ;;  %v6242_v52 = vunpack.c.l.bf16 %v6241_v13  ;;  %v6244_v36 = vunpack.c.l.bf16 %v6243_v8 }
 0x28d   : > { %v1543_v46 = vadd.f32 %v1542_v24, %v1386_v26  ;;  %v2123_v34 = vadd.f32 %v2122_v21, %v1966_v40  ;;  %v6245_v23 = vunpack.c.h.bf16 %v6229_v0  ;;  %v6246_v51 = vunpack.c.h.bf16 %v6231_v2  ;;  %v6251_v21 = vld [vmem:[#allocation56_spill] sm:$0xff] }
 0x28e   : > { %v1403_v35 = vmul.f32 %v6242_v52, %v997_v61  ;;  %v1983_v6 = vmul.f32 %v6244_v36, %v997_v61  ;;  %v1564_v10 = vadd.f32 %v1563_v19, %v1402_v53  ;;  %v2144_v12 = vadd.f32 %v2143_v29, %v1982_v9  ;;  %v6249_v61 = vld [vmem:[#allocation55_spill] sm:$0xff] }
 0x28f   : > { %v1372_v11 = vmul.f32 %v6245_v23, %v867_v56  ;;  %v1952_v62 = vmul.f32 %v6246_v51, %v867_v56  ;;  %v6247_v31 = vunpack.c.h.bf16 %v6237_v38  ;;  %v6248_v57 = vunpack.c.h.bf16 %v6239_v20  ;;  %v942_v26 = vpop.permute.xlu0 %941  ;;  %v6260_v20 = vld [vmem:[#allocation58_spill] sm:$0xff] }
 0x290   : > { %v1544_v42 = vadd.f32 %v1543_v46, %v1387_v43  ;;  %v2124_v17 = vadd.f32 %v2123_v34, %v1967_v50  ;;  %v6250_v60 = vunpack.c.l.bf16 %v6249_v61  ;;  %v6252_v59 = vunpack.c.l.bf16 %v6251_v21 }
 0x291   : > { %v1388_v22 = vmul.f32 %v6247_v31, %v934_v4  ;;  %v1968_v45 = vmul.f32 %v6248_v57, %v934_v4  ;;  %v1565_v16 = vadd.f32 %v1564_v10, %v1403_v35  ;;  %v2145_v2 = vadd.f32 %v2144_v12, %v1983_v6  ;;  %v6263_v35 = vld [vmem:[#allocation60_spill] sm:$0xff] }
 0x292   : > { %v1373_v24 = vmul.f32 %v6250_v60, %v871_v3  ;;  %v1953_v0 = vmul.f32 %v6252_v59, %v871_v3  ;;  %v6253_v56 = vunpack.c.l.bf16 %v5491_v27  ;;  %v6254_v47 = vunpack.c.l.bf16 %v5494_v54 }
 0x293   : > { %v1524_v15 = vadd.f32 %v1523_v28, %v1372_v11  ;;  %v2104_v4 = vadd.f32 %v2103_v5, %v1952_v62  ;;  %v6255_v40 = vunpack.c.h.bf16 %v6241_v13  ;;  %v6256_v44 = vunpack.c.h.bf16 %v6243_v8  ;;  %v946_v28 = vpop.permute.xlu1 %945  ;;  %v1009_v6 = vpop.permute.xlu0 %1008 }
 0x294   : > { %v1389_v7 = vmul.f32 %v6253_v56, %v938_v14  ;;  %v1969_v30 = vmul.f32 %v6254_v47, %v938_v14  ;;  %v1545_v53 = vadd.f32 %v1544_v42, %v1388_v22  ;;  %v2125_v3 = vadd.f32 %v2124_v17, %v1968_v45 }
 0x295   : > { %v1404_v48 = vmul.f32 %v6255_v40, %v1001_v39  ;;  %v1984_v18 = vmul.f32 %v6256_v44, %v1001_v39  ;;  %v6257_v55 = vunpack.c.h.bf16 %v6249_v61  ;;  %v6258_v19 = vunpack.c.h.bf16 %v6251_v21  ;;  %v6271_v21 = vld [vmem:[#allocation62_spill] sm:$0xff] }
 0x296   : > { %v1525_v38 = vadd.f32 %v1524_v15, %v1373_v24  ;;  %v2105_v63 = vadd.f32 %v2104_v4, %v1953_v0  ;;  %v6259_v14 = vunpack.c.l.bf16 %v5503_v37  ;;  %v6261_v33 = vunpack.c.l.bf16 %v6260_v20 }
 0x297   : > { %v1374_v9 = vmul.f32 %v6257_v55, %v875_v1  ;;  %v1954_v29 = vmul.f32 %v6258_v19, %v875_v1  ;;  %v1546_v5 = vadd.f32 %v1545_v53, %v1389_v7  ;;  %v2126_v13 = vadd.f32 %v2125_v3, %v1969_v30  ;;  %v1013_v60 = vpop.permute.xlu1 %1012 }
 0x298   : > { %v1405_v43 = vmul.f32 %v6259_v14, %v1005_v58  ;;  %v1985_v50 = vmul.f32 %v6261_v33, %v1005_v58  ;;  %v6262_v39 = vunpack.c.l.bf16 %v5515_v49  ;;  %v6264_v8 = vunpack.c.l.bf16 %v6263_v35 }
 0x299   : > { %v1566_v46 = vadd.f32 %v1565_v16, %v1404_v48  ;;  %v2146_v1 = vadd.f32 %v2145_v2, %v1984_v18  ;;  %v6265_v34 = vunpack.c.h.bf16 %v5491_v27  ;;  %v6266_v11 = vunpack.c.h.bf16 %v5494_v54  ;;  %v883_v2 = vpop.permute.xlu0 %882 }
 0x29a   : > { %v1375_v52 = vmul.f32 %v6262_v39, %v879_v41  ;;  %v1955_v36 = vmul.f32 %v6264_v8, %v879_v41  ;;  %v1526_v62 = vadd.f32 %v1525_v38, %v1374_v9  ;;  %v2106_v58 = vadd.f32 %v2105_v63, %v1954_v29  ;;  %v6273_v41 = vld [vmem:[#allocation63_spill] sm:$0xff] }
 0x29b   : > { %v1390_v23 = vmul.f32 %v6265_v34, %v942_v26  ;;  %v1970_v51 = vmul.f32 %v6266_v11, %v942_v26  ;;  %v6267_v10 = vunpack.c.h.bf16 %v5503_v37  ;;  %v6268_v31 = vunpack.c.h.bf16 %v6260_v20  ;;  %v1017_v3 = vpop.permute.xlu1 %1016 }
 0x29c   : > { %v1567_v57 = vadd.f32 %v1566_v46, %v1405_v43  ;;  %v2147_v45 = vadd.f32 %v2146_v1, %v1985_v50  ;;  %v6269_v42 = vunpack.c.l.bf16 %v5529_v32  ;;  %v6270_v61 = vunpack.c.l.bf16 %v5532_v25 }
 0x29d   : > { %v1406_v12 = vmul.f32 %v6267_v10, %v1009_v6  ;;  %v1986_v22 = vmul.f32 %v6268_v31, %v1009_v6  ;;  %v1527_v24 = vadd.f32 %v1526_v62, %v1375_v52  ;;  %v2107_v54 = vadd.f32 %v2106_v58, %v1955_v36 }
 0x29e   : > { %v1391_v17 = vmul.f32 %v6269_v42, %v946_v28  ;;  %v1971_v27 = vmul.f32 %v6270_v61, %v946_v28  ;;  %v6272_v59 = vunpack.c.l.bf16 %v6271_v21  ;;  %v6274_v37 = vunpack.c.l.bf16 %v6273_v41 }
 0x29f   : > { %v1547_v56 = vadd.f32 %v1546_v5, %v1390_v23  ;;  %v2127_v7 = vadd.f32 %v2126_v13, %v1970_v51  ;;  %v6275_v47 = vunpack.c.h.bf16 %v5515_v49  ;;  %v6276_v26 = vunpack.c.h.bf16 %v6263_v35  ;;  %v950_v49 = vpop.permute.xlu0 %949 }
 0x2a0   : > { %v1407_v0 = vmul.f32 %v6272_v59, %v1013_v60  ;;  %v1987_v16 = vmul.f32 %v6274_v37, %v1013_v60  ;;  %v1568_v4 = vadd.f32 %v1567_v57, %v1406_v12  ;;  %v2148_v40 = vadd.f32 %v2147_v45, %v1986_v22 }
 0x2a1   : > { %v1376_v30 = vmul.f32 %v6275_v47, %v883_v2  ;;  %v1956_v15 = vmul.f32 %v6276_v26, %v883_v2  ;;  %v1548_v48 = vadd.f32 %v1547_v56, %v1391_v17  ;;  %v2128_v44 = vadd.f32 %v2127_v7, %v1971_v27  ;;  %v6281_v56 = vld [vmem:[#allocation39_spill] sm:$0xff]  ;;  %v6282_v47 = vld [vmem:[#allocation40_spill] sm:$0xff]  ;;  %v1024_v26 = vld [vmem:[#allocation2] sm:$0xff] }
 0x2a2   : > { %v1569_v55 = vadd.f32 %v1568_v4, %v1407_v0  ;;  %v2149_v9 = vadd.f32 %v2148_v40, %v1987_v16  ;;  %v6277_v19 = vunpack.c.h.bf16 %v6271_v21  ;;  %v6278_v38 = vunpack.c.h.bf16 %v6273_v41 }
 0x2a3   : > { %v1528_v18 = vadd.f32 %v1527_v24, %v1376_v30  ;;  %v2108_v53 = vadd.f32 %v2107_v54, %v1956_v15  ;;  %v6279_v20 = vunpack.c.h.bf16 %v5529_v32  ;;  %v6280_v50 = vunpack.c.h.bf16 %v5532_v25  ;;  %v1603_v15 = vld [vmem:[#allocation2 + $0x8] sm:$0xff] }
 0x2a4   : > { %v1408_v29 = vmul.f32 %v6277_v19, %v1017_v3  ;;  %v1988_v63 = vmul.f32 %v6278_v38, %v1017_v3  ;;  %v1018_v3 = vld [vmem:[#allocation3] sm:$0xff] }
 0x2a5   : > { %v1529_v14 = vrot.slane %v1528_v18, 4  ;;  %v2109_v43 = vrot.slane %v2108_v53, 4  ;;  %v1392_v33 = vmul.f32 %v6279_v20, %v950_v49  ;;  %v1972_v28 = vmul.f32 %v6280_v50, %v950_v49 }
 0x2a6   : > { %v1570_v5 = vadd.f32 %v1569_v55, %v1408_v29  ;;  %v2150_v13 = vadd.f32 %v2149_v9, %v1988_v63 }
 0x2a7   : > { %v1530_v39 = vadd.f32 %v1529_v14, %v1528_v18  ;;  %v2110_v52 = vadd.f32 %v2109_v43, %v2108_v53  ;;  %v1549_v35 = vadd.f32 %v1548_v48, %v1392_v33  ;;  %v2129_v8 = vadd.f32 %v2128_v44, %v1972_v28 }
 0x2a8   : > { %v1571_v36 = vrot.slane %v1570_v5, 4  ;;  %v2151_v6 = vrot.slane %v2150_v13, 4 }
 0x2a9   : > { %v1531_v46 = vrot.slane %v1530_v39, 2  ;;  %v2111_v1 = vrot.slane %v2110_v52, 2  ;;  %v1550_v34 = vrot.slane %v1549_v35, 4  ;;  %v2130_v23 = vrot.slane %v2129_v8, 4 }
 0x2aa   : > { %v1572_v11 = vadd.f32 %v1571_v36, %v1570_v5  ;;  %v2152_v51 = vadd.f32 %v2151_v6, %v2150_v13 }
 0x2ab   : > { %v1532_v62 = vadd.f32 %v1531_v46, %v1530_v39  ;;  %v2112_v32 = vadd.f32 %v2111_v1, %v2110_v52  ;;  %v1551_v58 = vadd.f32 %v1550_v34, %v1549_v35  ;;  %v2131_v10 = vadd.f32 %v2130_v23, %v2129_v8 }
 0x2ac   : > { %v1573_v25 = vrot.slane %v1572_v11, 2  ;;  %v2153_v12 = vrot.slane %v2152_v51, 2 }
 0x2ad   : > { %v1533_v31 = vrot.slane %v1532_v62, 1  ;;  %v2113_v22 = vrot.slane %v2112_v32, 1  ;;  %v1552_v57 = vrot.slane %v1551_v58, 2  ;;  %v2132_v45 = vrot.slane %v2131_v10, 2 }
 0x2ae   : > { %v1574_v42 = vadd.f32 %v1573_v25, %v1572_v11  ;;  %v2154_v17 = vadd.f32 %v2153_v12, %v2152_v51 }
 0x2af   : > { %v1553_v61 = vadd.f32 %v1552_v57, %v1551_v58  ;;  %v2133_v27 = vadd.f32 %v2132_v45, %v2131_v10  ;;  %v1534_v60 = vadd.f32 %v1533_v31, %v1532_v62  ;;  %v2114_v24 = vadd.f32 %v2113_v22, %v2112_v32 }
 0x2b0   : > { %v1575_v54 = vrot.slane %v1574_v42, 1  ;;  %v2155_v21 = vrot.slane %v2154_v17, 1 }
 0x2b1   : > { %v1554_v59 = vrot.slane %v1553_v61, 1  ;;  %v2134_v0 = vrot.slane %v2133_v27, 1  ;;  %v1594_v7 = vsel %vm1593_vm5, %v1534_v60, %v6281_v56  ;;  %v2169_v30 = vsel %vm1593_vm5, %v2114_v24, %v6282_v47 }
 0x2b2   : > { %v1576_v41 = vadd.f32 %v1575_v54, %v1574_v42  ;;  %v2156_v37 = vadd.f32 %v2155_v21, %v2154_v17 }
 0x2b3   : > { %v1555_v16 = vadd.f32 %v1554_v59, %v1553_v61  ;;  %v2135_v2 = vadd.f32 %v2134_v0, %v2133_v27 }
 0x2b5   : > { %v1596_v4 = vsel %vm1595_vm6, %v1555_v16, %v1594_v7  ;;  %v2170_v40 = vsel %vm1595_vm6, %v2135_v2, %v2169_v30 }
 0x2b6   : > { %v1598_v48 = vsel %vm1597_vm7, %v1576_v41, %v1596_v4  ;;  %v2171_v44 = vsel %vm1597_vm7, %v2156_v37, %v2170_v40 }
 0x2b7   : > { %v1600_v18 = vadd.f32 %v1598_v48, %v1024_v26  ;;  %v2173_v53 = vadd.f32 %v2171_v44, %v1603_v15 }
 0x2b9   : > { %1601 = vst [vmem:[#allocation2] sm:$0xff] %v1600_v18  ;;  %2174 = vst [vmem:[#allocation2 + $0x8] sm:$0xff] %v2173_v53 }
 0x2cf   : > { %v1020_v55 = vpop.xlane.xlu0 %1019 }
 0x2d0   : > { %v1021_v9 = vadd.f32 %v1020_v55, %v1018_v3 }
 0x2d2   : > { %1023 = vst.msk [vmem:[#allocation3] sm:$0xff] %vm1022_vm8, %v1021_v9 }
 0x2d3 PF: > { %s6283_s3 = sld [smem:[#allocation33_spill]] }
 0x2d9   : > { %p2867_p7 = scmp.ne.s32.totalorder %s6283_s3, 3 }
 0x2db   : > { %2178 = sbr.rel (%p2867_p7) target bundleno = 1584 (0x630), region = 84 }
 0x2e2   : > { %4156 = dma.done.wait [#allocation5], 4096 }
 0x2e3   : > { %4157 = vsyncadd [#allocation5], 4294963200  ;;  %v4218_v19 = vmov 0   ;;  %v4219_v29 = vmov 0.0|0.0   ;;  %v2183_v38 = vld [vmem:[#allocation3] sm:$0xff]  ;;  %v2213_v63 = vld [vmem:[#allocation4 + $0x80] sm:$0xff] }
 0x2e4   : > { %3939 = vset.pattern.permute.xlu0 %v4218_v19  ;;  %3701 = vmatprep.subr.bf16.mxu0 %v4219_v29  ;;  %v2214_v49 = vld [vmem:[#allocation4 + $0x88] sm:$0xff]  ;;  %v2184_v14 = vmax.f32 %v2183_v38, 1.0  ;;  %v2193_v20 = vld [vmem:[#allocation4] sm:$0xff]  ;;  %v2215_v50 = vld [vmem:[#allocation4 + $0x90] sm:$0xff]  ;;  %vm4220_vm9 = vmmov 0   ;;  %v4221_v1 = vmov 0.0  }
 0x2e5   : > { %3725 = vmatprep.subr.bf16.mxu1 %v4219_v29  ;;  %v3702_v43 = vpack.c.bf16 %v2214_v49, %v2213_v63  ;;  %v2194_v33 = vld [vmem:[#allocation4 + $0x8] sm:$0xff]  ;;  %v2216_v5 = vld [vmem:[#allocation4 + $0x98] sm:$0xff]  ;;  %v2195_v13 = vld [vmem:[#allocation4 + $0x10] sm:$0xff]  ;;  %3609 = vmatprep.mubr.msk.f32.mxu0 %vm4220_vm9, %v4221_v1  ;;  %s6284_s10 = sld [smem:[#allocation66_spill]]  ;;  %s6285_s7 = sld [smem:[#allocation67_spill]]  ;;  %vm2499_vm10 = vcmask 523264  }
 0x2e6   : > { %v3726_v28 = vpack.c.bf16 %v2194_v33, %v2193_v20  ;;  %v2196_v39 = vld [vmem:[#allocation4 + $0x18] sm:$0xff]  ;;  %2188 = vperm.xlu0 %3939, %v2184_v14   ;;  %v3705_v52 = vpack.c.bf16 %v2216_v5, %v2215_v50  ;;  %v2217_v8 = vld [vmem:[#allocation4 + $0xa0] sm:$0xff]  ;;  %v2218_v36 = vld [vmem:[#allocation4 + $0xa8] sm:$0xff]  ;;  %3644 = vmatprep.mubr.msk.f32.mxu1 %vm4220_vm9, %v4221_v1  ;;  %vm2573_vm11 = vcmask 15360  }
 0x2e7   : > { %3703 = vmatpush3.bf16.msra.mxu0 %v3702_v43  ;;  %v3729_v35 = vpack.c.bf16 %v2196_v39, %v2195_v13  ;;  %v2197_v6 = vld [vmem:[#allocation4 + $0x20] sm:$0xff]  ;;  %v2198_v46 = vld [vmem:[#allocation4 + $0x28] sm:$0xff]  ;;  %v3708_v34 = vpack.c.bf16 %v2218_v36, %v2217_v8  ;;  %v2219_v11 = vld [vmem:[#allocation4 + $0xb0] sm:$0xff] }
 0x2e8   : > { %3727 = vmatpush3.bf16.msra.mxu1 %v3726_v28  ;;  %3704 = vmatprep.subr.bf16.mxu0 %v4219_v29  ;;  %v3732_v23 = vpack.c.bf16 %v2198_v46, %v2197_v6  ;;  %v2220_v51 = vld [vmem:[#allocation4 + $0xb8] sm:$0xff]  ;;  %v2199_v62 = vld [vmem:[#allocation4 + $0x30] sm:$0xff]  ;;  %v2221_v25 = vld [vmem:[#allocation4 + $0xc0] sm:$0xff] }
 0x2e9   : > { %3728 = vmatprep.subr.bf16.mxu1 %v4219_v29  ;;  %v2200_v32 = vld [vmem:[#allocation4 + $0x38] sm:$0xff]  ;;  %v3711_v58 = vpack.c.bf16 %v2220_v51, %v2219_v11  ;;  %v2222_v12 = vld [vmem:[#allocation4 + $0xc8] sm:$0xff]  ;;  %v2201_v31 = vld [vmem:[#allocation4 + $0x40] sm:$0xff] }
 0x2ea   : > { %v3735_v10 = vpack.c.bf16 %v2200_v32, %v2199_v62  ;;  %v2202_v22 = vld [vmem:[#allocation4 + $0x48] sm:$0xff]  ;;  %v3714_v57 = vpack.c.bf16 %v2222_v12, %v2221_v25  ;;  %v2223_v42 = vld [vmem:[#allocation4 + $0xd0] sm:$0xff]  ;;  %v2224_v17 = vld [vmem:[#allocation4 + $0xd8] sm:$0xff] }
 0x2eb   : > { %3706 = vmatpush3.bf16.msra.mxu0 %v3705_v52  ;;  %v3738_v45 = vpack.c.bf16 %v2202_v22, %v2201_v31  ;;  %v2203_v61 = vld [vmem:[#allocation4 + $0x50] sm:$0xff]  ;;  %v2204_v27 = vld [vmem:[#allocation4 + $0x58] sm:$0xff]  ;;  %v3717_v60 = vpack.c.bf16 %v2224_v17, %v2223_v42  ;;  %v2225_v54 = vld [vmem:[#allocation4 + $0xe0] sm:$0xff] }
 0x2ec   : > { %3730 = vmatpush3.bf16.msra.mxu1 %v3729_v35  ;;  %3707 = vmatprep.subr.bf16.mxu0 %v4219_v29  ;;  %v3741_v24 = vpack.c.bf16 %v2204_v27, %v2203_v61  ;;  %v2226_v21 = vld [vmem:[#allocation4 + $0xe8] sm:$0xff]  ;;  %v2205_v59 = vld [vmem:[#allocation4 + $0x60] sm:$0xff]  ;;  %v2227_v16 = vld [vmem:[#allocation4 + $0xf0] sm:$0xff] }
 0x2ed   : > { %3731 = vmatprep.subr.bf16.mxu1 %v4219_v29  ;;  %v2206_v0 = vld [vmem:[#allocation4 + $0x68] sm:$0xff]  ;;  %v3720_v41 = vpack.c.bf16 %v2226_v21, %v2225_v54  ;;  %v2228_v2 = vld [vmem:[#allocation4 + $0xf8] sm:$0xff]  ;;  %v2207_v56 = vld [vmem:[#allocation4 + $0x70] sm:$0xff] }
 0x2ee   : > { %v3744_v37 = vpack.c.bf16 %v2206_v0, %v2205_v59  ;;  %v2208_v7 = vld [vmem:[#allocation4 + $0x78] sm:$0xff]  ;;  %v3723_v47 = vpack.c.bf16 %v2228_v2, %v2227_v16  ;;  %v2210_v15 = vld [vmem:[#allocation2 + $0x8] sm:$0xff]  ;;  %v2185_v4 = vld [vmem:[#allocation2] sm:$0xff] }
 0x2ef   : > { %3709 = vmatpush3.bf16.msra.mxu0 %v3708_v34  ;;  %v3747_v30 = vpack.c.bf16 %v2208_v7, %v2207_v56  ;;  %v2384_v18 = vld [vmem:[%s6284_s10] sm:$0xff]  ;;  %v2385_v53 = vld [vmem:[%s6284_s10 + $0x8] sm:$0xff]  ;;  %v2386_v55 = vld [vmem:[%s6284_s10 + $0x10] sm:$0xff] }
 0x2f0   : > { %3733 = vmatpush3.bf16.msra.mxu1 %v3732_v23  ;;  %3710 = vmatprep.subr.bf16.mxu0 %v4219_v29  ;;  %v3750_v3 = vpack.c.bf16 %v2385_v53, %v2384_v18  ;;  %v2387_v9 = vld [vmem:[%s6284_s10 + $0x18] sm:$0xff]  ;;  %v2388_v38 = vld [vmem:[%s6284_s10 + $0x20] sm:$0xff]  ;;  %v2389_v63 = vld [vmem:[%s6284_s10 + $0x28] sm:$0xff] }
 0x2f1   : > { %3734 = vmatprep.subr.bf16.mxu1 %v4219_v29  ;;  %v3753_v19 = vpack.c.bf16 %v2387_v9, %v2386_v55  ;;  %v3756_v49 = vpack.c.bf16 %v2389_v63, %v2388_v38  ;;  %v2390_v14 = vld [vmem:[%s6284_s10 + $0x30] sm:$0xff]  ;;  %v2391_v43 = vld [vmem:[%s6284_s10 + $0x38] sm:$0xff]  ;;  %v2392_v33 = vld [vmem:[%s6284_s10 + $0x40] sm:$0xff] }
 0x2f2   : > { %v3759_v20 = vpack.c.bf16 %v2391_v43, %v2390_v14  ;;  %v2393_v50 = vld [vmem:[%s6284_s10 + $0x48] sm:$0xff]  ;;  %v2394_v5 = vld [vmem:[%s6284_s10 + $0x50] sm:$0xff]  ;;  %v2395_v13 = vld [vmem:[%s6284_s10 + $0x58] sm:$0xff] }
 0x2f3   : > { %3712 = vmatpush3.bf16.msra.mxu0 %v3711_v58  ;;  %v3762_v28 = vpack.c.bf16 %v2393_v50, %v2392_v33  ;;  %v3765_v39 = vpack.c.bf16 %v2395_v13, %v2394_v5  ;;  %v2396_v52 = vld [vmem:[%s6284_s10 + $0x60] sm:$0xff]  ;;  %v2397_v35 = vld [vmem:[%s6284_s10 + $0x68] sm:$0xff]  ;;  %v2398_v36 = vld [vmem:[%s6284_s10 + $0x70] sm:$0xff] }
 0x2f4   : > { %3736 = vmatpush3.bf16.msra.mxu1 %v3735_v10  ;;  %3713 = vmatprep.subr.bf16.mxu0 %v4219_v29  ;;  %v3768_v8 = vpack.c.bf16 %v2397_v35, %v2396_v52  ;;  %v2399_v6 = vld [vmem:[%s6284_s10 + $0x78] sm:$0xff]  ;;  %v2868_v23 = vld [vmem:[#allocation12] ss:$0 sm:$0xff]  ;;  %v2484_v22 = vld [vmem:[%s6285_s7] sm:$0xff] }
 0x2f5   : > { %3737 = vmatprep.subr.bf16.mxu1 %v4219_v29  ;;  %v3771_v46 = vpack.c.bf16 %v2399_v6, %v2398_v36  ;;  %v2486_v42 = vld [vmem:[%s6285_s7 + $0x10] sm:$0xff]  ;;  %v2487_v17 = vld [vmem:[%s6285_s7 + $0x18] sm:$0xff]  ;;  %v2488_v27 = vld [vmem:[%s6285_s7 + $0x20] sm:$0xff] }
 0x2f6   : > { %v3777_v61 = vpack.c.bf16 %v2487_v17, %v2486_v42  ;;  %v2490_v54 = vld [vmem:[%s6285_s7 + $0x30] sm:$0xff]  ;;  %v2491_v21 = vld [vmem:[%s6285_s7 + $0x38] sm:$0xff]  ;;  %v2870_v0 = vld [vmem:[#allocation13] ss:$0 sm:$0xff] }
 0x2f7   : > { %3715 = vmatpush3.bf16.msra.mxu0 %v3714_v57  ;;  %v2485_v57 = vld [vmem:[%s6285_s7 + $0x8] sm:$0xff]  ;;  %v3783_v59 = vpack.c.bf16 %v2491_v21, %v2490_v54 }
 0x2f8   : > { %3739 = vmatpush3.bf16.msra.mxu1 %v3738_v45  ;;  %3716 = vmatprep.subr.bf16.mxu0 %v4219_v29  ;;  %v3774_v45 = vpack.c.bf16 %v2485_v57, %v2484_v22 }
 0x2f9   : > { %3740 = vmatprep.subr.bf16.mxu1 %v4219_v29 }
 0x2fb   : > { %3718 = vmatpush3.bf16.msra.mxu0 %v3717_v60  ;;  %v2489_v60 = vld [vmem:[%s6285_s7 + $0x28] sm:$0xff] }
 0x2fc   : > { %3742 = vmatpush3.bf16.msra.mxu1 %v3741_v24  ;;  %3719 = vmatprep.subr.bf16.mxu0 %v4219_v29  ;;  %v3780_v24 = vpack.c.bf16 %v2489_v60, %v2488_v27 }
 0x2fd   : > { %3743 = vmatprep.subr.bf16.mxu1 %v4219_v29 }
 0x2ff   : > { %3721 = vmatpush3.bf16.msra.mxu0 %v3720_v41 }
 0x300   : > { %3745 = vmatpush3.bf16.msra.mxu1 %v3744_v37  ;;  %3722 = vmatprep.subr.bf16.mxu0 %v4219_v29 }
 0x301   : > { %3746 = vmatprep.subr.bf16.mxu1 %v4219_v29 }
 0x303   : > { %3724 = vmatpush3.bf16.msra.mxu0 %v3723_v47 }
 0x304   : > { %3748 = vmatpush3.bf16.msra.mxu1 %v3747_v30  ;;  %3749 = vmatprep.subr.bf16.mxu0 %v4219_v29  ;;  %v2872_v30 = vld [vmem:[#allocation15] ss:$0 sm:$0xff] }
 0x305   : > { %3773 = vmatprep.subr.bf16.mxu1 %v4219_v29 }
 0x365   : > { %v2189_v26 = vpop.permute.xlu0 %2188 }
 0x366   : > { %3940 = vrcp.f32 %v2189_v26 }
 0x370   : > { %v3941_v40 = vpop.eup %3940 }
 0x371   : > { %v2211_v48 = vmul.f32 %v3941_v40, %v2210_v15  ;;  %v2192_v44 = vmul.f32 %v3941_v40, %v2185_v4 }
 0x373   : > { %3610 = vmatmul.mubr.f32.vlgmr.msra.gmra.mrb[0].mxu0 %v2211_v48  ;;  %3645 = vmatmul.mubr.f32.vlgmr.msra.gmra.mrb[0].mxu1 %v2192_v44 }
 0x374   : > { %3679 = vmatprep.mubr.msk.f32.mxu0 %vm4220_vm9, %v4221_v1  ;;  %3698 = vmatprep.mubr.msk.f32.mxu1 %vm4220_vm9, %v4221_v1 }
 0x375   : > { %3751 = vmatpush3.bf16.msra.mxu0 %v3750_v3  ;;  %3775 = vmatpush3.bf16.msra.mxu1 %v3774_v45 }
 0x376   : > { %3752 = vmatprep.subr.bf16.mxu0 %v4219_v29  ;;  %3776 = vmatprep.subr.bf16.mxu1 %v4219_v29 }
 0x379   : > { %3754 = vmatpush3.bf16.msra.mxu0 %v3753_v19  ;;  %3778 = vmatpush3.bf16.msra.mxu1 %v3777_v61 }
 0x37a   : > { %3755 = vmatprep.subr.bf16.mxu0 %v4219_v29  ;;  %3779 = vmatprep.subr.bf16.mxu1 %v4219_v29 }
 0x37d   : > { %3757 = vmatpush3.bf16.msra.mxu0 %v3756_v49  ;;  %3781 = vmatpush3.bf16.msra.mxu1 %v3780_v24 }
 0x37e   : > { %3758 = vmatprep.subr.bf16.mxu0 %v4219_v29  ;;  %3782 = vmatprep.subr.bf16.mxu1 %v4219_v29 }
 0x381   : > { %3760 = vmatpush3.bf16.msra.mxu0 %v3759_v20  ;;  %3784 = vmatpush3.bf16.msra.mxu1 %v3783_v59 }
 0x382   : > { %3761 = vmatprep.subr.bf16.mxu0 %v4219_v29 }
 0x385   : > { %3763 = vmatpush3.bf16.msra.mxu0 %v3762_v28 }
 0x386   : > { %3764 = vmatprep.subr.bf16.mxu0 %v4219_v29 }
 0x389   : > { %3766 = vmatpush3.bf16.msra.mxu0 %v3765_v39 }
 0x38a   : > { %3767 = vmatprep.subr.bf16.mxu0 %v4219_v29 }
 0x38d   : > { %3769 = vmatpush3.bf16.msra.mxu0 %v3768_v8 }
 0x38e   : > { %3770 = vmatprep.subr.bf16.mxu0 %v4219_v29 }
 0x391   : > { %3772 = vmatpush3.bf16.msra.mxu0 %v3771_v46 }
 0x446   : > { %v2295_v1 = vpop.f32.mrb[0].mxu0  ;;  %v2365_v34 = vpop.f32.mrb[0].mxu1 }
 0x447   : > { %v2366_v11 = vadd.f32 %v2365_v34, %v2295_v1  ;;  %v3611_v51 = vpop.f32.mrb[1].mxu0  ;;  %v3646_v62 = vpop.f32.mrb[1].mxu1 }
 0x449   : > { %v2376_v32 = vadd.f32 %v2868_v23, %v2366_v11 }
 0x44b   : > { %v2869_v58 = vmul.f32 -1.442695, %v2376_v32 }
 0x44d   : > { %3942 = vpow2.f32 %v2869_v58 }
 0x457   : > { %v3943_v10 = vpop.eup %3942 }
 0x458   : > { %v2380_v25 = vadd.f32 1.0, %v3943_v10 }
 0x45a   : > { %3944 = vrcp.f32 %v2380_v25 }
 0x464   : > { %v3945_v12 = vpop.eup %3944 }
 0x465   : > { %v2383_v31 = vmul.f32 %v3945_v12, %v2376_v32 }
 0x467   : > { %3680 = vmatmul.mubr.f32.vlgmr.msra.gmra.mrb[2].mxu0 %v2383_v31 }
 0x53a   : > { %v2473_v41 = vpop.f32.mrb[2].mxu0 }
 0x53b   : > { %v2474_v37 = vadd.f32 %v2870_v0, %v2473_v41  ;;  %v3681_v16 = vpop.f32.mrb[3].mxu0 }
 0x53d   : > { %v2871_v2 = vmul.f32 -1.442695, %v2474_v37 }
 0x53f   : > { %3946 = vpow2.f32 %v2871_v2 }
 0x549   : > { %v3947_v56 = vpop.eup %3946 }
 0x54a   : > { %v2480_v7 = vadd.f32 1.0, %v3947_v56 }
 0x54c   : > { %3948 = vrcp.f32 %v2480_v7 }
 0x556   : > { %v3949_v29 = vpop.eup %3948 }
 0x557   : > { %v2483_v47 = vmul.f32 %v3949_v29, %v2474_v37 }
 0x559   : > { %3699 = vmatmul.mubr.msk.f32.vlgmr.msra.gmra.mrb[2].mxu1 %vm2499_vm10, %v2483_v47 }
 0x62c   : > { %v2569_v26 = vpop.f32.mrb[2].mxu1 }
 0x62d   : > { %v2570_v15 = vadd.f32 %v2872_v30, %v2569_v26  ;;  %v3700_v4 = vpop.f32.mrb[3].mxu1 }
 0x62f   : > { %2574 = vst.msk [vmem:[%s4599_s14] sm:$0xff] %vm2573_vm11, %v2570_v15 }
 0x630 PF: > { %s30_s28 = sadd.s32 1, %s4200_s28   ;;  %s6286_s19 = sld [smem:[#allocation31_spill]] }
 0x631   : > { %p27_p9 = scmp.ge.s32.totalorder %s30_s28, 10   ;;  %s6287_s22 = sld [smem:[#allocation32_spill]] }
 0x632   : > { %s6288_s16 = sld [smem:[#allocation36_spill]]  ;;  %s6289_s20 = smov %s4168_s21 }
 0x633   : > { %s6290_s21 = smov %s4446_s17  ;;  %s6291_s23 = smov %s4180_s24 }
 0x634   : > { %s6292_s24 = smov %s4415_s25  ;;  %s6293_s0 = smov %s4192_s26 }
 0x635   : > { %s6294_s25 = smov %s4196_s27  ;;  %s6295_s26 = smov %s6298_s30 }
 0x636   :  { %29 = sbr.rel (!%p27_p9) target bundleno = 23 (0x17), region = 141 }
 0x638   : > { %s6296_s27 = smov %s6288_s16 }
 0x63d   :  { %2594 = vsyncpa [#allocation9], 1 }
 0x63e   :  { %2596 = vsyncpa [#allocation9 + $0x1], 1 }
 0x63f   :  { %2597 = vsyncpa [#allocation11], 1 }
 0x640   :  { %2599 = vsyncpa [#allocation11 + $0x1], 1 }
 0x641   :  { %2600 = vsyncpa [#allocation14], 1 }
 0x642   :  { %2601 = vsyncmov [#allocation5] }
 0x645   :  { %s2602_s17 = vpop.sfrf %2601 }
 0x646   :  { %p2876_p10 = scmp.ne.s32.totalorder %s2602_s17, 0 }
 0x648   :  { %2606 = shalt.err (%p2876_p10)  }

</bundles_post_ra>
